<compile_context>
chip_gen: v5e
topology: v5e:2x2
jax: 0.10.0
libtpu: 0.0.40
codegen_flags: <defaults>
</compile_context>

<pallas_src>
import jax
import jax.numpy as jnp
from jax.experimental import pallas as pl
from jax.experimental.pallas import tpu as pltpu

# Model hyper-parameters (small, consistent with the previous version).
ENC_IN     = 5
TIMEBED    = 1          # timebed='hour'
C_OUT      = 4
LABEL_LEN  = 16
PRED_LEN   = 4
D_MODEL    = 8
BLOCK_NUMS = 3
TIME_NUMS  = 2
KSIZE      = 3
PYRAMID    = 1
BATCH      = 2
GROUP_CH   = ENC_IN - TIMEBED           # = 4
SEQ_LEN    = LABEL_LEN + PRED_LEN       # = 20
LAST_DIM   = D_MODEL * 2 ** BLOCK_NUMS  # = 64

_W_WIDTH = 128    # lane width of the packed bf16 weight buffer
_B_WIDTH = 128    # lane width of the packed f32 bias buffer


# ---------------------------- parameters -----------------------------------
def init_params(key):
    keys = iter(jax.random.split(key, 128))

    def nrm(shape, fan_in):
        return (jax.random.normal(next(keys), shape, jnp.float32)
                / jnp.sqrt(jnp.float32(fan_in)))

    def conv_block_params(cin, cout, k):
        return dict(
            w1=nrm((k, cin, cout), k * cin),   b1=jnp.zeros((1, cout), jnp.float32),
            w2=nrm((k, cout, cout), k * cout), b2=jnp.zeros((1, cout), jnp.float32),
            ws=nrm((cin, cout), cin),          bs=jnp.zeros((1, cout), jnp.float32),
        )

    params = {}
    params["enc_bed_w"] = nrm((KSIZE, GROUP_CH, D_MODEL), KSIZE * GROUP_CH)
    params["enc_bed_b"] = jnp.zeros((1, D_MODEL), jnp.float32)  # TokenEmbedding: no bias
    params["rt_blocks"] = [
        conv_block_params(D_MODEL * 2 ** i, D_MODEL * 2 ** (i + 1), KSIZE)
        for i in range(BLOCK_NUMS)
    ]
    proj_in = LAST_DIM * LABEL_LEN // 2 ** BLOCK_NUMS             # = 128
    params["proj_w"] = nrm((proj_in, PRED_LEN * C_OUT), proj_in)
    params["proj_b"] = jnp.zeros((1, PRED_LEN * C_OUT), jnp.float32)
    params["dec_bed_w"] = nrm((KSIZE, ENC_IN, D_MODEL), KSIZE * ENC_IN)
    params["dec_bed_b"] = jnp.zeros((1, D_MODEL), jnp.float32)
    params["time_blocks"] = [
        conv_block_params(D_MODEL * 2 ** i, D_MODEL * 2 ** (i + 1), KSIZE)
        for i in range(TIME_NUMS)
    ]
    params["pos_w"] = nrm((D_MODEL * 2 ** TIME_NUMS, C_OUT), D_MODEL * 2 ** TIME_NUMS)
    params["pos_b"] = jnp.zeros((1, C_OUT), jnp.float32)
    return params


# ------------------------- host-side weight packing ------------------------
class _Packer:
    """Packs many small 2-D tensors into one [rows, width] buffer with static
    row offsets, so the kernel issues ONE DMA instead of one per tensor."""

    def __init__(self, width, out_dtype, row_align):
        self.width, self.out_dtype, self.row_align = width, out_dtype, row_align
        self.rows = 0
        self.pieces = []
        self.slots = {}          # name -> (row0, rows, cols)   (static Python)

    def add(self, name, arr):
        arr = jnp.asarray(arr, jnp.float32)
        r, c = arr.shape
        assert c <= self.width, (name, arr.shape)
        rp = -(-r // self.row_align) * self.row_align
        piece = jnp.zeros((rp, self.width), jnp.float32).at[:r, :c].set(arr)
        self.pieces.append(piece)
        self.slots[name] = (self.rows, r, c)
        self.rows += rp

    def buffer(self):
        return jnp.concatenate(self.pieces, axis=0).astype(self.out_dtype)


def pack_params(params):
    """One-off host-side prep:
      * RT branch keeps the batch on LANES -> every weight becomes
        block-diagonal over the batch: [K*B*Cin, B*Cout].
      * time branch keeps the batch on ROWS and folds the 4 pred positions
        into lanes -> circular k=3 convs become block-circulant [4*Cin, 4*Cout]
        matrices (no rolls needed in that branch).
      * projection columns pre-permuted to (pred, c_out) order, 1/pyramid
        folded in, so the kernel output row is already in final layout.
    Everything is packed into one bf16 weight buffer and one f32 bias buffer.
    """
    wp = _Packer(_W_WIDTH, jnp.bfloat16, row_align=16)   # MXU weights (bf16)
    bp = _Packer(_B_WIDTH, jnp.float32, row_align=1)     # biases (f32)

    def bdiag(w):                      # [Cin, Cout] -> [B*Cin, B*Cout]
        return jnp.kron(jnp.eye(BATCH, dtype=jnp.float32), w)

    def conv_bdiag(w):                 # [K, Cin, Cout] -> [K*B*Cin, B*Cout]
        return jnp.concatenate([bdiag(w[k]) for k in range(w.shape[0])], axis=0)

    def pdiag(w):                      # [Cin, Cout] -> [P*Cin, P*Cout]
        return jnp.kron(jnp.eye(PRED_LEN, dtype=jnp.float32), w)

    def circulant(w):                  # [K, Cin, Cout] -> [P*Cin, P*Cout]
        k_sz, ci, co = w.shape
        m = jnp.zeros((PRED_LEN, ci, PRED_LEN, co), jnp.float32)
        for p in range(PRED_LEN):
            for k in range(k_sz):
                m = m.at[(p + k - 1) % PRED_LEN, :, p, :].add(w[k])
        return m.reshape(PRED_LEN * ci, PRED_LEN * co)

    def rep(b, n):                     # bias [1, C] -> [1, n*C]
        return jnp.tile(b, (1, n))

    wp.add("emb_w", conv_bdiag(params["enc_bed_w"]))
    bp.add("emb_b", rep(params["enc_bed_b"], BATCH))
    for i, blk in enumerate(params["rt_blocks"]):
        wp.add(f"rt{i}_w1", conv_bdiag(blk["w1"]))
        wp.add(f"rt{i}_w2", conv_bdiag(blk["w2"]))
        wp.add(f"rt{i}_ws", bdiag(blk["ws"]))
        bp.add(f"rt{i}_b1", rep(blk["b1"], BATCH))
        bp.add(f"rt{i}_b2", rep(blk["b2"], BATCH))
        bp.add(f"rt{i}_bs", rep(blk["bs"], BATCH))

    # projection: rows are l-major (matches Flatten(x.permute(0,2,1))); columns
    # permuted from PyTorch's (c_out, pred) order to (pred, c_out); /pyramid folded.
    pin = params["proj_w"].shape[0]
    proj_pc = (params["proj_w"].reshape(pin, C_OUT, PRED_LEN)
               .transpose(0, 2, 1).reshape(pin, PRED_LEN * C_OUT))
    projb_pc = params["proj_b"].reshape(C_OUT, PRED_LEN).T.reshape(1, PRED_LEN * C_OUT)
    wp.add("proj_w", proj_pc * (1.0 / PYRAMID))
    bp.add("proj_b", projb_pc * (1.0 / PYRAMID))

    wp.add("tbed_w", circulant(params["dec_bed_w"]))
    bp.add("tbed_b", rep(params["dec_bed_b"], PRED_LEN))
    for j, blk in enumerate(params["time_blocks"]):
        wp.add(f"tm{j}_w1", circulant(blk["w1"]))
        wp.add(f"tm{j}_w2", circulant(blk["w2"]))
        wp.add(f"tm{j}_ws", pdiag(blk["ws"]))
        bp.add(f"tm{j}_b1", rep(blk["b1"], PRED_LEN))
        bp.add(f"tm{j}_b2", rep(blk["b2"], PRED_LEN))
        bp.add(f"tm{j}_bs", rep(blk["bs"], PRED_LEN))
    wp.add("pos_w", pdiag(params["pos_w"]))
    bp.add("pos_b", rep(params["pos_b"], PRED_LEN))

    return dict(wbuf=wp.buffer(), bbuf=bp.buffer(),
                w_slots=wp.slots, b_slots=bp.slots)


# ------------------------------ fused kernel -------------------------------
def _make_kernel(w_slots, b_slots, use_roll=True, use_expm1=True):

    def rot(x, s):
        """y[i, :] = x[(i + s) % L, :] — circular shift along rows."""
        L = x.shape[0]
        s = s % L
        if s == 0:
            return x
        if use_roll:
            return pltpu.roll(x, shift=L - s, axis=0)     # XLU rotate slot
        return jnp.concatenate([x[s:, :], x[:s, :]], axis=0)

    def elu(x):
        neg = jnp.expm1(x) if use_expm1 else jnp.exp(x) - 1.0
        return jnp.where(x > 0.0, x, neg)

    def kernel(x_rt_ref, x_tm_ref, rel_ref, w_ref, b_ref, o_ref):
        def W(name):                                       # bf16 weight window
            r0, r, c = w_slots[name]
            return w_ref[r0:r0 + r, 0:c]

        def B_(name):                                      # f32 bias row
            r0, r, c = b_slots[name]
            return b_ref[r0:r0 + r, 0:c]

        def mm(x, w):                                      # bf16 MXU, f32 acc
            return jnp.dot(x.astype(jnp.bfloat16), w,
                           preferred_element_type=jnp.float32)

        def conv(x, wname, bname, stride):                 # circular k=3 conv
            xm = jnp.concatenate([rot(x, -stride), x, rot(x, stride)], axis=1)
            return mm(xm, W(wname)) + B_(bname)

        # ---------------- RT / encoder branch (batch on lanes) -------------
        h = mm(x_rt_ref[...], rel_ref[...].astype(jnp.bfloat16))   # enc_input @ relate
        h = conv(h, "emb_w", "emb_b", 1)                            # DataEmbedding [16, B*8]
        stride = 1
        for i in range(BLOCK_NUMS):                                 # ResNet ConvBlocks
            c1 = elu(conv(h, f"rt{i}_w1", f"rt{i}_b1", stride))
            c2 = elu(conv(c1, f"rt{i}_w2", f"rt{i}_b2", stride))
            h = c2 + mm(h, W(f"rt{i}_ws")) + B_(f"rt{i}_bs")
            # MaxPool1d(2) in strided-row form (valid rows at multiples of stride)
            h = jnp.maximum(h, rot(h, stride))
            stride *= 2

        # Flatten(x.permute(0,2,1)) + 1x1 projection as ONE [B,128]@[128,16] matmul.
        n_keep = LABEL_LEN // stride                                # = 2 surviving rows
        per_b = []
        for b in range(BATCH):
            parts = [h[l * stride:l * stride + 1, b * LAST_DIM:(b + 1) * LAST_DIM]
                     for l in range(n_keep)]
            per_b.append(jnp.concatenate(parts, axis=1))            # [1, n_keep*64]
        flat = jnp.concatenate(per_b, axis=0)                       # [B, 128]
        enc = mm(flat, W("proj_w")) + B_("proj_b")                  # [B, 16] (p,c), /pyramid folded

        # ---------------- time branch (pred positions folded into lanes) ---
        d = mm(x_tm_ref[...], W("tbed_w")) + B_("tbed_b")           # dec DataEmbedding [B, 4*8]
        for j in range(TIME_NUMS):                                  # pool=False blocks
            t1 = elu(mm(d, W(f"tm{j}_w1")) + B_(f"tm{j}_b1"))
            t2 = elu(mm(t1, W(f"tm{j}_w2")) + B_(f"tm{j}_b2"))
            d = t2 + mm(d, W(f"tm{j}_ws")) + B_(f"tm{j}_bs")
        d = elu(mm(d, W("pos_w")) + B_("pos_b"))                    # pos_time (k=1) [B, 16]

        o_ref[...] = (enc + d).astype(o_ref.dtype)                  # lane-dense [B, 16] store

    return kernel


# --------------------------- forward (one pallas_call) ---------------------
def make_rt_forward(w_slots, b_slots, use_roll=True, use_expm1=True):
    kernel = _make_kernel(w_slots, b_slots, use_roll=use_roll, use_expm1=use_expm1)

    def _full_spec(a):
        nd = a.ndim
        return pl.BlockSpec(a.shape, lambda i, _nd=nd: (0,) * _nd)

    def fwd(wbuf, bbuf, x_enc, relate):
        assert x_enc.shape[0] == BATCH   # batch size is baked into the packed weights
        # Tiny per-call prep (XLA side): input re-layout + relate normalisation.
        x_rt = x_enc[:, :LABEL_LEN, :GROUP_CH]                       # [B, 16, 4]
        x_rt = jnp.transpose(x_rt, (1, 0, 2)).reshape(LABEL_LEN, BATCH * GROUP_CH)
        x_tm = x_enc[:, LABEL_LEN:, :].reshape(BATCH, PRED_LEN * ENC_IN)
        rel_n = relate / jnp.sum(relate, axis=0, keepdims=True)      # relate / relate.sum(0)
        rel_bd = jnp.kron(jnp.eye(BATCH, dtype=rel_n.dtype), rel_n)  # block-diag over batch

        args = (x_rt, x_tm, rel_bd, wbuf, bbuf)
        out = pl.pallas_call(
            kernel,
            out_shape=jax.ShapeDtypeStruct((BATCH, PRED_LEN * C_OUT), x_enc.dtype),
            grid=(1,),                                   # whole batch in one step
            in_specs=[_full_spec(a) for a in args],
            out_specs=pl.BlockSpec((BATCH, PRED_LEN * C_OUT), lambda i: (0, 0)),
            compiler_params=pltpu.CompilerParams(
                dimension_semantics=("arbitrary",),
                vmem_limit_bytes=8 * 1024 * 1024,        # footprint is ~1 MiB
            ),
        )(*args)
        return out.reshape(BATCH, PRED_LEN, C_OUT)

    return jax.jit(fwd)


if __name__ == "__main__":
    key = jax.random.PRNGKey(0)
    k_p, k_x, k_r = jax.random.split(key, 3)
    params = init_params(k_p)
    packed = pack_params(params)

    x_enc = jax.random.normal(k_x, (BATCH, SEQ_LEN, ENC_IN), jnp.float32)
    relate = jax.random.uniform(k_r, (GROUP_CH, GROUP_CH), jnp.float32,
                                minval=0.5, maxval=1.5)

    out, last_err = None, None
    # Preferred config uses pltpu.roll + expm1; fallbacks keep the script
    # runnable on Mosaic builds that reject either lowering.
    for use_roll, use_expm1 in ((True, True), (True, False), (False, False)):
        try:
            fwd = make_rt_forward(packed["w_slots"], packed["b_slots"],
                                  use_roll=use_roll, use_expm1=use_expm1)
            out = jax.block_until_ready(
                fwd(packed["wbuf"], packed["bbuf"], x_enc, relate))
            break
        except Exception as e:   # TODO(synk): portability fallback path
            last_err = e
    if out is None:
        raise last_err

    assert out.shape == (BATCH, PRED_LEN, C_OUT), out.shape
    print("KERNEL_OK")
</pallas_src>

<mosaic_0001>
module attributes {stable_mosaic.version = 11 : i64} {
  func.func @kernel(%arg0: i32, %arg1: memref<16x8xf32, #tpu.memory_space<vmem>>, %arg2: memref<2x20xf32, #tpu.memory_space<vmem>>, %arg3: memref<8x8xf32, #tpu.memory_space<vmem>>, %arg4: memref<1824x128xbf16, #tpu.memory_space<vmem>>, %arg5: memref<19x128xf32, #tpu.memory_space<vmem>>, %arg6: memref<2x16xf32, #tpu.memory_space<vmem>>) attributes {dimension_semantics = [#tpu.dimension_semantics<arbitrary>], iteration_bounds = array<i64: 1>, scalar_prefetch = 0 : i64, scratch_operands = 0 : i64, tpu.core_type = #tpu.core_type<tc>, window_params = [{pipeline_mode = #tpu.pipeline_mode<synchronous>, transform_indices = @transform_0, window_bounds = array<i64: 16, 8>}, {pipeline_mode = #tpu.pipeline_mode<synchronous>, transform_indices = @transform_1, window_bounds = array<i64: 2, 20>}, {pipeline_mode = #tpu.pipeline_mode<synchronous>, transform_indices = @transform_2, window_bounds = array<i64: 8, 8>}, {pipeline_mode = #tpu.pipeline_mode<synchronous>, transform_indices = @transform_3, window_bounds = array<i64: 1824, 128>}, {pipeline_mode = #tpu.pipeline_mode<synchronous>, transform_indices = @transform_4, window_bounds = array<i64: 19, 128>}, {pipeline_mode = #tpu.pipeline_mode<synchronous>, transform_indices = @transform_5, window_bounds = array<i64: 2, 16>}]} {
    %c0 = arith.constant 0 : index
    %c0_0 = arith.constant 0 : index
    %0 = vector.load %arg1[%c0, %c0_0] : memref<16x8xf32, #tpu.memory_space<vmem>>, vector<16x8xf32>
    %c0_1 = arith.constant 0 : index
    %c0_2 = arith.constant 0 : index
    %1 = vector.load %arg3[%c0_1, %c0_2] : memref<8x8xf32, #tpu.memory_space<vmem>>, vector<8x8xf32>
    %2 = arith.truncf %1 : vector<8x8xf32> to vector<8x8xbf16>
    %3 = arith.truncf %0 : vector<16x8xf32> to vector<16x8xbf16>
    %cst = arith.constant dense<0.000000e+00> : vector<16x8xf32>
    %4 = tpu.matmul %3, %2, %cst {dimension_numbers = #tpu.dot_dimension_numbers<[1], [0], [0], [1], [0, 0, 1, 1], [], []>} : vector<16x8xbf16>, vector<8x8xbf16>, vector<16x8xf32> -> vector<16x8xf32>
    %c1_i32 = arith.constant 1 : i32
    %5 = tpu.dynamic_rotate %4 by %c1_i32 dim 0 : vector<16x8xf32>, i32 -> vector<16x8xf32>
    %c15_i32 = arith.constant 15 : i32
    %6 = tpu.dynamic_rotate %4 by %c15_i32 dim 0 : vector<16x8xf32>, i32 -> vector<16x8xf32>
    %7 = tpu.concatenate %5, %4, %6 in 1 : vector<16x8xf32>, vector<16x8xf32>, vector<16x8xf32> -> vector<16x24xf32>
    %c0_3 = arith.constant 0 : index
    %c0_4 = arith.constant 0 : index
    %8 = vector.load %arg4[%c0_3, %c0_4] : memref<1824x128xbf16, #tpu.memory_space<vmem>>, vector<24x16xbf16>
    %9 = arith.truncf %7 : vector<16x24xf32> to vector<16x24xbf16>
    %cst_5 = arith.constant dense<0.000000e+00> : vector<16x16xf32>
    %10 = tpu.matmul %9, %8, %cst_5 {dimension_numbers = #tpu.dot_dimension_numbers<[1], [0], [0], [1], [0, 0, 1, 1], [], []>} : vector<16x24xbf16>, vector<24x16xbf16>, vector<16x16xf32> -> vector<16x16xf32>
    %c0_6 = arith.constant 0 : index
    %c0_7 = arith.constant 0 : index
    %11 = vector.load %arg5[%c0_6, %c0_7] : memref<19x128xf32, #tpu.memory_space<vmem>>, vector<1x16xf32>
    %12 = vector.broadcast %11 : vector<1x16xf32> to vector<16x16xf32>
    %13 = arith.addf %10, %12 : vector<16x16xf32>
    %c1_i32_8 = arith.constant 1 : i32
    %14 = tpu.dynamic_rotate %13 by %c1_i32_8 dim 0 : vector<16x16xf32>, i32 -> vector<16x16xf32>
    %c15_i32_9 = arith.constant 15 : i32
    %15 = tpu.dynamic_rotate %13 by %c15_i32_9 dim 0 : vector<16x16xf32>, i32 -> vector<16x16xf32>
    %16 = tpu.concatenate %14, %13, %15 in 1 : vector<16x16xf32>, vector<16x16xf32>, vector<16x16xf32> -> vector<16x48xf32>
    %c32 = arith.constant 32 : index
    %c0_10 = arith.constant 0 : index
    %17 = vector.load %arg4[%c32, %c0_10] : memref<1824x128xbf16, #tpu.memory_space<vmem>>, vector<48x32xbf16>
    %18 = arith.truncf %16 : vector<16x48xf32> to vector<16x48xbf16>
    %cst_11 = arith.constant dense<0.000000e+00> : vector<16x32xf32>
    %19 = tpu.matmul %18, %17, %cst_11 {dimension_numbers = #tpu.dot_dimension_numbers<[1], [0], [0], [1], [0, 0, 1, 1], [], []>} : vector<16x48xbf16>, vector<48x32xbf16>, vector<16x32xf32> -> vector<16x32xf32>
    %c1 = arith.constant 1 : index
    %c0_12 = arith.constant 0 : index
    %20 = vector.load %arg5[%c1, %c0_12] : memref<19x128xf32, #tpu.memory_space<vmem>>, vector<1x32xf32>
    %21 = vector.broadcast %20 : vector<1x32xf32> to vector<16x32xf32>
    %22 = arith.addf %19, %21 : vector<16x32xf32>
    %23 = math.exp %22 : vector<16x32xf32>
    %cst_13 = arith.constant 1.000000e+00 : f32
    %24 = vector.broadcast %cst_13 : f32 to vector<16x32xf32>
    %25 = arith.subf %23, %24 : vector<16x32xf32>
    %cst_14 = arith.constant 0.000000e+00 : f32
    %26 = vector.broadcast %cst_14 : f32 to vector<16x32xf32>
    %27 = arith.cmpf ogt, %22, %26 : vector<16x32xf32>
    %28 = arith.select %27, %22, %25 : vector<16x32xi1>, vector<16x32xf32>
    %c1_i32_15 = arith.constant 1 : i32
    %29 = tpu.dynamic_rotate %28 by %c1_i32_15 dim 0 : vector<16x32xf32>, i32 -> vector<16x32xf32>
    %c15_i32_16 = arith.constant 15 : i32
    %30 = tpu.dynamic_rotate %28 by %c15_i32_16 dim 0 : vector<16x32xf32>, i32 -> vector<16x32xf32>
    %31 = tpu.concatenate %29, %28, %30 in 1 : vector<16x32xf32>, vector<16x32xf32>, vector<16x32xf32> -> vector<16x96xf32>
    %c80 = arith.constant 80 : index
    %c0_17 = arith.constant 0 : index
    %32 = vector.load %arg4[%c80, %c0_17] : memref<1824x128xbf16, #tpu.memory_space<vmem>>, vector<96x32xbf16>
    %33 = arith.truncf %31 : vector<16x96xf32> to vector<16x96xbf16>
    %cst_18 = arith.constant dense<0.000000e+00> : vector<16x32xf32>
    %34 = tpu.matmul %33, %32, %cst_18 {dimension_numbers = #tpu.dot_dimension_numbers<[1], [0], [0], [1], [0, 0, 1, 1], [], []>} : vector<16x96xbf16>, vector<96x32xbf16>, vector<16x32xf32> -> vector<16x32xf32>
    %c2 = arith.constant 2 : index
    %c0_19 = arith.constant 0 : index
    %35 = vector.load %arg5[%c2, %c0_19] : memref<19x128xf32, #tpu.memory_space<vmem>>, vector<1x32xf32>
    %36 = vector.broadcast %35 : vector<1x32xf32> to vector<16x32xf32>
    %37 = arith.addf %34, %36 : vector<16x32xf32>
    %38 = math.exp %37 : vector<16x32xf32>
    %cst_20 = arith.constant 1.000000e+00 : f32
    %39 = vector.broadcast %cst_20 : f32 to vector<16x32xf32>
    %40 = arith.subf %38, %39 : vector<16x32xf32>
    %cst_21 = arith.constant 0.000000e+00 : f32
    %41 = vector.broadcast %cst_21 : f32 to vector<16x32xf32>
    %42 = arith.cmpf ogt, %37, %41 : vector<16x32xf32>
    %43 = arith.select %42, %37, %40 : vector<16x32xi1>, vector<16x32xf32>
    %c176 = arith.constant 176 : index
    %c0_22 = arith.constant 0 : index
    %44 = vector.load %arg4[%c176, %c0_22] : memref<1824x128xbf16, #tpu.memory_space<vmem>>, vector<16x32xbf16>
    %45 = arith.truncf %13 : vector<16x16xf32> to vector<16x16xbf16>
    %cst_23 = arith.constant dense<0.000000e+00> : vector<16x32xf32>
    %46 = tpu.matmul %45, %44, %cst_23 {dimension_numbers = #tpu.dot_dimension_numbers<[1], [0], [0], [1], [0, 0, 1, 1], [], []>} : vector<16x16xbf16>, vector<16x32xbf16>, vector<16x32xf32> -> vector<16x32xf32>
    %47 = arith.addf %43, %46 : vector<16x32xf32>
    %c3 = arith.constant 3 : index
    %c0_24 = arith.constant 0 : index
    %48 = vector.load %arg5[%c3, %c0_24] : memref<19x128xf32, #tpu.memory_space<vmem>>, vector<1x32xf32>
    %49 = vector.broadcast %48 : vector<1x32xf32> to vector<16x32xf32>
    %50 = arith.addf %47, %49 : vector<16x32xf32>
    %c15_i32_25 = arith.constant 15 : i32
    %51 = tpu.dynamic_rotate %50 by %c15_i32_25 dim 0 : vector<16x32xf32>, i32 -> vector<16x32xf32>
    %52 = arith.maximumf %50, %51 : vector<16x32xf32>
    %c2_i32 = arith.constant 2 : i32
    %53 = tpu.dynamic_rotate %52 by %c2_i32 dim 0 : vector<16x32xf32>, i32 -> vector<16x32xf32>
    %c14_i32 = arith.constant 14 : i32
    %54 = tpu.dynamic_rotate %52 by %c14_i32 dim 0 : vector<16x32xf32>, i32 -> vector<16x32xf32>
    %55 = tpu.concatenate %53, %52, %54 in 1 : vector<16x32xf32>, vector<16x32xf32>, vector<16x32xf32> -> vector<16x96xf32>
    %c192 = arith.constant 192 : index
    %c0_26 = arith.constant 0 : index
    %56 = vector.load %arg4[%c192, %c0_26] : memref<1824x128xbf16, #tpu.memory_space<vmem>>, vector<96x64xbf16>
    %57 = arith.truncf %55 : vector<16x96xf32> to vector<16x96xbf16>
    %cst_27 = arith.constant dense<0.000000e+00> : vector<16x64xf32>
    %58 = tpu.matmul %57, %56, %cst_27 {dimension_numbers = #tpu.dot_dimension_numbers<[1], [0], [0], [1], [0, 0, 1, 1], [], []>} : vector<16x96xbf16>, vector<96x64xbf16>, vector<16x64xf32> -> vector<16x64xf32>
    %c4 = arith.constant 4 : index
    %c0_28 = arith.constant 0 : index
    %59 = vector.load %arg5[%c4, %c0_28] : memref<19x128xf32, #tpu.memory_space<vmem>>, vector<1x64xf32>
    %60 = vector.broadcast %59 : vector<1x64xf32> to vector<16x64xf32>
    %61 = arith.addf %58, %60 : vector<16x64xf32>
    %62 = math.exp %61 : vector<16x64xf32>
    %cst_29 = arith.constant 1.000000e+00 : f32
    %63 = vector.broadcast %cst_29 : f32 to vector<16x64xf32>
    %64 = arith.subf %62, %63 : vector<16x64xf32>
    %cst_30 = arith.constant 0.000000e+00 : f32
    %65 = vector.broadcast %cst_30 : f32 to vector<16x64xf32>
    %66 = arith.cmpf ogt, %61, %65 : vector<16x64xf32>
    %67 = arith.select %66, %61, %64 : vector<16x64xi1>, vector<16x64xf32>
    %c2_i32_31 = arith.constant 2 : i32
    %68 = tpu.dynamic_rotate %67 by %c2_i32_31 dim 0 : vector<16x64xf32>, i32 -> vector<16x64xf32>
    %c14_i32_32 = arith.constant 14 : i32
    %69 = tpu.dynamic_rotate %67 by %c14_i32_32 dim 0 : vector<16x64xf32>, i32 -> vector<16x64xf32>
    %70 = tpu.concatenate %68, %67, %69 in 1 : vector<16x64xf32>, vector<16x64xf32>, vector<16x64xf32> -> vector<16x192xf32>
    %c288 = arith.constant 288 : index
    %c0_33 = arith.constant 0 : index
    %71 = vector.load %arg4[%c288, %c0_33] : memref<1824x128xbf16, #tpu.memory_space<vmem>>, vector<192x64xbf16>
    %72 = arith.truncf %70 : vector<16x192xf32> to vector<16x192xbf16>
    %cst_34 = arith.constant dense<0.000000e+00> : vector<16x64xf32>
    %73 = tpu.matmul %72, %71, %cst_34 {dimension_numbers = #tpu.dot_dimension_numbers<[1], [0], [0], [1], [0, 0, 1, 1], [], []>} : vector<16x192xbf16>, vector<192x64xbf16>, vector<16x64xf32> -> vector<16x64xf32>
    %c5 = arith.constant 5 : index
    %c0_35 = arith.constant 0 : index
    %74 = vector.load %arg5[%c5, %c0_35] : memref<19x128xf32, #tpu.memory_space<vmem>>, vector<1x64xf32>
    %75 = vector.broadcast %74 : vector<1x64xf32> to vector<16x64xf32>
    %76 = arith.addf %73, %75 : vector<16x64xf32>
    %77 = math.exp %76 : vector<16x64xf32>
    %cst_36 = arith.constant 1.000000e+00 : f32
    %78 = vector.broadcast %cst_36 : f32 to vector<16x64xf32>
    %79 = arith.subf %77, %78 : vector<16x64xf32>
    %cst_37 = arith.constant 0.000000e+00 : f32
    %80 = vector.broadcast %cst_37 : f32 to vector<16x64xf32>
    %81 = arith.cmpf ogt, %76, %80 : vector<16x64xf32>
    %82 = arith.select %81, %76, %79 : vector<16x64xi1>, vector<16x64xf32>
    %c480 = arith.constant 480 : index
    %c0_38 = arith.constant 0 : index
    %83 = vector.load %arg4[%c480, %c0_38] : memref<1824x128xbf16, #tpu.memory_space<vmem>>, vector<32x64xbf16>
    %84 = arith.truncf %52 : vector<16x32xf32> to vector<16x32xbf16>
    %cst_39 = arith.constant dense<0.000000e+00> : vector<16x64xf32>
    %85 = tpu.matmul %84, %83, %cst_39 {dimension_numbers = #tpu.dot_dimension_numbers<[1], [0], [0], [1], [0, 0, 1, 1], [], []>} : vector<16x32xbf16>, vector<32x64xbf16>, vector<16x64xf32> -> vector<16x64xf32>
    %86 = arith.addf %82, %85 : vector<16x64xf32>
    %c6 = arith.constant 6 : index
    %c0_40 = arith.constant 0 : index
    %87 = vector.load %arg5[%c6, %c0_40] : memref<19x128xf32, #tpu.memory_space<vmem>>, vector<1x64xf32>
    %88 = vector.broadcast %87 : vector<1x64xf32> to vector<16x64xf32>
    %89 = arith.addf %86, %88 : vector<16x64xf32>
    %c14_i32_41 = arith.constant 14 : i32
    %90 = tpu.dynamic_rotate %89 by %c14_i32_41 dim 0 : vector<16x64xf32>, i32 -> vector<16x64xf32>
    %91 = arith.maximumf %89, %90 : vector<16x64xf32>
    %c4_i32 = arith.constant 4 : i32
    %92 = tpu.dynamic_rotate %91 by %c4_i32 dim 0 : vector<16x64xf32>, i32 -> vector<16x64xf32>
    %c12_i32 = arith.constant 12 : i32
    %93 = tpu.dynamic_rotate %91 by %c12_i32 dim 0 : vector<16x64xf32>, i32 -> vector<16x64xf32>
    %94 = tpu.concatenate %92, %91, %93 in 1 : vector<16x64xf32>, vector<16x64xf32>, vector<16x64xf32> -> vector<16x192xf32>
    %c512 = arith.constant 512 : index
    %c0_42 = arith.constant 0 : index
    %95 = vector.load %arg4[%c512, %c0_42] : memref<1824x128xbf16, #tpu.memory_space<vmem>>, vector<192x128xbf16>
    %96 = arith.truncf %94 : vector<16x192xf32> to vector<16x192xbf16>
    %cst_43 = arith.constant dense<0.000000e+00> : vector<16x128xf32>
    %97 = tpu.matmul %96, %95, %cst_43 {dimension_numbers = #tpu.dot_dimension_numbers<[1], [0], [0], [1], [0, 0, 1, 1], [], []>} : vector<16x192xbf16>, vector<192x128xbf16>, vector<16x128xf32> -> vector<16x128xf32>
    %c7 = arith.constant 7 : index
    %c0_44 = arith.constant 0 : index
    %98 = vector.load %arg5[%c7, %c0_44] : memref<19x128xf32, #tpu.memory_space<vmem>>, vector<1x128xf32>
    %99 = vector.broadcast %98 : vector<1x128xf32> to vector<16x128xf32>
    %100 = arith.addf %97, %99 : vector<16x128xf32>
    %101 = math.exp %100 : vector<16x128xf32>
    %cst_45 = arith.constant 1.000000e+00 : f32
    %102 = vector.broadcast %cst_45 : f32 to vector<16x128xf32>
    %103 = arith.subf %101, %102 : vector<16x128xf32>
    %cst_46 = arith.constant 0.000000e+00 : f32
    %104 = vector.broadcast %cst_46 : f32 to vector<16x128xf32>
    %105 = arith.cmpf ogt, %100, %104 : vector<16x128xf32>
    %106 = arith.select %105, %100, %103 : vector<16x128xi1>, vector<16x128xf32>
    %c4_i32_47 = arith.constant 4 : i32
    %107 = tpu.dynamic_rotate %106 by %c4_i32_47 dim 0 : vector<16x128xf32>, i32 -> vector<16x128xf32>
    %c12_i32_48 = arith.constant 12 : i32
    %108 = tpu.dynamic_rotate %106 by %c12_i32_48 dim 0 : vector<16x128xf32>, i32 -> vector<16x128xf32>
    %109 = tpu.concatenate %107, %106, %108 in 1 : vector<16x128xf32>, vector<16x128xf32>, vector<16x128xf32> -> vector<16x384xf32>
    %c704 = arith.constant 704 : index
    %c0_49 = arith.constant 0 : index
    %110 = vector.load %arg4[%c704, %c0_49] : memref<1824x128xbf16, #tpu.memory_space<vmem>>, vector<384x128xbf16>
    %111 = arith.truncf %109 : vector<16x384xf32> to vector<16x384xbf16>
    %cst_50 = arith.constant dense<0.000000e+00> : vector<16x128xf32>
    %112 = tpu.matmul %111, %110, %cst_50 {dimension_numbers = #tpu.dot_dimension_numbers<[1], [0], [0], [1], [0, 0, 1, 1], [], []>} : vector<16x384xbf16>, vector<384x128xbf16>, vector<16x128xf32> -> vector<16x128xf32>
    %c8 = arith.constant 8 : index
    %c0_51 = arith.constant 0 : index
    %113 = vector.load %arg5[%c8, %c0_51] : memref<19x128xf32, #tpu.memory_space<vmem>>, vector<1x128xf32>
    %114 = vector.broadcast %113 : vector<1x128xf32> to vector<16x128xf32>
    %115 = arith.addf %112, %114 : vector<16x128xf32>
    %116 = math.exp %115 : vector<16x128xf32>
    %cst_52 = arith.constant 1.000000e+00 : f32
    %117 = vector.broadcast %cst_52 : f32 to vector<16x128xf32>
    %118 = arith.subf %116, %117 : vector<16x128xf32>
    %cst_53 = arith.constant 0.000000e+00 : f32
    %119 = vector.broadcast %cst_53 : f32 to vector<16x128xf32>
    %120 = arith.cmpf ogt, %115, %119 : vector<16x128xf32>
    %121 = arith.select %120, %115, %118 : vector<16x128xi1>, vector<16x128xf32>
    %c1088 = arith.constant 1088 : index
    %c0_54 = arith.constant 0 : index
    %122 = vector.load %arg4[%c1088, %c0_54] : memref<1824x128xbf16, #tpu.memory_space<vmem>>, vector<64x128xbf16>
    %123 = arith.truncf %91 : vector<16x64xf32> to vector<16x64xbf16>
    %cst_55 = arith.constant dense<0.000000e+00> : vector<16x128xf32>
    %124 = tpu.matmul %123, %122, %cst_55 {dimension_numbers = #tpu.dot_dimension_numbers<[1], [0], [0], [1], [0, 0, 1, 1], [], []>} : vector<16x64xbf16>, vector<64x128xbf16>, vector<16x128xf32> -> vector<16x128xf32>
    %125 = arith.addf %121, %124 : vector<16x128xf32>
    %c9 = arith.constant 9 : index
    %c0_56 = arith.constant 0 : index
    %126 = vector.load %arg5[%c9, %c0_56] : memref<19x128xf32, #tpu.memory_space<vmem>>, vector<1x128xf32>
    %127 = vector.broadcast %126 : vector<1x128xf32> to vector<16x128xf32>
    %128 = arith.addf %125, %127 : vector<16x128xf32>
    %c12_i32_57 = arith.constant 12 : i32
    %129 = tpu.dynamic_rotate %128 by %c12_i32_57 dim 0 : vector<16x128xf32>, i32 -> vector<16x128xf32>
    %130 = arith.maximumf %128, %129 : vector<16x128xf32>
    %131 = vector.extract_strided_slice %130 {offsets = [0, 0], sizes = [1, 64], strides = [1, 1]} : vector<16x128xf32> to vector<1x64xf32>
    %132 = vector.extract_strided_slice %130 {offsets = [8, 0], sizes = [1, 64], strides = [1, 1]} : vector<16x128xf32> to vector<1x64xf32>
    %133 = tpu.concatenate %131, %132 in 1 : vector<1x64xf32>, vector<1x64xf32> -> vector<1x128xf32>
    %134 = vector.extract_strided_slice %130 {offsets = [0, 64], sizes = [1, 64], strides = [1, 1]} : vector<16x128xf32> to vector<1x64xf32>
    %135 = vector.extract_strided_slice %130 {offsets = [8, 64], sizes = [1, 64], strides = [1, 1]} : vector<16x128xf32> to vector<1x64xf32>
    %136 = tpu.concatenate %134, %135 in 1 : vector<1x64xf32>, vector<1x64xf32> -> vector<1x128xf32>
    %137 = tpu.concatenate %133, %136 in 0 : vector<1x128xf32>, vector<1x128xf32> -> vector<2x128xf32>
    %c1152 = arith.constant 1152 : index
    %c0_58 = arith.constant 0 : index
    %138 = vector.load %arg4[%c1152, %c0_58] : memref<1824x128xbf16, #tpu.memory_space<vmem>>, vector<128x16xbf16>
    %139 = arith.truncf %137 : vector<2x128xf32> to vector<2x128xbf16>
    %cst_59 = arith.constant dense<0.000000e+00> : vector<2x16xf32>
    %140 = tpu.matmul %139, %138, %cst_59 {dimension_numbers = #tpu.dot_dimension_numbers<[1], [0], [0], [1], [0, 0, 1, 1], [], []>} : vector<2x128xbf16>, vector<128x16xbf16>, vector<2x16xf32> -> vector<2x16xf32>
    %c10 = arith.constant 10 : index
    %c0_60 = arith.constant 0 : index
    %141 = vector.load %arg5[%c10, %c0_60] : memref<19x128xf32, #tpu.memory_space<vmem>>, vector<1x16xf32>
    %142 = vector.broadcast %141 : vector<1x16xf32> to vector<2x16xf32>
    %143 = arith.addf %140, %142 : vector<2x16xf32>
    %c0_61 = arith.constant 0 : index
    %c0_62 = arith.constant 0 : index
    %144 = vector.load %arg2[%c0_61, %c0_62] : memref<2x20xf32, #tpu.memory_space<vmem>>, vector<2x20xf32>
    %c1280 = arith.constant 1280 : index
    %c0_63 = arith.constant 0 : index
    %145 = vector.load %arg4[%c1280, %c0_63] : memref<1824x128xbf16, #tpu.memory_space<vmem>>, vector<20x32xbf16>
    %146 = arith.truncf %144 : vector<2x20xf32> to vector<2x20xbf16>
    %cst_64 = arith.constant dense<0.000000e+00> : vector<2x32xf32>
    %147 = tpu.matmul %146, %145, %cst_64 {dimension_numbers = #tpu.dot_dimension_numbers<[1], [0], [0], [1], [0, 0, 1, 1], [], []>} : vector<2x20xbf16>, vector<20x32xbf16>, vector<2x32xf32> -> vector<2x32xf32>
    %c11 = arith.constant 11 : index
    %c0_65 = arith.constant 0 : index
    %148 = vector.load %arg5[%c11, %c0_65] : memref<19x128xf32, #tpu.memory_space<vmem>>, vector<1x32xf32>
    %149 = vector.broadcast %148 : vector<1x32xf32> to vector<2x32xf32>
    %150 = arith.addf %147, %149 : vector<2x32xf32>
    %c1312 = arith.constant 1312 : index
    %c0_66 = arith.constant 0 : index
    %151 = vector.load %arg4[%c1312, %c0_66] : memref<1824x128xbf16, #tpu.memory_space<vmem>>, vector<32x64xbf16>
    %152 = arith.truncf %150 : vector<2x32xf32> to vector<2x32xbf16>
    %cst_67 = arith.constant dense<0.000000e+00> : vector<2x64xf32>
    %153 = tpu.matmul %152, %151, %cst_67 {dimension_numbers = #tpu.dot_dimension_numbers<[1], [0], [0], [1], [0, 0, 1, 1], [], []>} : vector<2x32xbf16>, vector<32x64xbf16>, vector<2x64xf32> -> vector<2x64xf32>
    %c12 = arith.constant 12 : index
    %c0_68 = arith.constant 0 : index
    %154 = vector.load %arg5[%c12, %c0_68] : memref<19x128xf32, #tpu.memory_space<vmem>>, vector<1x64xf32>
    %155 = vector.broadcast %154 : vector<1x64xf32> to vector<2x64xf32>
    %156 = arith.addf %153, %155 : vector<2x64xf32>
    %157 = math.exp %156 : vector<2x64xf32>
    %cst_69 = arith.constant 1.000000e+00 : f32
    %158 = vector.broadcast %cst_69 : f32 to vector<2x64xf32>
    %159 = arith.subf %157, %158 : vector<2x64xf32>
    %cst_70 = arith.constant 0.000000e+00 : f32
    %160 = vector.broadcast %cst_70 : f32 to vector<2x64xf32>
    %161 = arith.cmpf ogt, %156, %160 : vector<2x64xf32>
    %162 = arith.select %161, %156, %159 : vector<2x64xi1>, vector<2x64xf32>
    %c1344 = arith.constant 1344 : index
    %c0_71 = arith.constant 0 : index
    %163 = vector.load %arg4[%c1344, %c0_71] : memref<1824x128xbf16, #tpu.memory_space<vmem>>, vector<64x64xbf16>
    %164 = arith.truncf %162 : vector<2x64xf32> to vector<2x64xbf16>
    %cst_72 = arith.constant dense<0.000000e+00> : vector<2x64xf32>
    %165 = tpu.matmul %164, %163, %cst_72 {dimension_numbers = #tpu.dot_dimension_numbers<[1], [0], [0], [1], [0, 0, 1, 1], [], []>} : vector<2x64xbf16>, vector<64x64xbf16>, vector<2x64xf32> -> vector<2x64xf32>
    %c13 = arith.constant 13 : index
    %c0_73 = arith.constant 0 : index
    %166 = vector.load %arg5[%c13, %c0_73] : memref<19x128xf32, #tpu.memory_space<vmem>>, vector<1x64xf32>
    %167 = vector.broadcast %166 : vector<1x64xf32> to vector<2x64xf32>
    %168 = arith.addf %165, %167 : vector<2x64xf32>
    %169 = math.exp %168 : vector<2x64xf32>
    %cst_74 = arith.constant 1.000000e+00 : f32
    %170 = vector.broadcast %cst_74 : f32 to vector<2x64xf32>
    %171 = arith.subf %169, %170 : vector<2x64xf32>
    %cst_75 = arith.constant 0.000000e+00 : f32
    %172 = vector.broadcast %cst_75 : f32 to vector<2x64xf32>
    %173 = arith.cmpf ogt, %168, %172 : vector<2x64xf32>
    %174 = arith.select %173, %168, %171 : vector<2x64xi1>, vector<2x64xf32>
    %c1408 = arith.constant 1408 : index
    %c0_76 = arith.constant 0 : index
    %175 = vector.load %arg4[%c1408, %c0_76] : memref<1824x128xbf16, #tpu.memory_space<vmem>>, vector<32x64xbf16>
    %176 = arith.truncf %150 : vector<2x32xf32> to vector<2x32xbf16>
    %cst_77 = arith.constant dense<0.000000e+00> : vector<2x64xf32>
    %177 = tpu.matmul %176, %175, %cst_77 {dimension_numbers = #tpu.dot_dimension_numbers<[1], [0], [0], [1], [0, 0, 1, 1], [], []>} : vector<2x32xbf16>, vector<32x64xbf16>, vector<2x64xf32> -> vector<2x64xf32>
    %178 = arith.addf %174, %177 : vector<2x64xf32>
    %c14 = arith.constant 14 : index
    %c0_78 = arith.constant 0 : index
    %179 = vector.load %arg5[%c14, %c0_78] : memref<19x128xf32, #tpu.memory_space<vmem>>, vector<1x64xf32>
    %180 = vector.broadcast %179 : vector<1x64xf32> to vector<2x64xf32>
    %181 = arith.addf %178, %180 : vector<2x64xf32>
    %c1440 = arith.constant 1440 : index
    %c0_79 = arith.constant 0 : index
    %182 = vector.load %arg4[%c1440, %c0_79] : memref<1824x128xbf16, #tpu.memory_space<vmem>>, vector<64x128xbf16>
    %183 = arith.truncf %181 : vector<2x64xf32> to vector<2x64xbf16>
    %cst_80 = arith.constant dense<0.000000e+00> : vector<2x128xf32>
    %184 = tpu.matmul %183, %182, %cst_80 {dimension_numbers = #tpu.dot_dimension_numbers<[1], [0], [0], [1], [0, 0, 1, 1], [], []>} : vector<2x64xbf16>, vector<64x128xbf16>, vector<2x128xf32> -> vector<2x128xf32>
    %c15 = arith.constant 15 : index
    %c0_81 = arith.constant 0 : index
    %185 = vector.load %arg5[%c15, %c0_81] : memref<19x128xf32, #tpu.memory_space<vmem>>, vector<1x128xf32>
    %186 = vector.broadcast %185 : vector<1x128xf32> to vector<2x128xf32>
    %187 = arith.addf %184, %186 : vector<2x128xf32>
    %188 = math.exp %187 : vector<2x128xf32>
    %cst_82 = arith.constant 1.000000e+00 : f32
    %189 = vector.broadcast %cst_82 : f32 to vector<2x128xf32>
    %190 = arith.subf %188, %189 : vector<2x128xf32>
    %cst_83 = arith.constant 0.000000e+00 : f32
    %191 = vector.broadcast %cst_83 : f32 to vector<2x128xf32>
    %192 = arith.cmpf ogt, %187, %191 : vector<2x128xf32>
    %193 = arith.select %192, %187, %190 : vector<2x128xi1>, vector<2x128xf32>
    %c1504 = arith.constant 1504 : index
    %c0_84 = arith.constant 0 : index
    %194 = vector.load %arg4[%c1504, %c0_84] : memref<1824x128xbf16, #tpu.memory_space<vmem>>, vector<128x128xbf16>
    %195 = arith.truncf %193 : vector<2x128xf32> to vector<2x128xbf16>
    %cst_85 = arith.constant dense<0.000000e+00> : vector<2x128xf32>
    %196 = tpu.matmul %195, %194, %cst_85 {dimension_numbers = #tpu.dot_dimension_numbers<[1], [0], [0], [1], [0, 0, 1, 1], [], []>} : vector<2x128xbf16>, vector<128x128xbf16>, vector<2x128xf32> -> vector<2x128xf32>
    %c16 = arith.constant 16 : index
    %c0_86 = arith.constant 0 : index
    %197 = vector.load %arg5[%c16, %c0_86] : memref<19x128xf32, #tpu.memory_space<vmem>>, vector<1x128xf32>
    %198 = vector.broadcast %197 : vector<1x128xf32> to vector<2x128xf32>
    %199 = arith.addf %196, %198 : vector<2x128xf32>
    %200 = math.exp %199 : vector<2x128xf32>
    %cst_87 = arith.constant 1.000000e+00 : f32
    %201 = vector.broadcast %cst_87 : f32 to vector<2x128xf32>
    %202 = arith.subf %200, %201 : vector<2x128xf32>
    %cst_88 = arith.constant 0.000000e+00 : f32
    %203 = vector.broadcast %cst_88 : f32 to vector<2x128xf32>
    %204 = arith.cmpf ogt, %199, %203 : vector<2x128xf32>
    %205 = arith.select %204, %199, %202 : vector<2x128xi1>, vector<2x128xf32>
    %c1632 = arith.constant 1632 : index
    %c0_89 = arith.constant 0 : index
    %206 = vector.load %arg4[%c1632, %c0_89] : memref<1824x128xbf16, #tpu.memory_space<vmem>>, vector<64x128xbf16>
    %207 = arith.truncf %181 : vector<2x64xf32> to vector<2x64xbf16>
    %cst_90 = arith.constant dense<0.000000e+00> : vector<2x128xf32>
    %208 = tpu.matmul %207, %206, %cst_90 {dimension_numbers = #tpu.dot_dimension_numbers<[1], [0], [0], [1], [0, 0, 1, 1], [], []>} : vector<2x64xbf16>, vector<64x128xbf16>, vector<2x128xf32> -> vector<2x128xf32>
    %209 = arith.addf %205, %208 : vector<2x128xf32>
    %c17 = arith.constant 17 : index
    %c0_91 = arith.constant 0 : index
    %210 = vector.load %arg5[%c17, %c0_91] : memref<19x128xf32, #tpu.memory_space<vmem>>, vector<1x128xf32>
    %211 = vector.broadcast %210 : vector<1x128xf32> to vector<2x128xf32>
    %212 = arith.addf %209, %211 : vector<2x128xf32>
    %c1696 = arith.constant 1696 : index
    %c0_92 = arith.constant 0 : index
    %213 = vector.load %arg4[%c1696, %c0_92] : memref<1824x128xbf16, #tpu.memory_space<vmem>>, vector<128x16xbf16>
    %214 = arith.truncf %212 : vector<2x128xf32> to vector<2x128xbf16>
    %cst_93 = arith.constant dense<0.000000e+00> : vector<2x16xf32>
    %215 = tpu.matmul %214, %213, %cst_93 {dimension_numbers = #tpu.dot_dimension_numbers<[1], [0], [0], [1], [0, 0, 1, 1], [], []>} : vector<2x128xbf16>, vector<128x16xbf16>, vector<2x16xf32> -> vector<2x16xf32>
    %c18 = arith.constant 18 : index
    %c0_94 = arith.constant 0 : index
    %216 = vector.load %arg5[%c18, %c0_94] : memref<19x128xf32, #tpu.memory_space<vmem>>, vector<1x16xf32>
    %217 = vector.broadcast %216 : vector<1x16xf32> to vector<2x16xf32>
    %218 = arith.addf %215, %217 : vector<2x16xf32>
    %219 = math.exp %218 : vector<2x16xf32>
    %cst_95 = arith.constant 1.000000e+00 : f32
    %220 = vector.broadcast %cst_95 : f32 to vector<2x16xf32>
    %221 = arith.subf %219, %220 : vector<2x16xf32>
    %cst_96 = arith.constant 0.000000e+00 : f32
    %222 = vector.broadcast %cst_96 : f32 to vector<2x16xf32>
    %223 = arith.cmpf ogt, %218, %222 : vector<2x16xf32>
    %224 = arith.select %223, %218, %221 : vector<2x16xi1>, vector<2x16xf32>
    %225 = arith.addf %143, %224 : vector<2x16xf32>
    %c0_97 = arith.constant 0 : index
    %c0_98 = arith.constant 0 : index
    %226 = vector.load %arg6[%c0_97, %c0_98] : memref<2x16xf32, #tpu.memory_space<vmem>>, vector<2x16xf32>
    tpu.vector_store %arg6[%c0_97, %c0_98], %225 {strides = array<i32>} : memref<2x16xf32, #tpu.memory_space<vmem>>, vector<2x16xf32>,
    return
  }
  func.func @transform_0(%arg0: i32) -> (i32, i32) {
    %c0_i32 = arith.constant 0 : i32
    %c0_i32_0 = arith.constant 0 : i32
    %c0_i32_1 = arith.constant 0 : i32
    return %c0_i32, %c0_i32_0 : i32, i32
  }
  func.func @transform_1(%arg0: i32) -> (i32, i32) {
    %c0_i32 = arith.constant 0 : i32
    %c0_i32_0 = arith.constant 0 : i32
    %c0_i32_1 = arith.constant 0 : i32
    return %c0_i32, %c0_i32_0 : i32, i32
  }
  func.func @transform_2(%arg0: i32) -> (i32, i32) {
    %c0_i32 = arith.constant 0 : i32
    %c0_i32_0 = arith.constant 0 : i32
    %c0_i32_1 = arith.constant 0 : i32
    return %c0_i32, %c0_i32_0 : i32, i32
  }
  func.func @transform_3(%arg0: i32) -> (i32, i32) {
    %c0_i32 = arith.constant 0 : i32
    %c0_i32_0 = arith.constant 0 : i32
    %c0_i32_1 = arith.constant 0 : i32
    return %c0_i32, %c0_i32_0 : i32, i32
  }
  func.func @transform_4(%arg0: i32) -> (i32, i32) {
    %c0_i32 = arith.constant 0 : i32
    %c0_i32_0 = arith.constant 0 : i32
    %c0_i32_1 = arith.constant 0 : i32
    return %c0_i32, %c0_i32_0 : i32, i32
  }
  func.func @transform_5(%arg0: i32) -> (i32, i32) {
    %c0_i32 = arith.constant 0 : i32
    %c0_i32_0 = arith.constant 0 : i32
    %c0_i32_1 = arith.constant 0 : i32
    return %c0_i32, %c0_i32_0 : i32, i32
  }
}

module attributes {stable_mosaic.version = 11 : i64} {
  func.func @kernel(%arg0: i32, %arg1: memref<16x8xf32, #tpu.memory_space<vmem>>, %arg2: memref<2x20xf32, #tpu.memory_space<vmem>>, %arg3: memref<8x8xf32, #tpu.memory_space<vmem>>, %arg4: memref<1824x128xbf16, #tpu.memory_space<vmem>>, %arg5: memref<19x128xf32, #tpu.memory_space<vmem>>, %arg6: memref<2x16xf32, #tpu.memory_space<vmem>>) attributes {dimension_semantics = [#tpu.dimension_semantics<arbitrary>], iteration_bounds = array<i64: 1>, scalar_prefetch = 0 : i64, scratch_operands = 0 : i64, tpu.core_type = #tpu.core_type<tc>, window_params = [{pipeline_mode = #tpu.pipeline_mode<synchronous>, transform_indices = @transform_0, window_bounds = array<i64: 16, 8>}, {pipeline_mode = #tpu.pipeline_mode<synchronous>, transform_indices = @transform_1, window_bounds = array<i64: 2, 20>}, {pipeline_mode = #tpu.pipeline_mode<synchronous>, transform_indices = @transform_2, window_bounds = array<i64: 8, 8>}, {pipeline_mode = #tpu.pipeline_mode<synchronous>, transform_indices = @transform_3, window_bounds = array<i64: 1824, 128>}, {pipeline_mode = #tpu.pipeline_mode<synchronous>, transform_indices = @transform_4, window_bounds = array<i64: 19, 128>}, {pipeline_mode = #tpu.pipeline_mode<synchronous>, transform_indices = @transform_5, window_bounds = array<i64: 2, 16>}]} {
    %c0 = arith.constant 0 : index
    %c0_0 = arith.constant 0 : index
    %0 = vector.load %arg1[%c0, %c0_0] : memref<16x8xf32, #tpu.memory_space<vmem>>, vector<16x8xf32>
    %c0_1 = arith.constant 0 : index
    %c0_2 = arith.constant 0 : index
    %1 = vector.load %arg3[%c0_1, %c0_2] : memref<8x8xf32, #tpu.memory_space<vmem>>, vector<8x8xf32>
    %2 = arith.truncf %1 : vector<8x8xf32> to vector<8x8xbf16>
    %3 = arith.truncf %0 : vector<16x8xf32> to vector<16x8xbf16>
    %cst = arith.constant dense<0.000000e+00> : vector<16x8xf32>
    %4 = tpu.matmul %3, %2, %cst {dimension_numbers = #tpu.dot_dimension_numbers<[1], [0], [0], [1], [0, 0, 1, 1], [], []>} : vector<16x8xbf16>, vector<8x8xbf16>, vector<16x8xf32> -> vector<16x8xf32>
    %5 = vector.extract_strided_slice %4 {offsets = [15, 0], sizes = [1, 8], strides = [1, 1]} : vector<16x8xf32> to vector<1x8xf32>
    %6 = vector.extract_strided_slice %4 {offsets = [0, 0], sizes = [15, 8], strides = [1, 1]} : vector<16x8xf32> to vector<15x8xf32>
    %7 = tpu.concatenate %5, %6 in 0 : vector<1x8xf32>, vector<15x8xf32> -> vector<16x8xf32>
    %8 = vector.extract_strided_slice %4 {offsets = [1, 0], sizes = [15, 8], strides = [1, 1]} : vector<16x8xf32> to vector<15x8xf32>
    %9 = vector.extract_strided_slice %4 {offsets = [0, 0], sizes = [1, 8], strides = [1, 1]} : vector<16x8xf32> to vector<1x8xf32>
    %10 = tpu.concatenate %8, %9 in 0 : vector<15x8xf32>, vector<1x8xf32> -> vector<16x8xf32>
    %11 = tpu.concatenate %7, %4, %10 in 1 : vector<16x8xf32>, vector<16x8xf32>, vector<16x8xf32> -> vector<16x24xf32>
    %c0_3 = arith.constant 0 : index
    %c0_4 = arith.constant 0 : index
    %12 = vector.load %arg4[%c0_3, %c0_4] : memref<1824x128xbf16, #tpu.memory_space<vmem>>, vector<24x16xbf16>
    %13 = arith.truncf %11 : vector<16x24xf32> to vector<16x24xbf16>
    %cst_5 = arith.constant dense<0.000000e+00> : vector<16x16xf32>
    %14 = tpu.matmul %13, %12, %cst_5 {dimension_numbers = #tpu.dot_dimension_numbers<[1], [0], [0], [1], [0, 0, 1, 1], [], []>} : vector<16x24xbf16>, vector<24x16xbf16>, vector<16x16xf32> -> vector<16x16xf32>
    %c0_6 = arith.constant 0 : index
    %c0_7 = arith.constant 0 : index
    %15 = vector.load %arg5[%c0_6, %c0_7] : memref<19x128xf32, #tpu.memory_space<vmem>>, vector<1x16xf32>
    %16 = vector.broadcast %15 : vector<1x16xf32> to vector<16x16xf32>
    %17 = arith.addf %14, %16 : vector<16x16xf32>
    %18 = vector.extract_strided_slice %17 {offsets = [15, 0], sizes = [1, 16], strides = [1, 1]} : vector<16x16xf32> to vector<1x16xf32>
    %19 = vector.extract_strided_slice %17 {offsets = [0, 0], sizes = [15, 16], strides = [1, 1]} : vector<16x16xf32> to vector<15x16xf32>
    %20 = tpu.concatenate %18, %19 in 0 : vector<1x16xf32>, vector<15x16xf32> -> vector<16x16xf32>
    %21 = vector.extract_strided_slice %17 {offsets = [1, 0], sizes = [15, 16], strides = [1, 1]} : vector<16x16xf32> to vector<15x16xf32>
    %22 = vector.extract_strided_slice %17 {offsets = [0, 0], sizes = [1, 16], strides = [1, 1]} : vector<16x16xf32> to vector<1x16xf32>
    %23 = tpu.concatenate %21, %22 in 0 : vector<15x16xf32>, vector<1x16xf32> -> vector<16x16xf32>
    %24 = tpu.concatenate %20, %17, %23 in 1 : vector<16x16xf32>, vector<16x16xf32>, vector<16x16xf32> -> vector<16x48xf32>
    %c32 = arith.constant 32 : index
    %c0_8 = arith.constant 0 : index
    %25 = vector.load %arg4[%c32, %c0_8] : memref<1824x128xbf16, #tpu.memory_space<vmem>>, vector<48x32xbf16>
    %26 = arith.truncf %24 : vector<16x48xf32> to vector<16x48xbf16>
    %cst_9 = arith.constant dense<0.000000e+00> : vector<16x32xf32>
    %27 = tpu.matmul %26, %25, %cst_9 {dimension_numbers = #tpu.dot_dimension_numbers<[1], [0], [0], [1], [0, 0, 1, 1], [], []>} : vector<16x48xbf16>, vector<48x32xbf16>, vector<16x32xf32> -> vector<16x32xf32>
    %c1 = arith.constant 1 : index
    %c0_10 = arith.constant 0 : index
    %28 = vector.load %arg5[%c1, %c0_10] : memref<19x128xf32, #tpu.memory_space<vmem>>, vector<1x32xf32>
    %29 = vector.broadcast %28 : vector<1x32xf32> to vector<16x32xf32>
    %30 = arith.addf %27, %29 : vector<16x32xf32>
    %31 = math.exp %30 : vector<16x32xf32>
    %cst_11 = arith.constant 1.000000e+00 : f32
    %32 = vector.broadcast %cst_11 : f32 to vector<16x32xf32>
    %33 = arith.subf %31, %32 : vector<16x32xf32>
    %cst_12 = arith.constant 0.000000e+00 : f32
    %34 = vector.broadcast %cst_12 : f32 to vector<16x32xf32>
    %35 = arith.cmpf ogt, %30, %34 : vector<16x32xf32>
    %36 = arith.select %35, %30, %33 : vector<16x32xi1>, vector<16x32xf32>
    %37 = vector.extract_strided_slice %36 {offsets = [15, 0], sizes = [1, 32], strides = [1, 1]} : vector<16x32xf32> to vector<1x32xf32>
    %38 = vector.extract_strided_slice %36 {offsets = [0, 0], sizes = [15, 32], strides = [1, 1]} : vector<16x32xf32> to vector<15x32xf32>
    %39 = tpu.concatenate %37, %38 in 0 : vector<1x32xf32>, vector<15x32xf32> -> vector<16x32xf32>
    %40 = vector.extract_strided_slice %36 {offsets = [1, 0], sizes = [15, 32], strides = [1, 1]} : vector<16x32xf32> to vector<15x32xf32>
    %41 = vector.extract_strided_slice %36 {offsets = [0, 0], sizes = [1, 32], strides = [1, 1]} : vector<16x32xf32> to vector<1x32xf32>
    %42 = tpu.concatenate %40, %41 in 0 : vector<15x32xf32>, vector<1x32xf32> -> vector<16x32xf32>
    %43 = tpu.concatenate %39, %36, %42 in 1 : vector<16x32xf32>, vector<16x32xf32>, vector<16x32xf32> -> vector<16x96xf32>
    %c80 = arith.constant 80 : index
    %c0_13 = arith.constant 0 : index
    %44 = vector.load %arg4[%c80, %c0_13] : memref<1824x128xbf16, #tpu.memory_space<vmem>>, vector<96x32xbf16>
    %45 = arith.truncf %43 : vector<16x96xf32> to vector<16x96xbf16>
    %cst_14 = arith.constant dense<0.000000e+00> : vector<16x32xf32>
    %46 = tpu.matmul %45, %44, %cst_14 {dimension_numbers = #tpu.dot_dimension_numbers<[1], [0], [0], [1], [0, 0, 1, 1], [], []>} : vector<16x96xbf16>, vector<96x32xbf16>, vector<16x32xf32> -> vector<16x32xf32>
    %c2 = arith.constant 2 : index
    %c0_15 = arith.constant 0 : index
    %47 = vector.load %arg5[%c2, %c0_15] : memref<19x128xf32, #tpu.memory_space<vmem>>, vector<1x32xf32>
    %48 = vector.broadcast %47 : vector<1x32xf32> to vector<16x32xf32>
    %49 = arith.addf %46, %48 : vector<16x32xf32>
    %50 = math.exp %49 : vector<16x32xf32>
    %cst_16 = arith.constant 1.000000e+00 : f32
    %51 = vector.broadcast %cst_16 : f32 to vector<16x32xf32>
    %52 = arith.subf %50, %51 : vector<16x32xf32>
    %cst_17 = arith.constant 0.000000e+00 : f32
    %53 = vector.broadcast %cst_17 : f32 to vector<16x32xf32>
    %54 = arith.cmpf ogt, %49, %53 : vector<16x32xf32>
    %55 = arith.select %54, %49, %52 : vector<16x32xi1>, vector<16x32xf32>
    %c176 = arith.constant 176 : index
    %c0_18 = arith.constant 0 : index
    %56 = vector.load %arg4[%c176, %c0_18] : memref<1824x128xbf16, #tpu.memory_space<vmem>>, vector<16x32xbf16>
    %57 = arith.truncf %17 : vector<16x16xf32> to vector<16x16xbf16>
    %cst_19 = arith.constant dense<0.000000e+00> : vector<16x32xf32>
    %58 = tpu.matmul %57, %56, %cst_19 {dimension_numbers = #tpu.dot_dimension_numbers<[1], [0], [0], [1], [0, 0, 1, 1], [], []>} : vector<16x16xbf16>, vector<16x32xbf16>, vector<16x32xf32> -> vector<16x32xf32>
    %59 = arith.addf %55, %58 : vector<16x32xf32>
    %c3 = arith.constant 3 : index
    %c0_20 = arith.constant 0 : index
    %60 = vector.load %arg5[%c3, %c0_20] : memref<19x128xf32, #tpu.memory_space<vmem>>, vector<1x32xf32>
    %61 = vector.broadcast %60 : vector<1x32xf32> to vector<16x32xf32>
    %62 = arith.addf %59, %61 : vector<16x32xf32>
    %63 = vector.extract_strided_slice %62 {offsets = [1, 0], sizes = [15, 32], strides = [1, 1]} : vector<16x32xf32> to vector<15x32xf32>
    %64 = vector.extract_strided_slice %62 {offsets = [0, 0], sizes = [1, 32], strides = [1, 1]} : vector<16x32xf32> to vector<1x32xf32>
    %65 = tpu.concatenate %63, %64 in 0 : vector<15x32xf32>, vector<1x32xf32> -> vector<16x32xf32>
    %66 = arith.maximumf %62, %65 : vector<16x32xf32>
    %67 = vector.extract_strided_slice %66 {offsets = [14, 0], sizes = [2, 32], strides = [1, 1]} : vector<16x32xf32> to vector<2x32xf32>
    %68 = vector.extract_strided_slice %66 {offsets = [0, 0], sizes = [14, 32], strides = [1, 1]} : vector<16x32xf32> to vector<14x32xf32>
    %69 = tpu.concatenate %67, %68 in 0 : vector<2x32xf32>, vector<14x32xf32> -> vector<16x32xf32>
    %70 = vector.extract_strided_slice %66 {offsets = [2, 0], sizes = [14, 32], strides = [1, 1]} : vector<16x32xf32> to vector<14x32xf32>
    %71 = vector.extract_strided_slice %66 {offsets = [0, 0], sizes = [2, 32], strides = [1, 1]} : vector<16x32xf32> to vector<2x32xf32>
    %72 = tpu.concatenate %70, %71 in 0 : vector<14x32xf32>, vector<2x32xf32> -> vector<16x32xf32>
    %73 = tpu.concatenate %69, %66, %72 in 1 : vector<16x32xf32>, vector<16x32xf32>, vector<16x32xf32> -> vector<16x96xf32>
    %c192 = arith.constant 192 : index
    %c0_21 = arith.constant 0 : index
    %74 = vector.load %arg4[%c192, %c0_21] : memref<1824x128xbf16, #tpu.memory_space<vmem>>, vector<96x64xbf16>
    %75 = arith.truncf %73 : vector<16x96xf32> to vector<16x96xbf16>
    %cst_22 = arith.constant dense<0.000000e+00> : vector<16x64xf32>
    %76 = tpu.matmul %75, %74, %cst_22 {dimension_numbers = #tpu.dot_dimension_numbers<[1], [0], [0], [1], [0, 0, 1, 1], [], []>} : vector<16x96xbf16>, vector<96x64xbf16>, vector<16x64xf32> -> vector<16x64xf32>
    %c4 = arith.constant 4 : index
    %c0_23 = arith.constant 0 : index
    %77 = vector.load %arg5[%c4, %c0_23] : memref<19x128xf32, #tpu.memory_space<vmem>>, vector<1x64xf32>
    %78 = vector.broadcast %77 : vector<1x64xf32> to vector<16x64xf32>
    %79 = arith.addf %76, %78 : vector<16x64xf32>
    %80 = math.exp %79 : vector<16x64xf32>
    %cst_24 = arith.constant 1.000000e+00 : f32
    %81 = vector.broadcast %cst_24 : f32 to vector<16x64xf32>
    %82 = arith.subf %80, %81 : vector<16x64xf32>
    %cst_25 = arith.constant 0.000000e+00 : f32
    %83 = vector.broadcast %cst_25 : f32 to vector<16x64xf32>
    %84 = arith.cmpf ogt, %79, %83 : vector<16x64xf32>
    %85 = arith.select %84, %79, %82 : vector<16x64xi1>, vector<16x64xf32>
    %86 = vector.extract_strided_slice %85 {offsets = [14, 0], sizes = [2, 64], strides = [1, 1]} : vector<16x64xf32> to vector<2x64xf32>
    %87 = vector.extract_strided_slice %85 {offsets = [0, 0], sizes = [14, 64], strides = [1, 1]} : vector<16x64xf32> to vector<14x64xf32>
    %88 = tpu.concatenate %86, %87 in 0 : vector<2x64xf32>, vector<14x64xf32> -> vector<16x64xf32>
    %89 = vector.extract_strided_slice %85 {offsets = [2, 0], sizes = [14, 64], strides = [1, 1]} : vector<16x64xf32> to vector<14x64xf32>
    %90 = vector.extract_strided_slice %85 {offsets = [0, 0], sizes = [2, 64], strides = [1, 1]} : vector<16x64xf32> to vector<2x64xf32>
    %91 = tpu.concatenate %89, %90 in 0 : vector<14x64xf32>, vector<2x64xf32> -> vector<16x64xf32>
    %92 = tpu.concatenate %88, %85, %91 in 1 : vector<16x64xf32>, vector<16x64xf32>, vector<16x64xf32> -> vector<16x192xf32>
    %c288 = arith.constant 288 : index
    %c0_26 = arith.constant 0 : index
    %93 = vector.load %arg4[%c288, %c0_26] : memref<1824x128xbf16, #tpu.memory_space<vmem>>, vector<192x64xbf16>
    %94 = arith.truncf %92 : vector<16x192xf32> to vector<16x192xbf16>
    %cst_27 = arith.constant dense<0.000000e+00> : vector<16x64xf32>
    %95 = tpu.matmul %94, %93, %cst_27 {dimension_numbers = #tpu.dot_dimension_numbers<[1], [0], [0], [1], [0, 0, 1, 1], [], []>} : vector<16x192xbf16>, vector<192x64xbf16>, vector<16x64xf32> -> vector<16x64xf32>
    %c5 = arith.constant 5 : index
    %c0_28 = arith.constant 0 : index
    %96 = vector.load %arg5[%c5, %c0_28] : memref<19x128xf32, #tpu.memory_space<vmem>>, vector<1x64xf32>
    %97 = vector.broadcast %96 : vector<1x64xf32> to vector<16x64xf32>
    %98 = arith.addf %95, %97 : vector<16x64xf32>
    %99 = math.exp %98 : vector<16x64xf32>
    %cst_29 = arith.constant 1.000000e+00 : f32
    %100 = vector.broadcast %cst_29 : f32 to vector<16x64xf32>
    %101 = arith.subf %99, %100 : vector<16x64xf32>
    %cst_30 = arith.constant 0.000000e+00 : f32
    %102 = vector.broadcast %cst_30 : f32 to vector<16x64xf32>
    %103 = arith.cmpf ogt, %98, %102 : vector<16x64xf32>
    %104 = arith.select %103, %98, %101 : vector<16x64xi1>, vector<16x64xf32>
    %c480 = arith.constant 480 : index
    %c0_31 = arith.constant 0 : index
    %105 = vector.load %arg4[%c480, %c0_31] : memref<1824x128xbf16, #tpu.memory_space<vmem>>, vector<32x64xbf16>
    %106 = arith.truncf %66 : vector<16x32xf32> to vector<16x32xbf16>
    %cst_32 = arith.constant dense<0.000000e+00> : vector<16x64xf32>
    %107 = tpu.matmul %106, %105, %cst_32 {dimension_numbers = #tpu.dot_dimension_numbers<[1], [0], [0], [1], [0, 0, 1, 1], [], []>} : vector<16x32xbf16>, vector<32x64xbf16>, vector<16x64xf32> -> vector<16x64xf32>
    %108 = arith.addf %104, %107 : vector<16x64xf32>
    %c6 = arith.constant 6 : index
    %c0_33 = arith.constant 0 : index
    %109 = vector.load %arg5[%c6, %c0_33] : memref<19x128xf32, #tpu.memory_space<vmem>>, vector<1x64xf32>
    %110 = vector.broadcast %109 : vector<1x64xf32> to vector<16x64xf32>
    %111 = arith.addf %108, %110 : vector<16x64xf32>
    %112 = vector.extract_strided_slice %111 {offsets = [2, 0], sizes = [14, 64], strides = [1, 1]} : vector<16x64xf32> to vector<14x64xf32>
    %113 = vector.extract_strided_slice %111 {offsets = [0, 0], sizes = [2, 64], strides = [1, 1]} : vector<16x64xf32> to vector<2x64xf32>
    %114 = tpu.concatenate %112, %113 in 0 : vector<14x64xf32>, vector<2x64xf32> -> vector<16x64xf32>
    %115 = arith.maximumf %111, %114 : vector<16x64xf32>
    %116 = vector.extract_strided_slice %115 {offsets = [12, 0], sizes = [4, 64], strides = [1, 1]} : vector<16x64xf32> to vector<4x64xf32>
    %117 = vector.extract_strided_slice %115 {offsets = [0, 0], sizes = [12, 64], strides = [1, 1]} : vector<16x64xf32> to vector<12x64xf32>
    %118 = tpu.concatenate %116, %117 in 0 : vector<4x64xf32>, vector<12x64xf32> -> vector<16x64xf32>
    %119 = vector.extract_strided_slice %115 {offsets = [4, 0], sizes = [12, 64], strides = [1, 1]} : vector<16x64xf32> to vector<12x64xf32>
    %120 = vector.extract_strided_slice %115 {offsets = [0, 0], sizes = [4, 64], strides = [1, 1]} : vector<16x64xf32> to vector<4x64xf32>
    %121 = tpu.concatenate %119, %120 in 0 : vector<12x64xf32>, vector<4x64xf32> -> vector<16x64xf32>
    %122 = tpu.concatenate %118, %115, %121 in 1 : vector<16x64xf32>, vector<16x64xf32>, vector<16x64xf32> -> vector<16x192xf32>
    %c512 = arith.constant 512 : index
    %c0_34 = arith.constant 0 : index
    %123 = vector.load %arg4[%c512, %c0_34] : memref<1824x128xbf16, #tpu.memory_space<vmem>>, vector<192x128xbf16>
    %124 = arith.truncf %122 : vector<16x192xf32> to vector<16x192xbf16>
    %cst_35 = arith.constant dense<0.000000e+00> : vector<16x128xf32>
    %125 = tpu.matmul %124, %123, %cst_35 {dimension_numbers = #tpu.dot_dimension_numbers<[1], [0], [0], [1], [0, 0, 1, 1], [], []>} : vector<16x192xbf16>, vector<192x128xbf16>, vector<16x128xf32> -> vector<16x128xf32>
    %c7 = arith.constant 7 : index
    %c0_36 = arith.constant 0 : index
    %126 = vector.load %arg5[%c7, %c0_36] : memref<19x128xf32, #tpu.memory_space<vmem>>, vector<1x128xf32>
    %127 = vector.broadcast %126 : vector<1x128xf32> to vector<16x128xf32>
    %128 = arith.addf %125, %127 : vector<16x128xf32>
    %129 = math.exp %128 : vector<16x128xf32>
    %cst_37 = arith.constant 1.000000e+00 : f32
    %130 = vector.broadcast %cst_37 : f32 to vector<16x128xf32>
    %131 = arith.subf %129, %130 : vector<16x128xf32>
    %cst_38 = arith.constant 0.000000e+00 : f32
    %132 = vector.broadcast %cst_38 : f32 to vector<16x128xf32>
    %133 = arith.cmpf ogt, %128, %132 : vector<16x128xf32>
    %134 = arith.select %133, %128, %131 : vector<16x128xi1>, vector<16x128xf32>
    %135 = vector.extract_strided_slice %134 {offsets = [12, 0], sizes = [4, 128], strides = [1, 1]} : vector<16x128xf32> to vector<4x128xf32>
    %136 = vector.extract_strided_slice %134 {offsets = [0, 0], sizes = [12, 128], strides = [1, 1]} : vector<16x128xf32> to vector<12x128xf32>
    %137 = tpu.concatenate %135, %136 in 0 : vector<4x128xf32>, vector<12x128xf32> -> vector<16x128xf32>
    %138 = vector.extract_strided_slice %134 {offsets = [4, 0], sizes = [12, 128], strides = [1, 1]} : vector<16x128xf32> to vector<12x128xf32>
    %139 = vector.extract_strided_slice %134 {offsets = [0, 0], sizes = [4, 128], strides = [1, 1]} : vector<16x128xf32> to vector<4x128xf32>
    %140 = tpu.concatenate %138, %139 in 0 : vector<12x128xf32>, vector<4x128xf32> -> vector<16x128xf32>
    %141 = tpu.concatenate %137, %134, %140 in 1 : vector<16x128xf32>, vector<16x128xf32>, vector<16x128xf32> -> vector<16x384xf32>
    %c704 = arith.constant 704 : index
    %c0_39 = arith.constant 0 : index
    %142 = vector.load %arg4[%c704, %c0_39] : memref<1824x128xbf16, #tpu.memory_space<vmem>>, vector<384x128xbf16>
    %143 = arith.truncf %141 : vector<16x384xf32> to vector<16x384xbf16>
    %cst_40 = arith.constant dense<0.000000e+00> : vector<16x128xf32>
    %144 = tpu.matmul %143, %142, %cst_40 {dimension_numbers = #tpu.dot_dimension_numbers<[1], [0], [0], [1], [0, 0, 1, 1], [], []>} : vector<16x384xbf16>, vector<384x128xbf16>, vector<16x128xf32> -> vector<16x128xf32>
    %c8 = arith.constant 8 : index
    %c0_41 = arith.constant 0 : index
    %145 = vector.load %arg5[%c8, %c0_41] : memref<19x128xf32, #tpu.memory_space<vmem>>, vector<1x128xf32>
    %146 = vector.broadcast %145 : vector<1x128xf32> to vector<16x128xf32>
    %147 = arith.addf %144, %146 : vector<16x128xf32>
    %148 = math.exp %147 : vector<16x128xf32>
    %cst_42 = arith.constant 1.000000e+00 : f32
    %149 = vector.broadcast %cst_42 : f32 to vector<16x128xf32>
    %150 = arith.subf %148, %149 : vector<16x128xf32>
    %cst_43 = arith.constant 0.000000e+00 : f32
    %151 = vector.broadcast %cst_43 : f32 to vector<16x128xf32>
    %152 = arith.cmpf ogt, %147, %151 : vector<16x128xf32>
    %153 = arith.select %152, %147, %150 : vector<16x128xi1>, vector<16x128xf32>
    %c1088 = arith.constant 1088 : index
    %c0_44 = arith.constant 0 : index
    %154 = vector.load %arg4[%c1088, %c0_44] : memref<1824x128xbf16, #tpu.memory_space<vmem>>, vector<64x128xbf16>
    %155 = arith.truncf %115 : vector<16x64xf32> to vector<16x64xbf16>
    %cst_45 = arith.constant dense<0.000000e+00> : vector<16x128xf32>
    %156 = tpu.matmul %155, %154, %cst_45 {dimension_numbers = #tpu.dot_dimension_numbers<[1], [0], [0], [1], [0, 0, 1, 1], [], []>} : vector<16x64xbf16>, vector<64x128xbf16>, vector<16x128xf32> -> vector<16x128xf32>
    %157 = arith.addf %153, %156 : vector<16x128xf32>
    %c9 = arith.constant 9 : index
    %c0_46 = arith.constant 0 : index
    %158 = vector.load %arg5[%c9, %c0_46] : memref<19x128xf32, #tpu.memory_space<vmem>>, vector<1x128xf32>
    %159 = vector.broadcast %158 : vector<1x128xf32> to vector<16x128xf32>
    %160 = arith.addf %157, %159 : vector<16x128xf32>
    %161 = vector.extract_strided_slice %160 {offsets = [4, 0], sizes = [12, 128], strides = [1, 1]} : vector<16x128xf32> to vector<12x128xf32>
    %162 = vector.extract_strided_slice %160 {offsets = [0, 0], sizes = [4, 128], strides = [1, 1]} : vector<16x128xf32> to vector<4x128xf32>
    %163 = tpu.concatenate %161, %162 in 0 : vector<12x128xf32>, vector<4x128xf32> -> vector<16x128xf32>
    %164 = arith.maximumf %160, %163 : vector<16x128xf32>
    %165 = vector.extract_strided_slice %164 {offsets = [0, 0], sizes = [1, 64], strides = [1, 1]} : vector<16x128xf32> to vector<1x64xf32>
    %166 = vector.extract_strided_slice %164 {offsets = [8, 0], sizes = [1, 64], strides = [1, 1]} : vector<16x128xf32> to vector<1x64xf32>
    %167 = tpu.concatenate %165, %166 in 1 : vector<1x64xf32>, vector<1x64xf32> -> vector<1x128xf32>
    %168 = vector.extract_strided_slice %164 {offsets = [0, 64], sizes = [1, 64], strides = [1, 1]} : vector<16x128xf32> to vector<1x64xf32>
    %169 = vector.extract_strided_slice %164 {offsets = [8, 64], sizes = [1, 64], strides = [1, 1]} : vector<16x128xf32> to vector<1x64xf32>
    %170 = tpu.concatenate %168, %169 in 1 : vector<1x64xf32>, vector<1x64xf32> -> vector<1x128xf32>
    %171 = tpu.concatenate %167, %170 in 0 : vector<1x128xf32>, vector<1x128xf32> -> vector<2x128xf32>
    %c1152 = arith.constant 1152 : index
    %c0_47 = arith.constant 0 : index
    %172 = vector.load %arg4[%c1152, %c0_47] : memref<1824x128xbf16, #tpu.memory_space<vmem>>, vector<128x16xbf16>
    %173 = arith.truncf %171 : vector<2x128xf32> to vector<2x128xbf16>
    %cst_48 = arith.constant dense<0.000000e+00> : vector<2x16xf32>
    %174 = tpu.matmul %173, %172, %cst_48 {dimension_numbers = #tpu.dot_dimension_numbers<[1], [0], [0], [1], [0, 0, 1, 1], [], []>} : vector<2x128xbf16>, vector<128x16xbf16>, vector<2x16xf32> -> vector<2x16xf32>
    %c10 = arith.constant 10 : index
    %c0_49 = arith.constant 0 : index
    %175 = vector.load %arg5[%c10, %c0_49] : memref<19x128xf32, #tpu.memory_space<vmem>>, vector<1x16xf32>
    %176 = vector.broadcast %175 : vector<1x16xf32> to vector<2x16xf32>
    %177 = arith.addf %174, %176 : vector<2x16xf32>
    %c0_50 = arith.constant 0 : index
    %c0_51 = arith.constant 0 : index
    %178 = vector.load %arg2[%c0_50, %c0_51] : memref<2x20xf32, #tpu.memory_space<vmem>>, vector<2x20xf32>
    %c1280 = arith.constant 1280 : index
    %c0_52 = arith.constant 0 : index
    %179 = vector.load %arg4[%c1280, %c0_52] : memref<1824x128xbf16, #tpu.memory_space<vmem>>, vector<20x32xbf16>
    %180 = arith.truncf %178 : vector<2x20xf32> to vector<2x20xbf16>
    %cst_53 = arith.constant dense<0.000000e+00> : vector<2x32xf32>
    %181 = tpu.matmul %180, %179, %cst_53 {dimension_numbers = #tpu.dot_dimension_numbers<[1], [0], [0], [1], [0, 0, 1, 1], [], []>} : vector<2x20xbf16>, vector<20x32xbf16>, vector<2x32xf32> -> vector<2x32xf32>
    %c11 = arith.constant 11 : index
    %c0_54 = arith.constant 0 : index
    %182 = vector.load %arg5[%c11, %c0_54] : memref<19x128xf32, #tpu.memory_space<vmem>>, vector<1x32xf32>
    %183 = vector.broadcast %182 : vector<1x32xf32> to vector<2x32xf32>
    %184 = arith.addf %181, %183 : vector<2x32xf32>
    %c1312 = arith.constant 1312 : index
    %c0_55 = arith.constant 0 : index
    %185 = vector.load %arg4[%c1312, %c0_55] : memref<1824x128xbf16, #tpu.memory_space<vmem>>, vector<32x64xbf16>
    %186 = arith.truncf %184 : vector<2x32xf32> to vector<2x32xbf16>
    %cst_56 = arith.constant dense<0.000000e+00> : vector<2x64xf32>
    %187 = tpu.matmul %186, %185, %cst_56 {dimension_numbers = #tpu.dot_dimension_numbers<[1], [0], [0], [1], [0, 0, 1, 1], [], []>} : vector<2x32xbf16>, vector<32x64xbf16>, vector<2x64xf32> -> vector<2x64xf32>
    %c12 = arith.constant 12 : index
    %c0_57 = arith.constant 0 : index
    %188 = vector.load %arg5[%c12, %c0_57] : memref<19x128xf32, #tpu.memory_space<vmem>>, vector<1x64xf32>
    %189 = vector.broadcast %188 : vector<1x64xf32> to vector<2x64xf32>
    %190 = arith.addf %187, %189 : vector<2x64xf32>
    %191 = math.exp %190 : vector<2x64xf32>
    %cst_58 = arith.constant 1.000000e+00 : f32
    %192 = vector.broadcast %cst_58 : f32 to vector<2x64xf32>
    %193 = arith.subf %191, %192 : vector<2x64xf32>
    %cst_59 = arith.constant 0.000000e+00 : f32
    %194 = vector.broadcast %cst_59 : f32 to vector<2x64xf32>
    %195 = arith.cmpf ogt, %190, %194 : vector<2x64xf32>
    %196 = arith.select %195, %190, %193 : vector<2x64xi1>, vector<2x64xf32>
    %c1344 = arith.constant 1344 : index
    %c0_60 = arith.constant 0 : index
    %197 = vector.load %arg4[%c1344, %c0_60] : memref<1824x128xbf16, #tpu.memory_space<vmem>>, vector<64x64xbf16>
    %198 = arith.truncf %196 : vector<2x64xf32> to vector<2x64xbf16>
    %cst_61 = arith.constant dense<0.000000e+00> : vector<2x64xf32>
    %199 = tpu.matmul %198, %197, %cst_61 {dimension_numbers = #tpu.dot_dimension_numbers<[1], [0], [0], [1], [0, 0, 1, 1], [], []>} : vector<2x64xbf16>, vector<64x64xbf16>, vector<2x64xf32> -> vector<2x64xf32>
    %c13 = arith.constant 13 : index
    %c0_62 = arith.constant 0 : index
    %200 = vector.load %arg5[%c13, %c0_62] : memref<19x128xf32, #tpu.memory_space<vmem>>, vector<1x64xf32>
    %201 = vector.broadcast %200 : vector<1x64xf32> to vector<2x64xf32>
    %202 = arith.addf %199, %201 : vector<2x64xf32>
    %203 = math.exp %202 : vector<2x64xf32>
    %cst_63 = arith.constant 1.000000e+00 : f32
    %204 = vector.broadcast %cst_63 : f32 to vector<2x64xf32>
    %205 = arith.subf %203, %204 : vector<2x64xf32>
    %cst_64 = arith.constant 0.000000e+00 : f32
    %206 = vector.broadcast %cst_64 : f32 to vector<2x64xf32>
    %207 = arith.cmpf ogt, %202, %206 : vector<2x64xf32>
    %208 = arith.select %207, %202, %205 : vector<2x64xi1>, vector<2x64xf32>
    %c1408 = arith.constant 1408 : index
    %c0_65 = arith.constant 0 : index
    %209 = vector.load %arg4[%c1408, %c0_65] : memref<1824x128xbf16, #tpu.memory_space<vmem>>, vector<32x64xbf16>
    %210 = arith.truncf %184 : vector<2x32xf32> to vector<2x32xbf16>
    %cst_66 = arith.constant dense<0.000000e+00> : vector<2x64xf32>
    %211 = tpu.matmul %210, %209, %cst_66 {dimension_numbers = #tpu.dot_dimension_numbers<[1], [0], [0], [1], [0, 0, 1, 1], [], []>} : vector<2x32xbf16>, vector<32x64xbf16>, vector<2x64xf32> -> vector<2x64xf32>
    %212 = arith.addf %208, %211 : vector<2x64xf32>
    %c14 = arith.constant 14 : index
    %c0_67 = arith.constant 0 : index
    %213 = vector.load %arg5[%c14, %c0_67] : memref<19x128xf32, #tpu.memory_space<vmem>>, vector<1x64xf32>
    %214 = vector.broadcast %213 : vector<1x64xf32> to vector<2x64xf32>
    %215 = arith.addf %212, %214 : vector<2x64xf32>
    %c1440 = arith.constant 1440 : index
    %c0_68 = arith.constant 0 : index
    %216 = vector.load %arg4[%c1440, %c0_68] : memref<1824x128xbf16, #tpu.memory_space<vmem>>, vector<64x128xbf16>
    %217 = arith.truncf %215 : vector<2x64xf32> to vector<2x64xbf16>
    %cst_69 = arith.constant dense<0.000000e+00> : vector<2x128xf32>
    %218 = tpu.matmul %217, %216, %cst_69 {dimension_numbers = #tpu.dot_dimension_numbers<[1], [0], [0], [1], [0, 0, 1, 1], [], []>} : vector<2x64xbf16>, vector<64x128xbf16>, vector<2x128xf32> -> vector<2x128xf32>
    %c15 = arith.constant 15 : index
    %c0_70 = arith.constant 0 : index
    %219 = vector.load %arg5[%c15, %c0_70] : memref<19x128xf32, #tpu.memory_space<vmem>>, vector<1x128xf32>
    %220 = vector.broadcast %219 : vector<1x128xf32> to vector<2x128xf32>
    %221 = arith.addf %218, %220 : vector<2x128xf32>
    %222 = math.exp %221 : vector<2x128xf32>
    %cst_71 = arith.constant 1.000000e+00 : f32
    %223 = vector.broadcast %cst_71 : f32 to vector<2x128xf32>
    %224 = arith.subf %222, %223 : vector<2x128xf32>
    %cst_72 = arith.constant 0.000000e+00 : f32
    %225 = vector.broadcast %cst_72 : f32 to vector<2x128xf32>
    %226 = arith.cmpf ogt, %221, %225 : vector<2x128xf32>
    %227 = arith.select %226, %221, %224 : vector<2x128xi1>, vector<2x128xf32>
    %c1504 = arith.constant 1504 : index
    %c0_73 = arith.constant 0 : index
    %228 = vector.load %arg4[%c1504, %c0_73] : memref<1824x128xbf16, #tpu.memory_space<vmem>>, vector<128x128xbf16>
    %229 = arith.truncf %227 : vector<2x128xf32> to vector<2x128xbf16>
    %cst_74 = arith.constant dense<0.000000e+00> : vector<2x128xf32>
    %230 = tpu.matmul %229, %228, %cst_74 {dimension_numbers = #tpu.dot_dimension_numbers<[1], [0], [0], [1], [0, 0, 1, 1], [], []>} : vector<2x128xbf16>, vector<128x128xbf16>, vector<2x128xf32> -> vector<2x128xf32>
    %c16 = arith.constant 16 : index
    %c0_75 = arith.constant 0 : index
    %231 = vector.load %arg5[%c16, %c0_75] : memref<19x128xf32, #tpu.memory_space<vmem>>, vector<1x128xf32>
    %232 = vector.broadcast %231 : vector<1x128xf32> to vector<2x128xf32>
    %233 = arith.addf %230, %232 : vector<2x128xf32>
    %234 = math.exp %233 : vector<2x128xf32>
    %cst_76 = arith.constant 1.000000e+00 : f32
    %235 = vector.broadcast %cst_76 : f32 to vector<2x128xf32>
    %236 = arith.subf %234, %235 : vector<2x128xf32>
    %cst_77 = arith.constant 0.000000e+00 : f32
    %237 = vector.broadcast %cst_77 : f32 to vector<2x128xf32>
    %238 = arith.cmpf ogt, %233, %237 : vector<2x128xf32>
    %239 = arith.select %238, %233, %236 : vector<2x128xi1>, vector<2x128xf32>
    %c1632 = arith.constant 1632 : index
    %c0_78 = arith.constant 0 : index
    %240 = vector.load %arg4[%c1632, %c0_78] : memref<1824x128xbf16, #tpu.memory_space<vmem>>, vector<64x128xbf16>
    %241 = arith.truncf %215 : vector<2x64xf32> to vector<2x64xbf16>
    %cst_79 = arith.constant dense<0.000000e+00> : vector<2x128xf32>
    %242 = tpu.matmul %241, %240, %cst_79 {dimension_numbers = #tpu.dot_dimension_numbers<[1], [0], [0], [1], [0, 0, 1, 1], [], []>} : vector<2x64xbf16>, vector<64x128xbf16>, vector<2x128xf32> -> vector<2x128xf32>
    %243 = arith.addf %239, %242 : vector<2x128xf32>
    %c17 = arith.constant 17 : index
    %c0_80 = arith.constant 0 : index
    %244 = vector.load %arg5[%c17, %c0_80] : memref<19x128xf32, #tpu.memory_space<vmem>>, vector<1x128xf32>
    %245 = vector.broadcast %244 : vector<1x128xf32> to vector<2x128xf32>
    %246 = arith.addf %243, %245 : vector<2x128xf32>
    %c1696 = arith.constant 1696 : index
    %c0_81 = arith.constant 0 : index
    %247 = vector.load %arg4[%c1696, %c0_81] : memref<1824x128xbf16, #tpu.memory_space<vmem>>, vector<128x16xbf16>
    %248 = arith.truncf %246 : vector<2x128xf32> to vector<2x128xbf16>
    %cst_82 = arith.constant dense<0.000000e+00> : vector<2x16xf32>
    %249 = tpu.matmul %248, %247, %cst_82 {dimension_numbers = #tpu.dot_dimension_numbers<[1], [0], [0], [1], [0, 0, 1, 1], [], []>} : vector<2x128xbf16>, vector<128x16xbf16>, vector<2x16xf32> -> vector<2x16xf32>
    %c18 = arith.constant 18 : index
    %c0_83 = arith.constant 0 : index
    %250 = vector.load %arg5[%c18, %c0_83] : memref<19x128xf32, #tpu.memory_space<vmem>>, vector<1x16xf32>
    %251 = vector.broadcast %250 : vector<1x16xf32> to vector<2x16xf32>
    %252 = arith.addf %249, %251 : vector<2x16xf32>
    %253 = math.exp %252 : vector<2x16xf32>
    %cst_84 = arith.constant 1.000000e+00 : f32
    %254 = vector.broadcast %cst_84 : f32 to vector<2x16xf32>
    %255 = arith.subf %253, %254 : vector<2x16xf32>
    %cst_85 = arith.constant 0.000000e+00 : f32
    %256 = vector.broadcast %cst_85 : f32 to vector<2x16xf32>
    %257 = arith.cmpf ogt, %252, %256 : vector<2x16xf32>
    %258 = arith.select %257, %252, %255 : vector<2x16xi1>, vector<2x16xf32>
    %259 = arith.addf %177, %258 : vector<2x16xf32>
    %c0_86 = arith.constant 0 : index
    %c0_87 = arith.constant 0 : index
    %260 = vector.load %arg6[%c0_86, %c0_87] : memref<2x16xf32, #tpu.memory_space<vmem>>, vector<2x16xf32>
    tpu.vector_store %arg6[%c0_86, %c0_87], %259 {strides = array<i32>} : memref<2x16xf32, #tpu.memory_space<vmem>>, vector<2x16xf32>,
    return
  }
  func.func @transform_0(%arg0: i32) -> (i32, i32) {
    %c0_i32 = arith.constant 0 : i32
    %c0_i32_0 = arith.constant 0 : i32
    %c0_i32_1 = arith.constant 0 : i32
    return %c0_i32, %c0_i32_0 : i32, i32
  }
  func.func @transform_1(%arg0: i32) -> (i32, i32) {
    %c0_i32 = arith.constant 0 : i32
    %c0_i32_0 = arith.constant 0 : i32
    %c0_i32_1 = arith.constant 0 : i32
    return %c0_i32, %c0_i32_0 : i32, i32
  }
  func.func @transform_2(%arg0: i32) -> (i32, i32) {
    %c0_i32 = arith.constant 0 : i32
    %c0_i32_0 = arith.constant 0 : i32
    %c0_i32_1 = arith.constant 0 : i32
    return %c0_i32, %c0_i32_0 : i32, i32
  }
  func.func @transform_3(%arg0: i32) -> (i32, i32) {
    %c0_i32 = arith.constant 0 : i32
    %c0_i32_0 = arith.constant 0 : i32
    %c0_i32_1 = arith.constant 0 : i32
    return %c0_i32, %c0_i32_0 : i32, i32
  }
  func.func @transform_4(%arg0: i32) -> (i32, i32) {
    %c0_i32 = arith.constant 0 : i32
    %c0_i32_0 = arith.constant 0 : i32
    %c0_i32_1 = arith.constant 0 : i32
    return %c0_i32, %c0_i32_0 : i32, i32
  }
  func.func @transform_5(%arg0: i32) -> (i32, i32) {
    %c0_i32 = arith.constant 0 : i32
    %c0_i32_0 = arith.constant 0 : i32
    %c0_i32_1 = arith.constant 0 : i32
    return %c0_i32, %c0_i32_0 : i32, i32
  }
}

</mosaic_0001>

<bundles_post_ra>
// kernel: fwd.1
= control target key start
LH: loop header
LB: loop body
LE: loop exit
PB: predicated region body
PF: predicated region fallthrough
CT: control target
= control target key end

     0   :  { %10 = vsyncpa [#allocation3], 0  ;;  %s2424_s21 = smov [#allocation2]   ;;  %s2425_s23 = smov 64   ;;  %s2654_s0 = inlined_call_operand.vmem [shape: f32[16,8], index: 0, kind: input, shape index: {}]   ;;  %s2655_s1 = inlined_call_operand.vmem [shape: f32[2,20], index: 1, kind: input, shape index: {}]   ;;  %s2656_s2 = inlined_call_operand.vmem [shape: f32[8,8], index: 2, kind: input, shape index: {}]   ;;  %s2657_s3 = inlined_call_operand.hbm [shape: bf16[1824,128], index: 3, kind: input, shape index: {}]   ;;  %s2658_s4 = inlined_call_operand.vmem [shape: f32[19,128], index: 4, kind: input, shape index: {}]   ;;  %s2659_s5 = inlined_call_operand.vmem [shape: f32[2,16], index: 5, kind: output, shape index: {}]  }
   0x1   :  { %s21_s20 = sshll.u32 %s2657_s3, 4  ;;  %s23_s22 = sshll.u32 %s2424_s21, 4  ;;  %s22_s20 = int_to_ptr.hbm [resolvable:$true] %s21_s20  ;;  %s24_s22 = int_to_ptr.vmem [resolvable:$true] %s23_s22 }
   0x2   :  { %s2426_s24 = smov 4  }
   0x3   :  { %29 = dma.hbm_to_vmem [thread:$0]  %s22_s20, 14592, %s24_s22, [#allocation3], %s2425_s23, %s2425_s23, %s2426_s24  }
   0x4   :  { %2422 = dma.done.wait [#allocation3], 14592  }
   0x5   :  { %2423 = vsyncadd [#allocation3], 4294952704  ;;  %v39_v0 = vld [vmem:[%s2656_s2] sm:$0xff]  ;;  %vm46_vm0 = vcmask 1043456   ;;  %v38_v2 = vld [vmem:[%s2654_s0 + $0x8] sm:$0xff]  ;;  %vm42_vm1 = vcmask 64512   ;;  %v66_v7 = vlaneseq }
   0x6   :  { %v37_v1 = vld [vmem:[%s2654_s0] sm:$0xff]  ;;  %v40_v3 = vpack.c.bf16 %v39_v0, %v39_v0  ;;  %s2427_s2 = smov 8   ;;  %s2428_s0 = smov 16   ;;  %v99_v16 = vld [vmem:[#allocation2 + $0x8] sm:$0xf]  ;;  %vm94_vm4 = vcmask 130048  }
   0x7   :  { %v41_v5 = vpack.c.bf16 %v38_v2, %v37_v1  ;;  %v2476_v8 = vshrl.u32 %v66_v7, 7  ;;  %v108_v17 = vunpack.c.l.b16 %v99_v16  ;;  %v2172_v20 = vld [vmem:[#allocation2] sm:$0xff]  ;;  %vm112_vm5 = vcmask 195584   ;;  %v2182_v36 = vld [vmem:[#allocation2 + $0x58] sm:$0xff]  ;;  %s2429_s7 = smov 32   ;;  %v2173_v55 = vld [vmem:[#allocation2 + $0x10] sm:$0xff] }
   0x8   :  { %v48_v4 = vsel %vm46_vm0, %v40_v3, 0  ;;  %344 = vmatpush.bf16.msra.mxu0 %v2182_v36  ;;  %v2175_v37 = vld [vmem:[#allocation2 + $0x20] sm:$0xff]  ;;  %v2174_v54 = vld [vmem:[#allocation2 + $0x18] sm:$0xff]  ;;  %vm159_vm6 = vcmask 261120   ;;  %vm189_vm7 = vcmask 392192   ;;  %vm243_vm10 = vcmask 523264  }
   0x9   :  { %57 = vmatpush.bf16.msra.mxu3 %v48_v4  ;;  %vm73_vm2 = vcmp.lt.s32.totalorder %v2476_v8, 7  ;;  %v110_v18 = vpack.c.b16 %v108_v17, %v108_v17  ;;  %vm68_vm3 = vcmp.lt.s32.totalorder %v2476_v8, 1  ;;  %v2345_v39 = vld [vmem:[%s2658_s4] ss:$0 sm:$0xff]  ;;  %v2346_v3 = vld [vmem:[%s2658_s4 + $0x1] ss:$0 sm:$0xff] }
   0xa   :  { %vm297_vm11 = vcmask 785408   ;;  %vm370_vm14 = vcmp.lt.s32.totalorder %v2476_v8, 6  ;;  %vm365_vm15 = vcmp.lt.s32.totalorder %v2476_v8, 2 }
   0xb   :  { %v117_v19 = vsel %vm46_vm0, %v110_v18, 0 }
   0xc   :  { %1691 = vmatmul.msk.bf16.vlgmr.msra.gmra.mxu3 %vm42_vm1, %v41_v5  ;;  %125 = vmatpush.bf16.msra.mxu1 %v117_v19 }
  0x10   :  { %126 = vmatpush.bf16.msra.mxu1 %v2172_v20 }
  0x14   :  { %198 = vmatpush.bf16.msrb.mxu1 %v2175_v37 }
  0x18   :  { %199 = vmatpush.bf16.msrb.mxu1 %v2174_v54 }
  0x1c   :  { %200 = vmatpush.bf16.msrb.mxu1 %v2173_v55 }
  0x8f   :  { %v59_v6 = vpop.f32.mrf.mxu3 }
  0x90   :  { %v71_v12 = vrot.slane %v59_v6, 1  ;;  %v64_v25 = vrot.slane %v59_v6, 7 }
  0x97   :  { %v61_v9 = vpop.f32.mrf.mxu3 }
  0x98   :  { %v2290_v10 = vpack.i.bf16 %v61_v9, %v59_v6  ;;  %v72_v11 = vrot.slane %v61_v9, 1  ;;  %v65_v22 = vrot.slane %v61_v9, 7  ;;  %v2181_v6 = vld [vmem:[#allocation2 + $0x50] sm:$0xff]  ;;  %v2180_v9 = vld [vmem:[#allocation2 + $0x48] sm:$0xff] }
  0x99   :  { %303 = vmatpush.bf16.msrb.mxu3 %v2181_v6 }
  0x9a   :  { %2291 = vrot.lane.b32.xlu0 %v2290_v10, %s2427_s2  ;;  %v74_v13 = vsel %vm73_vm2, %v71_v12, %v72_v11  ;;  %v75_v14 = vsel %vm73_vm2, %v72_v11, %v71_v12  ;;  %v69_v27 = vsel %vm68_vm3, %v64_v25, %v65_v22  ;;  %v70_v28 = vsel %vm68_vm3, %v65_v22, %v64_v25  ;;  %v2179_v10 = vld [vmem:[#allocation2 + $0x40] sm:$0xff] }
  0x9b   :  { %v2295_v15 = vpack.i.bf16 %v75_v14, %v74_v13 }
  0x9d   :  { %304 = vmatpush.bf16.msrb.mxu3 %v2180_v9 }
  0xa1   :  { %305 = vmatpush.bf16.msrb.mxu3 %v2179_v10 }
  0xa2   :  { %2296 = vrot.lane.b32.xlu0 %v2295_v15, %s2428_s0 }
 0x10c   :  { %v2292_v21 = vpop.permute.xlu0 %2291 }
 0x10d   :  { %v2294_v23 = vunpack.i.h.bf16 %v2292_v21  ;;  %v2293_v24 = vunpack.i.l.bf16 %v2292_v21 }
 0x10f   :  { %v92_v31 = vsel %vm42_vm1, %v70_v28, %v2293_v24  ;;  %v93_v32 = vsel %vm42_vm1, %v69_v27, %v2294_v23 }
 0x114   :  { %v2297_v26 = vpop.permute.xlu0 %2296 }
 0x115   :  { %v2299_v29 = vunpack.i.h.bf16 %v2297_v26  ;;  %v2298_v30 = vunpack.i.l.bf16 %v2297_v26 }
 0x117   :  { %v95_v33 = vsel %vm94_vm4, %v92_v31, %v2298_v30  ;;  %v96_v34 = vsel %vm94_vm4, %v93_v32, %v2299_v29  ;;  %v2178_v30 = vld [vmem:[#allocation2 + $0x38] sm:$0xff]  ;;  %v2177_v31 = vld [vmem:[#allocation2 + $0x30] sm:$0xff]  ;;  %v2176_v32 = vld [vmem:[#allocation2 + $0x28] sm:$0xff] }
 0x118   :  { %v100_v35 = vpack.c.bf16 %v96_v34, %v95_v33  ;;  %306 = vmatpush.bf16.msrb.mxu3 %v2178_v30 }
 0x11a   :  { %1696 = vmatmul.msk.bf16.vlgmr.msra.gmra.mxu1 %vm112_vm5, %v100_v35  ;;  %vm1262_vm5 = vcmask 1041408  }
 0x11c   :  { %307 = vmatpush.bf16.msrb.mxu3 %v2177_v31 }
 0x120   :  { %308 = vmatpush.bf16.msrb.mxu3 %v2176_v32 }
 0x197   :  { %v128_v38 = vpop.f32.mrf.mxu1 }
 0x198   :  { %v129_v40 = vadd.f32 %v2345_v39, %v128_v38 }
 0x19a   :  { %v133_v43 = vrot.slane %v129_v40, 7  ;;  %v137_v49 = vrot.slane %v129_v40, 1 }
 0x19f   :  { %v130_v41 = vpop.f32.mrf.mxu1 }
 0x1a0   :  { %v131_v42 = vadd.f32 %v2345_v39, %v130_v41 }
 0x1a2   :  { %v134_v44 = vrot.slane %v131_v42, 7  ;;  %v2300_v45 = vpack.i.bf16 %v131_v42, %v129_v40  ;;  %v327_v46 = vpack.c.bf16 %v131_v42, %v129_v40  ;;  %v138_v47 = vrot.slane %v131_v42, 1 }
 0x1a4   :  { %2301 = vrot.lane.b32.xlu1 %v2300_v45, %s2428_s0  ;;  %1743 = vmatmul.msk.bf16.vlgmr.msra.gmra.mxu0 %vm94_vm4, %v327_v46  ;;  %v135_v48 = vsel %vm68_vm3, %v133_v43, %v134_v44  ;;  %v136_v50 = vsel %vm68_vm3, %v134_v44, %v133_v43  ;;  %v139_v51 = vsel %vm73_vm2, %v137_v49, %v138_v47  ;;  %v2202_v44 = vld [vmem:[#allocation2 + $0xf8] sm:$0xff]  ;;  %v2347_v45 = vld [vmem:[%s2658_s4 + $0x2] ss:$0 sm:$0xff]  ;;  %v2201_v46 = vld [vmem:[#allocation2 + $0xf0] sm:$0xff] }
 0x1a5   :  { %v140_v52 = vsel %vm73_vm2, %v138_v47, %v137_v49  ;;  %656 = vmatpush.bf16.msra.mxu3 %v2202_v44 }
 0x1a6   :  { %v2305_v53 = vpack.i.bf16 %v140_v52, %v139_v51  ;;  %v2187_v51 = vld [vmem:[#allocation2 + $0x80] sm:$0xff] }
 0x1a9   :  { %657 = vmatpush.bf16.msra.mxu3 %v2201_v46  ;;  %v2194_v46 = vld [vmem:[#allocation2 + $0xb8] sm:$0xff] }
 0x1ac   :  { %2306 = vrot.lane.b32.xlu1 %v2305_v53, %s2429_s7 }
 0x216   :  { %v2302_v56 = vpop.permute.xlu1 %2301 }
 0x217   :  { %v2304_v57 = vunpack.i.h.bf16 %v2302_v56  ;;  %v2303_v58 = vunpack.i.l.bf16 %v2302_v56  ;;  %v2186_v56 = vld [vmem:[#allocation2 + $0x78] sm:$0xff] }
 0x219   :  { %v157_v62 = vsel %vm94_vm4, %v136_v50, %v2303_v58  ;;  %v158_v63 = vsel %vm94_vm4, %v135_v48, %v2304_v57  ;;  %v2188_v50 = vld [vmem:[#allocation2 + $0x88] sm:$0xff]  ;;  %vm678_vm4 = vcmp.lt.s32.totalorder %v2476_v8, 4  ;;  %v2243_v8 = vld [vmem:[#allocation2 + $0x240] sm:$0xff] }
 0x21a   :  { %449 = vmatpush.bf16.msra.mxu1 %v2188_v50 }
 0x21e   :  { %v2307_v59 = vpop.permute.xlu1 %2306  ;;  %450 = vmatpush.bf16.msra.mxu1 %v2187_v51  ;;  %v2192_v51 = vld [vmem:[#allocation2 + $0xa8] sm:$0xff] }
 0x21f   :  { %v2309_v60 = vunpack.i.h.bf16 %v2307_v59  ;;  %v2308_v61 = vunpack.i.l.bf16 %v2307_v59  ;;  %v2185_v59 = vld [vmem:[#allocation2 + $0x70] sm:$0xff] }
 0x221   :  { %v160_v0 = vsel %vm159_vm6, %v157_v62, %v2308_v61  ;;  %v161_v1 = vsel %vm159_vm6, %v158_v63, %v2309_v60  ;;  %v346_v57 = vpop.f32.mrf.mxu0  ;;  %v2348_v63 = vld [vmem:[%s2658_s4 + $0x3] ss:$0 sm:$0xff] }
 0x222   :  { %v168_v2 = vpack.c.bf16 %v161_v1, %v160_v0  ;;  %451 = vmatpush.bf16.msra.mxu1 %v2186_v56  ;;  %v2190_v56 = vld [vmem:[#allocation2 + $0x98] sm:$0xff] }
 0x224   :  { %1709 = vmatmul.msk.bf16.vlgmr.msrb.gmra.mxu1 %vm189_vm7, %v168_v2 }
 0x226   :  { %452 = vmatpush.bf16.msra.mxu1 %v2185_v59 }
 0x229   :  { %v348_v1 = vpop.f32.mrf.mxu0 }
 0x2a1   :  { %v202_v4 = vpop.f32.mrf.mxu1 }
 0x2a2   :  { %v203_v5 = vadd.f32 %v2346_v3, %v202_v4 }
 0x2a4   :  { %v207_v7 = vmul.f32 1.442695, %v203_v5  ;;  %vm213_vm8 = vcmp.gt.f32.partialorder %v203_v5, 0.0 }
 0x2a6   :  { %2364 = vpow2.f32 %v207_v7 }
 0x2a9   :  { %v204_v11 = vpop.f32.mrf.mxu1 }
 0x2aa   :  { %v205_v12 = vadd.f32 %v2346_v3, %v204_v11 }
 0x2ac   :  { %v209_v13 = vmul.f32 1.442695, %v205_v12  ;;  %v2365_v14 = vpop.eup %2364  ;;  %vm214_vm9 = vcmp.gt.f32.partialorder %v205_v12, 0.0 }
 0x2ad   :  { %v1710_v15 = vadd.f32 -1.0, %v2365_v14 }
 0x2ae   :  { %2366 = vpow2.f32 %v209_v13 }
 0x2af   :  { %v215_v18 = vsel %vm213_vm8, %v203_v5, %v1710_v15 }
 0x2b0   :  { %v217_v22 = vrot.slane %v215_v18, 7  ;;  %v221_v26 = vrot.slane %v215_v18, 1 }
 0x2b4   :  { %v2367_v16 = vpop.eup %2366 }
 0x2b5   :  { %v1711_v17 = vadd.f32 -1.0, %v2367_v16 }
 0x2b7   :  { %v216_v19 = vsel %vm214_vm9, %v205_v12, %v1711_v17  ;;  %vm1258_vm9 = vcmask 162816  }
 0x2b8   :  { %v218_v20 = vrot.slane %v216_v19, 7  ;;  %v2310_v21 = vpack.i.bf16 %v216_v19, %v215_v18  ;;  %v222_v23 = vrot.slane %v216_v19, 1 }
 0x2ba   :  { %2311 = vrot.lane.b32.xlu2 %v2310_v21, %s2429_s7  ;;  %v219_v24 = vsel %vm68_vm3, %v217_v22, %v218_v20  ;;  %v220_v25 = vsel %vm68_vm3, %v218_v20, %v217_v22  ;;  %v223_v27 = vsel %vm73_vm2, %v221_v26, %v222_v23  ;;  %v224_v28 = vsel %vm73_vm2, %v222_v23, %v221_v26 }
 0x2bb   :  { %v2315_v29 = vpack.i.bf16 %v224_v28, %v223_v27 }
 0x2c2   :  { %2316 = vrot.lane.b32.xlu2 %v2315_v29, %s2425_s23 }
 0x314   :  { %v2312_v33 = vpop.permute.xlu2 %2311 }
 0x315   :  { %v2314_v34 = vunpack.i.h.bf16 %v2312_v33  ;;  %v2313_v35 = vunpack.i.l.bf16 %v2312_v33 }
 0x317   :  { %v241_v39 = vsel %vm159_vm6, %v220_v25, %v2313_v35  ;;  %v242_v40 = vsel %vm159_vm6, %v219_v24, %v2314_v34  ;;  %v2184_v24 = vld [vmem:[#allocation2 + $0x68] sm:$0xff]  ;;  %v2183_v25 = vld [vmem:[#allocation2 + $0x60] sm:$0xff] }
 0x318   :  { %453 = vmatpush.bf16.msra.mxu1 %v2184_v24 }
 0x31c   :  { %v2317_v36 = vpop.permute.xlu2 %2316  ;;  %454 = vmatpush.bf16.msra.mxu1 %v2183_v25  ;;  %v2210_v25 = vld [vmem:[#allocation2 + $0x138] sm:$0xff] }
 0x31d   :  { %v2319_v37 = vunpack.i.h.bf16 %v2317_v36  ;;  %v2318_v38 = vunpack.i.l.bf16 %v2317_v36 }
 0x31f   :  { %v244_v41 = vsel %vm243_vm10, %v241_v39, %v2318_v38  ;;  %v245_v42 = vsel %vm243_vm10, %v242_v40, %v2319_v37  ;;  %v2200_v37 = vld [vmem:[#allocation2 + $0xe8] sm:$0xff]  ;;  %v2199_v38 = vld [vmem:[#allocation2 + $0xe0] sm:$0xff]  ;;  %v2198_v39 = vld [vmem:[#allocation2 + $0xd8] sm:$0xff] }
 0x320   :  { %v258_v43 = vpack.c.bf16 %v245_v42, %v244_v41  ;;  %610 = vmatpush.bf16.msrb.mxu0 %v2200_v37  ;;  %v2197_v40 = vld [vmem:[#allocation2 + $0xd0] sm:$0xff]  ;;  %v2196_v41 = vld [vmem:[#allocation2 + $0xc8] sm:$0xff]  ;;  %v2349_v42 = vld [vmem:[%s2658_s4 + $0x4] ss:$0 sm:$0xff]  ;;  %794 = vmatpush.bf16.msrb.mxu1 %v2210_v25 }
 0x321   :  { %592 = vmatpush.bf16.msra.mxu2 %v2196_v41  ;;  %v2206_v41 = vld [vmem:[#allocation2 + $0x118] sm:$0xff] }
 0x322   :  { %1736 = vmatmul.msk.bf16.vlgmr.msrb.gmra.mxu3 %vm297_vm11, %v258_v43  ;;  %v2195_v43 = vld [vmem:[#allocation2 + $0xc0] sm:$0xff]  ;;  %v2234_v25 = vld [vmem:[#allocation2 + $0x1f8] sm:$0xff] }
 0x324   :  { %611 = vmatpush.bf16.msrb.mxu0 %v2199_v38 }
 0x325   :  { %593 = vmatpush.bf16.msra.mxu2 %v2195_v43 }
 0x328   :  { %612 = vmatpush.bf16.msrb.mxu0 %v2198_v39 }
 0x329   :  { %594 = vmatpush.bf16.msra.mxu2 %v2194_v46 }
 0x32c   :  { %613 = vmatpush.bf16.msrb.mxu0 %v2197_v40  ;;  %v2351_v40 = vld [vmem:[%s2658_s4 + $0x6] ss:$0 sm:$0xff] }
 0x3a5   :  { %v310_v47 = vpop.f32.mrf.mxu3 }
 0x3a6   :  { %v311_v48 = vadd.f32 %v2347_v45, %v310_v47 }
 0x3a8   :  { %v315_v49 = vmul.f32 1.442695, %v311_v48  ;;  %vm321_vm12 = vcmp.gt.f32.partialorder %v311_v48, 0.0 }
 0x3aa   :  { %2368 = vpow2.f32 %v315_v49 }
 0x3ad   :  { %v312_v52 = vpop.f32.mrf.mxu3 }
 0x3ae   :  { %v313_v53 = vadd.f32 %v2347_v45, %v312_v52 }
 0x3b0   :  { %v2369_v54 = vpop.eup %2368  ;;  %v317_v55 = vmul.f32 1.442695, %v313_v53  ;;  %vm322_vm13 = vcmp.gt.f32.partialorder %v313_v53, 0.0 }
 0x3b1   :  { %v1737_v58 = vadd.f32 -1.0, %v2369_v54  ;;  %v2191_v54 = vld [vmem:[#allocation2 + $0xa0] sm:$0xff] }
 0x3b2   :  { %2370 = vpow2.f32 %v317_v55 }
 0x3b3   :  { %v323_v60 = vsel %vm321_vm12, %v311_v48, %v1737_v58  ;;  %v2193_v48 = vld [vmem:[#allocation2 + $0xb0] sm:$0xff] }
 0x3b4   :  { %v351_v62 = vadd.f32 %v346_v57, %v323_v60  ;;  %595 = vmatpush.bf16.msra.mxu2 %v2193_v48 }
 0x3b6   :  { %v355_v3 = vadd.f32 %v2348_v63, %v351_v62 }
 0x3b8   :  { %v2371_v61 = vpop.eup %2370  ;;  %v357_v6 = vrot.slane %v355_v3, 1  ;;  %596 = vmatpush.bf16.msra.mxu2 %v2192_v51  ;;  %v2204_v51 = vld [vmem:[#allocation2 + $0x108] sm:$0xff] }
 0x3b9   :  { %v1738_v0 = vadd.f32 -1.0, %v2371_v61 }
 0x3bb   :  { %v324_v2 = vsel %vm322_vm13, %v313_v53, %v1738_v0 }
 0x3bc   :  { %v352_v4 = vadd.f32 %v348_v1, %v324_v2  ;;  %597 = vmatpush.bf16.msra.mxu2 %v2191_v54 }
 0x3be   :  { %v356_v5 = vadd.f32 %v2348_v63, %v352_v4 }
 0x3c0   :  { %v358_v7 = vrot.slane %v356_v5, 1  ;;  %598 = vmatpush.bf16.msra.mxu2 %v2190_v56 }
 0x3c2   :  { %v360_v9 = vsel %vm73_vm2, %v358_v7, %v357_v6  ;;  %v359_v10 = vsel %vm73_vm2, %v357_v6, %v358_v7  ;;  %v2189_v7 = vld [vmem:[#allocation2 + $0x90] sm:$0xff] }
 0x3c3   :  { %v362_v11 = vmax.f32 %v356_v5, %v360_v9  ;;  %v361_v12 = vmax.f32 %v355_v3, %v359_v10 }
 0x3c4   :  { %599 = vmatpush.bf16.msra.mxu2 %v2189_v7 }
 0x3c5   :  { %v2320_v13 = vpack.i.bf16 %v362_v11, %v361_v12  ;;  %v634_v14 = vpack.c.bf16 %v362_v11, %v361_v12  ;;  %v368_v15 = vrot.slane %v361_v12, 2  ;;  %v369_v16 = vrot.slane %v362_v11, 2 }
 0x3c6   :  { %v364_v17 = vrot.slane %v362_v11, 6  ;;  %v363_v18 = vrot.slane %v361_v12, 6 }
 0x3c7   :  { %2321 = vrot.lane.b32.xlu0 %v2320_v13, %s2429_s7  ;;  %1830 = vmatmul.msk.bf16.vlgmr.msra.gmra.mxu3 %vm159_vm6, %v634_v14  ;;  %v371_v19 = vsel %vm370_vm14, %v368_v15, %v369_v16  ;;  %v372_v20 = vsel %vm370_vm14, %v369_v16, %v368_v15  ;;  %v2214_v15 = vld [vmem:[#allocation2 + $0x158] sm:$0xff]  ;;  %v2213_v16 = vld [vmem:[#allocation2 + $0x150] sm:$0xff] }
 0x3c8   :  { %v2325_v21 = vpack.i.bf16 %v372_v20, %v371_v19  ;;  %v366_v22 = vsel %vm365_vm15, %v363_v18, %v364_v17  ;;  %v367_v23 = vsel %vm365_vm15, %v364_v17, %v363_v18  ;;  %812 = vmatpush.bf16.msra.mxu0 %v2214_v15  ;;  %v2350_v17 = vld [vmem:[%s2658_s4 + $0x5] ss:$0 sm:$0xff]  ;;  %v2212_v18 = vld [vmem:[#allocation2 + $0x148] sm:$0xff]  ;;  %v2221_v15 = vld [vmem:[#allocation2 + $0x190] sm:$0xff] }
 0x3ca   :  { %2326 = vrot.lane.b32.xlu1 %v2325_v21, %s2425_s23 }
 0x3cc   :  { %813 = vmatpush.bf16.msra.mxu0 %v2213_v16  ;;  %v2237_v16 = vld [vmem:[#allocation2 + $0x210] sm:$0xff] }
 0x3d0   :  { %814 = vmatpush.bf16.msra.mxu0 %v2212_v18  ;;  %v2220_v18 = vld [vmem:[#allocation2 + $0x188] sm:$0xff] }
 0x439   :  { %v2322_v26 = vpop.permute.xlu0 %2321 }
 0x43a   :  { %v2324_v27 = vunpack.i.h.bf16 %v2322_v26  ;;  %v2323_v28 = vunpack.i.l.bf16 %v2322_v26 }
 0x43c   :  { %v2327_v29 = vpop.permute.xlu1 %2326  ;;  %v389_v32 = vsel %vm159_vm6, %v367_v23, %v2323_v28  ;;  %v390_v33 = vsel %vm159_vm6, %v366_v22, %v2324_v27  ;;  %v2211_v22 = vld [vmem:[#allocation2 + $0x140] sm:$0xff]  ;;  %v2209_v28 = vld [vmem:[#allocation2 + $0x130] sm:$0xff] }
 0x43d   :  { %v2329_v30 = vunpack.i.h.bf16 %v2327_v29  ;;  %v2328_v31 = vunpack.i.l.bf16 %v2327_v29  ;;  %815 = vmatpush.bf16.msra.mxu0 %v2211_v22  ;;  %795 = vmatpush.bf16.msrb.mxu1 %v2209_v28  ;;  %v2235_v22 = vld [vmem:[#allocation2 + $0x200] sm:$0xff]  ;;  %v2233_v28 = vld [vmem:[#allocation2 + $0x1f0] sm:$0xff] }
 0x43f   :  { %v391_v34 = vsel %vm243_vm10, %v389_v32, %v2328_v31  ;;  %v392_v35 = vsel %vm243_vm10, %v390_v33, %v2329_v30  ;;  %v2208_v33 = vld [vmem:[#allocation2 + $0x128] sm:$0xff] }
 0x440   :  { %v405_v36 = vpack.c.bf16 %v392_v35, %v391_v34 }
 0x441   :  { %796 = vmatpush.bf16.msrb.mxu1 %v2208_v33  ;;  %v2215_v33 = vld [vmem:[#allocation2 + $0x160] sm:$0xff] }
 0x442   :  { %1768 = vmatmul.msk.bf16.vlgmr.msra.gmra.mxu1 %vm297_vm11, %v405_v36  ;;  %v2207_v36 = vld [vmem:[#allocation2 + $0x120] sm:$0xff] }
 0x445   :  { %797 = vmatpush.bf16.msrb.mxu1 %v2207_v36 }
 0x449   :  { %798 = vmatpush.bf16.msrb.mxu1 %v2206_v41 }
 0x44a   :  { %v659_v34 = vpop.f32.mrf.mxu3 }
 0x452   :  { %v661_v43 = vpop.f32.mrf.mxu3 }
 0x4bf   :  { %v456_v44 = vpop.f32.mrf.mxu1 }
 0x4c0   :  { %v457_v45 = vadd.f32 %v2349_v42, %v456_v44 }
 0x4c2   :  { %v461_v47 = vmul.f32 1.442695, %v457_v45  ;;  %vm467_vm0 = vcmp.gt.f32.partialorder %v457_v45, 0.0 }
 0x4c4   :  { %2372 = vpow2.f32 %v461_v47  ;;  %v2205_v47 = vld [vmem:[#allocation2 + $0x110] sm:$0xff] }
 0x4c5   :  { %799 = vmatpush.bf16.msrb.mxu1 %v2205_v47 }
 0x4c7   :  { %v458_v49 = vpop.f32.mrf.mxu1 }
 0x4c8   :  { %v459_v50 = vadd.f32 %v2349_v42, %v458_v49 }
 0x4c9   :  { %800 = vmatpush.bf16.msrb.mxu1 %v2204_v51 }
 0x4ca   :  { %v463_v52 = vmul.f32 1.442695, %v459_v50  ;;  %v2373_v53 = vpop.eup %2372  ;;  %vm468_vm1 = vcmp.gt.f32.partialorder %v459_v50, 0.0 }
 0x4cb   :  { %v1769_v55 = vadd.f32 -1.0, %v2373_v53 }
 0x4cc   :  { %2374 = vpow2.f32 %v463_v52 }
 0x4cd   :  { %v469_v58 = vsel %vm467_vm0, %v457_v45, %v1769_v55 }
 0x4ce   :  { %v471_v61 = vrot.slane %v469_v58, 6  ;;  %v475_v1 = vrot.slane %v469_v58, 2 }
 0x4d2   :  { %v2375_v57 = vpop.eup %2374 }
 0x4d3   :  { %v1770_v59 = vadd.f32 -1.0, %v2375_v57 }
 0x4d5   :  { %v470_v60 = vsel %vm468_vm1, %v459_v50, %v1770_v59  ;;  %vm1684_vm1 = vcmask 123904  }
 0x4d6   :  { %v472_v62 = vrot.slane %v470_v60, 6  ;;  %v476_v63 = vrot.slane %v470_v60, 2  ;;  %v2330_v0 = vpack.i.bf16 %v470_v60, %v469_v58 }
 0x4d8   :  { %2331 = vrot.lane.b32.xlu2 %v2330_v0, %s2425_s23  ;;  %v477_v2 = vsel %vm370_vm14, %v475_v1, %v476_v63  ;;  %v478_v3 = vsel %vm370_vm14, %v476_v63, %v475_v1  ;;  %v473_v4 = vsel %vm365_vm15, %v471_v61, %v472_v62  ;;  %v474_v5 = vsel %vm365_vm15, %v472_v62, %v471_v61  ;;  %v2203_v63 = vld [vmem:[#allocation2 + $0x100] sm:$0xff]  ;;  %v2242_v0 = vld [vmem:[#allocation2 + $0x238] sm:$0xff]  ;;  %v2241_v1 = vld [vmem:[#allocation2 + $0x230] sm:$0xff] }
 0x4d9   :  { %v514_v6 = vpack.c.bf16 %v478_v3, %v477_v2  ;;  %801 = vmatpush.bf16.msrb.mxu1 %v2203_v63  ;;  %v2240_v2 = vld [vmem:[#allocation2 + $0x228] sm:$0xff]  ;;  %v2239_v3 = vld [vmem:[#allocation2 + $0x220] sm:$0xff] }
 0x4db   :  { %1819 = vmatmul.msk.bf16.vlgmr.msrb.gmra.mxu0 %vm243_vm10, %v514_v6  ;;  %v2238_v6 = vld [vmem:[#allocation2 + $0x218] sm:$0xff] }
 0x4dc   :  { %1061 = vmatpush.bf16.msrb.mxu0 %v2238_v6 }
 0x4dd   :  { %1125 = vmatpush.bf16.msra.mxu1 %v2242_v0  ;;  %v1242_v0 = vld [vmem:[%s2655_s1] sm:$0x3] }
 0x4e0   :  { %1062 = vmatpush.bf16.msrb.mxu0 %v2237_v16 }
 0x4e1   :  { %1126 = vmatpush.bf16.msra.mxu1 %v2241_v1  ;;  %v1246_v1 = vpack.c.bf16 %v1242_v0, %v1242_v0 }
 0x4e5   :  { %1127 = vmatpush.bf16.msra.mxu1 %v2240_v2  ;;  %v2253_v2 = vld [vmem:[#allocation2 + $0x298] sm:$0xff] }
 0x4e9   :  { %1128 = vmatpush.bf16.msra.mxu1 %v2239_v3  ;;  %v2259_v3 = vld [vmem:[#allocation2 + $0x2c8] sm:$0xff] }
 0x532   :  { %v2332_v9 = vpop.permute.xlu2 %2331 }
 0x533   :  { %v2334_v10 = vunpack.i.h.bf16 %v2332_v9  ;;  %v2333_v11 = vunpack.i.l.bf16 %v2332_v9 }
 0x535   :  { %v487_v12 = vsel %vm243_vm10, %v474_v5, %v2333_v11  ;;  %v488_v13 = vsel %vm243_vm10, %v473_v4, %v2334_v10  ;;  %v2230_v4 = vld [vmem:[#allocation2 + $0x1d8] sm:$0xff] }
 0x536   :  { %v513_v14 = vpack.c.bf16 %v488_v13, %v487_v12  ;;  %v2222_v5 = vld [vmem:[#allocation2 + $0x198] sm:$0xff]  ;;  %1047 = vmatpush.bf16.msrb.mxu2 %v2230_v4  ;;  %v2252_v4 = vld [vmem:[#allocation2 + $0x290] sm:$0xff] }
 0x537   :  { %1033 = vmatpush.bf16.msrb.mxu3 %v2222_v5  ;;  %v2258_v5 = vld [vmem:[#allocation2 + $0x2c0] sm:$0xff] }
 0x538   :  { %600 = vmatmul.bf16.vlgmr.msra.gmra.mxu2 %v513_v14  ;;  %v2229_v14 = vld [vmem:[#allocation2 + $0x1d0] sm:$0xff] }
 0x53a   :  { %1048 = vmatpush.bf16.msrb.mxu2 %v2229_v14 }
 0x53b   :  { %1034 = vmatpush.bf16.msrb.mxu3 %v2221_v15  ;;  %v2250_v15 = vld [vmem:[#allocation2 + $0x278] sm:$0xff] }
 0x53f   :  { %1035 = vmatpush.bf16.msrb.mxu3 %v2220_v18  ;;  %v2249_v18 = vld [vmem:[#allocation2 + $0x270] sm:$0xff] }
 0x558   :  { %v615_v19 = vpop.f32.mrf.mxu0 }
 0x560   :  { %v617_v29 = vpop.f32.mrf.mxu0 }
 0x5bb   :  { %v601_v20 = vpop.f32.mrf.mxu2 }
 0x5bc   :  { %v602_v21 = vadd.f32 %v2350_v17, %v601_v20  ;;  %v2227_v20 = vld [vmem:[#allocation2 + $0x1c0] sm:$0xff] }
 0x5be   :  { %v616_v23 = vadd.f32 %v615_v19, %v602_v21  ;;  %v2236_v19 = vld [vmem:[#allocation2 + $0x208] sm:$0xff]  ;;  %v2219_v21 = vld [vmem:[#allocation2 + $0x180] sm:$0xff] }
 0x5bf   :  { %1063 = vmatpush.bf16.msrb.mxu0 %v2236_v19  ;;  %1036 = vmatpush.bf16.msrb.mxu3 %v2219_v21 }
 0x5c0   :  { %v620_v24 = vmul.f32 1.442695, %v616_v23  ;;  %vm626_vm2 = vcmp.gt.f32.partialorder %v616_v23, 0.0 }
 0x5c2   :  { %2376 = vpow2.f32 %v620_v24  ;;  %v2218_v24 = vld [vmem:[#allocation2 + $0x178] sm:$0xff] }
 0x5c3   :  { %v603_v26 = vpop.f32.mrf.mxu2  ;;  %1064 = vmatpush.bf16.msrb.mxu0 %v2235_v22  ;;  %1037 = vmatpush.bf16.msrb.mxu3 %v2218_v24 }
 0x5c4   :  { %v604_v27 = vadd.f32 %v2350_v17, %v603_v26  ;;  %v2228_v17 = vld [vmem:[#allocation2 + $0x1c8] sm:$0xff]  ;;  %v2225_v26 = vld [vmem:[#allocation2 + $0x1b0] sm:$0xff] }
 0x5c5   :  { %1049 = vmatpush.bf16.msrb.mxu2 %v2228_v17 }
 0x5c6   :  { %v618_v30 = vadd.f32 %v617_v29, %v604_v27  ;;  %v2217_v27 = vld [vmem:[#allocation2 + $0x170] sm:$0xff]  ;;  %v2224_v29 = vld [vmem:[#allocation2 + $0x1a8] sm:$0xff] }
 0x5c7   :  { %1065 = vmatpush.bf16.msrb.mxu0 %v2234_v25  ;;  %1038 = vmatpush.bf16.msrb.mxu3 %v2217_v27 }
 0x5c8   :  { %v2377_v31 = vpop.eup %2376  ;;  %v622_v32 = vmul.f32 1.442695, %v618_v30  ;;  %vm627_vm3 = vcmp.gt.f32.partialorder %v618_v30, 0.0 }
 0x5c9   :  { %v1820_v35 = vadd.f32 -1.0, %v2377_v31  ;;  %1050 = vmatpush.bf16.msrb.mxu2 %v2227_v20  ;;  %v2232_v31 = vld [vmem:[#allocation2 + $0x1e8] sm:$0xff] }
 0x5ca   :  { %2378 = vpow2.f32 %v622_v32  ;;  %v2223_v32 = vld [vmem:[#allocation2 + $0x1a0] sm:$0xff]  ;;  %v2354_v20 = vld [vmem:[%s2658_s4 + $0xb] ss:$0 sm:$0xff] }
 0x5cb   :  { %v628_v37 = vsel %vm626_vm2, %v616_v23, %v1820_v35  ;;  %v2226_v23 = vld [vmem:[#allocation2 + $0x1b8] sm:$0xff]  ;;  %1066 = vmatpush.bf16.msrb.mxu0 %v2233_v28  ;;  %v1245_v35 = vld [vmem:[#allocation2 + $0x288] sm:$0x3] }
 0x5cc   :  { %v664_v39 = vadd.f32 %v659_v34, %v628_v37  ;;  %v2231_v34 = vld [vmem:[#allocation2 + $0x1e0] sm:$0xff]  ;;  %v1254_v36 = vunpack.c.l.b16 %v1245_v35 }
 0x5cd   :  { %1051 = vmatpush.bf16.msrb.mxu2 %v2226_v23  ;;  %v2352_v37 = vld [vmem:[%s2658_s4 + $0x7] ss:$0 sm:$0xff]  ;;  %v2248_v23 = vld [vmem:[#allocation2 + $0x268] sm:$0xff] }
 0x5ce   :  { %v668_v46 = vadd.f32 %v2351_v40, %v664_v39 }
 0x5cf   :  { %1067 = vmatpush.bf16.msrb.mxu0 %v2232_v31 }
 0x5d0   :  { %v2379_v38 = vpop.eup %2378  ;;  %v670_v49 = vrot.slane %v668_v46, 2 }
 0x5d1   :  { %v1821_v42 = vadd.f32 -1.0, %v2379_v38  ;;  %1052 = vmatpush.bf16.msrb.mxu2 %v2225_v26  ;;  %v1256_v38 = vpack.c.b16 %v1254_v36, %v1254_v36 }
 0x5d3   :  { %v629_v44 = vsel %vm627_vm3, %v618_v30, %v1821_v42  ;;  %v2216_v30 = vld [vmem:[#allocation2 + $0x168] sm:$0xff]  ;;  %1068 = vmatpush.bf16.msrb.mxu0 %v2231_v34  ;;  %v1264_v41 = vsel %vm1262_vm5, %v1256_v38, 0 }
 0x5d4   :  { %v665_v45 = vadd.f32 %v661_v43, %v629_v44  ;;  %1039 = vmatpush.bf16.msrb.mxu3 %v2216_v30  ;;  %v2251_v43 = vld [vmem:[#allocation2 + $0x280] sm:$0xff] }
 0x5d5   :  { %1053 = vmatpush.bf16.msrb.mxu2 %v2224_v29 }
 0x5d6   :  { %v669_v48 = vadd.f32 %v2351_v40, %v665_v45 }
 0x5d8   :  { %v671_v50 = vrot.slane %v669_v48, 2  ;;  %1040 = vmatpush.bf16.msrb.mxu3 %v2215_v33 }
 0x5d9   :  { %1054 = vmatpush.bf16.msrb.mxu2 %v2223_v32  ;;  %v2247_v32 = vld [vmem:[#allocation2 + $0x260] sm:$0xff] }
 0x5da   :  { %v672_v52 = vsel %vm370_vm14, %v670_v49, %v671_v50  ;;  %v673_v53 = vsel %vm370_vm14, %v671_v50, %v670_v49 }
 0x5db   :  { %v674_v54 = vmax.f32 %v668_v46, %v672_v52  ;;  %v675_v55 = vmax.f32 %v669_v48, %v673_v53 }
 0x5dc   :  { %1229 = vmatpush.bf16.msra.mxu3 %v2250_v15  ;;  %v2275_v15 = vld [vmem:[#allocation2 + $0x348] sm:$0xff] }
 0x5dd   :  { %v677_v56 = vrot.slane %v675_v55, 4  ;;  %v2335_v57 = vpack.i.bf16 %v675_v55, %v674_v54  ;;  %v676_v58 = vrot.slane %v674_v54, 4  ;;  %v1093_v59 = vpack.c.bf16 %v675_v55, %v674_v54  ;;  %1272 = vmatpush.bf16.msra.mxu2 %v1264_v41 }
 0x5df   :  { %2336 = vrot.lane.b32.xlu0 %v2335_v57, %s2425_s23  ;;  %v679_v60 = vsel %vm678_vm4, %v676_v58, %v677_v56  ;;  %v680_v61 = vsel %vm678_vm4, %v677_v56, %v676_v58 }
 0x5e0   :  { %v716_v62 = vpack.c.bf16 %v680_v61, %v679_v60  ;;  %1230 = vmatpush.bf16.msra.mxu3 %v2249_v18  ;;  %v2261_v18 = vld [vmem:[#allocation2 + $0x2d8] sm:$0xff] }
 0x5e1   :  { %1273 = vmatpush.bf16.msra.mxu2 %v2251_v43 }
 0x5e2   :  { %1879 = vmatmul.msk.bf16.vlgmr.msra.gmra.mxu0 %vm243_vm10, %v716_v62 }
 0x5e4   :  { %1231 = vmatpush.bf16.msra.mxu3 %v2248_v23  ;;  %v2270_v23 = vld [vmem:[#allocation2 + $0x320] sm:$0xff] }
 0x5e8   :  { %1232 = vmatpush.bf16.msra.mxu3 %v2247_v32 }
 0x651   :  { %v2337_v7 = vpop.permute.xlu0 %2336 }
 0x652   :  { %v2339_v9 = vunpack.i.h.bf16 %v2337_v7  ;;  %v2338_v10 = vunpack.i.l.bf16 %v2337_v7  ;;  %v2353_v7 = vld [vmem:[%s2658_s4 + $0x8] ss:$0 sm:$0xff] }
 0x654   :  { %v689_v11 = vsel %vm243_vm10, %v680_v61, %v2338_v10  ;;  %v690_v12 = vsel %vm243_vm10, %v679_v60, %v2339_v9 }
 0x655   :  { %v715_v13 = vpack.c.bf16 %v690_v12, %v689_v11 }
 0x657   :  { %802 = vmatmul.bf16.vlgmr.msrb.gmra.mxu1 %v715_v13 }
 0x658   :  { %1307 = vmatpush.bf16.msrb.mxu1 %v2253_v2 }
 0x65c   :  { %1308 = vmatpush.bf16.msrb.mxu1 %v2252_v4 }
 0x65f   :  { %v817_v39 = vpop.f32.mrf.mxu0 }
 0x667   :  { %1996 = vmatmul.msk.bf16.vlgmr.msra.gmra.mxu1 %vm243_vm10, %v1093_v59  ;;  %v819_v48 = vpop.f32.mrf.mxu0 }
 0x6d4   :  { %v803_v40 = vpop.f32.mrf.mxu1 }
 0x6d5   :  { %v804_v42 = vadd.f32 %v2352_v37, %v803_v40 }
 0x6d7   :  { %v818_v44 = vadd.f32 %v817_v39, %v804_v42 }
 0x6d9   :  { %v822_v45 = vmul.f32 1.442695, %v818_v44  ;;  %vm828_vm7 = vcmp.gt.f32.partialorder %v818_v44, 0.0 }
 0x6db   :  { %2380 = vpow2.f32 %v822_v45 }
 0x6dc   :  { %v805_v46 = vpop.f32.mrf.mxu1 }
 0x6dd   :  { %v806_v47 = vadd.f32 %v2352_v37, %v805_v46  ;;  %v2355_v37 = vld [vmem:[%s2658_s4 + $0x9] ss:$0 sm:$0xff] }
 0x6df   :  { %v820_v49 = vadd.f32 %v819_v48, %v806_v47 }
 0x6e1   :  { %v824_v50 = vmul.f32 1.442695, %v820_v49  ;;  %v2381_v51 = vpop.eup %2380  ;;  %vm829_vm8 = vcmp.gt.f32.partialorder %v820_v49, 0.0 }
 0x6e2   :  { %v1880_v52 = vadd.f32 -1.0, %v2381_v51  ;;  %v2257_v51 = vld [vmem:[#allocation2 + $0x2b8] sm:$0xff] }
 0x6e3   :  { %2382 = vpow2.f32 %v824_v50  ;;  %1361 = vmatpush.bf16.msra.mxu0 %v2257_v51 }
 0x6e4   :  { %v830_v55 = vsel %vm828_vm7, %v818_v44, %v1880_v52  ;;  %v1130_v29 = vpop.f32.mrf.mxu1  ;;  %v2246_v52 = vld [vmem:[#allocation2 + $0x258] sm:$0xff] }
 0x6e5   :  { %v832_v57 = vrot.slane %v830_v55, 4  ;;  %1233 = vmatpush.bf16.msra.mxu3 %v2246_v52 }
 0x6e9   :  { %v2383_v53 = vpop.eup %2382 }
 0x6ea   :  { %v1881_v54 = vadd.f32 -1.0, %v2383_v53  ;;  %v2256_v53 = vld [vmem:[#allocation2 + $0x2b0] sm:$0xff] }
 0x6eb   :  { %1362 = vmatpush.bf16.msra.mxu0 %v2256_v53 }
 0x6ec   :  { %v831_v56 = vsel %vm829_vm8, %v820_v49, %v1881_v54  ;;  %v1132_v39 = vpop.f32.mrf.mxu1  ;;  %v2245_v54 = vld [vmem:[#allocation2 + $0x250] sm:$0xff] }
 0x6ed   :  { %v833_v58 = vrot.slane %v831_v56, 4  ;;  %v885_v59 = vpack.c.bf16 %v831_v56, %v830_v55  ;;  %1234 = vmatpush.bf16.msra.mxu3 %v2245_v54  ;;  %v2255_v55 = vld [vmem:[#allocation2 + $0x2a8] sm:$0xff] }
 0x6ee   :  { %v2244_v56 = vld [vmem:[#allocation2 + $0x248] sm:$0xff] }
 0x6ef   :  { %1055 = vmatmul.bf16.vlgmr.msrb.gmra.mxu2 %v885_v59  ;;  %v834_v60 = vsel %vm678_vm4, %v832_v57, %v833_v58  ;;  %v835_v61 = vsel %vm678_vm4, %v833_v58, %v832_v57  ;;  %1363 = vmatpush.bf16.msra.mxu0 %v2255_v55  ;;  %v2254_v57 = vld [vmem:[#allocation2 + $0x2a0] sm:$0xff]  ;;  %v2356_v58 = vld [vmem:[%s2658_s4 + $0xc] ss:$0 sm:$0xff] }
 0x6f0   :  { %v884_v62 = vpack.c.bf16 %v834_v60, %v835_v61  ;;  %v886_v63 = vpack.c.bf16 %v835_v61, %v834_v60  ;;  %1397 = vmatpush.bf16.msrb.mxu2 %v2259_v3 }
 0x6f1   :  { %1235 = vmatpush.bf16.msra.mxu3 %v2244_v56 }
 0x6f2   :  { %1041 = vmatmul.bf16.vlgmr.msrb.gmra.mxu3 %v884_v62  ;;  %1069 = vmatmul.bf16.vlgmr.msrb.gmra.mxu0 %v886_v63 }
 0x6f3   :  { %1364 = vmatpush.bf16.msra.mxu0 %v2254_v57 }
 0x6f4   :  { %1398 = vmatpush.bf16.msrb.mxu2 %v2258_v5 }
 0x6f5   :  { %1236 = vmatpush.bf16.msra.mxu3 %v2243_v8  ;;  %v2280_v8 = vld [vmem:[#allocation2 + $0x370] sm:$0xff] }
 0x6f9   :  { %1585 = vmatpush.bf16.msrb.mxu3 %v2275_v15 }
 0x6ff   :  { %2033 = vmatmul.msk.bf16.vlgmr.msra.gmra.mxu2 %vm1258_vm9, %v1246_v1 }
 0x76f   :  { %v1070_v11 = vpop.f32.mrf.mxu0 }
 0x772   :  { %v1056_v6 = vpop.f32.mrf.mxu2 }
 0x775   :  { %v1042_v9 = vpop.f32.mrf.mxu3 }
 0x776   :  { %v1043_v10 = vadd.f32 %v2353_v7, %v1042_v9 }
 0x777   :  { %v1072_v22 = vpop.f32.mrf.mxu0 }
 0x778   :  { %v1057_v12 = vadd.f32 %v1056_v6, %v1043_v10 }
 0x77a   :  { %v1071_v13 = vadd.f32 %v1070_v11, %v1057_v12  ;;  %v1058_v14 = vpop.f32.mrf.mxu2 }
 0x77c   :  { %v1075_v16 = vmul.f32 1.442695, %v1071_v13  ;;  %vm1081_vm11 = vcmp.gt.f32.partialorder %v1071_v13, 0.0 }
 0x77d   :  { %v1044_v17 = vpop.f32.mrf.mxu3 }
 0x77e   :  { %2384 = vpow2.f32 %v1075_v16  ;;  %v1045_v19 = vadd.f32 %v2353_v7, %v1044_v17  ;;  %v2262_v16 = vld [vmem:[#allocation2 + $0x2e0] sm:$0xff] }
 0x77f   :  { %v2274_v17 = vld [vmem:[#allocation2 + $0x340] sm:$0xff] }
 0x780   :  { %v1059_v21 = vadd.f32 %v1058_v14, %v1045_v19  ;;  %v2263_v14 = vld [vmem:[#allocation2 + $0x2e8] sm:$0xff]  ;;  %1586 = vmatpush.bf16.msrb.mxu3 %v2274_v17  ;;  %v2273_v19 = vld [vmem:[#allocation2 + $0x338] sm:$0xff] }
 0x781   :  { %1450 = vmatpush.bf16.msra.mxu1 %v2263_v14 }
 0x782   :  { %v1073_v24 = vadd.f32 %v1072_v22, %v1059_v21  ;;  %v1275_v25 = vpop.f32.mrf.mxu2  ;;  %v2272_v21 = vld [vmem:[#allocation2 + $0x330] sm:$0xff]  ;;  %v2271_v22 = vld [vmem:[#allocation2 + $0x328] sm:$0xff] }
 0x783   :  { %v1276_v26 = vadd.f32 %v2354_v20, %v1275_v25  ;;  %v2260_v20 = vld [vmem:[#allocation2 + $0x2d0] sm:$0xff]  ;;  %1531 = vmatpush.bf16.msrb.mxu0 %v2271_v22  ;;  %v2357_v25 = vld [vmem:[%s2658_s4 + $0xd] ss:$0 sm:$0xff] }
 0x784   :  { %v2385_v27 = vpop.eup %2384  ;;  %v1077_v28 = vmul.f32 1.442695, %v1073_v24  ;;  %vm1082_vm12 = vcmp.gt.f32.partialorder %v1073_v24, 0.0  ;;  %1587 = vmatpush.bf16.msrb.mxu3 %v2273_v19 }
 0x785   :  { %v1978_v30 = vadd.f32 -1.0, %v2385_v27  ;;  %v1283_v31 = vpack.c.bf16 %v1276_v26, %v1276_v26  ;;  %1451 = vmatpush.bf16.msra.mxu1 %v2262_v16  ;;  %v2268_v26 = vld [vmem:[#allocation2 + $0x310] sm:$0xff]  ;;  %v2359_v16 = vld [vmem:[%s2658_s4 + $0xa] ss:$0 sm:$0xff] }
 0x786   :  { %2386 = vpow2.f32 %v1077_v28 }
 0x787   :  { %2042 = vmatmul.msk.bf16.vlgmr.msrb.gmra.mxu1 %vm159_vm6, %v1283_v31  ;;  %2070 = vmatmul.msk.bf16.vlgmr.msrb.gmra.mxu2 %vm159_vm6, %v1283_v31  ;;  %v1083_v33 = vsel %vm1081_vm11, %v1071_v13, %v1978_v30  ;;  %vm1160_vm6 = vcmask 1040384  }
 0x788   :  { %v1135_v36 = vadd.f32 %v1130_v29, %v1083_v33  ;;  %1588 = vmatpush.bf16.msrb.mxu3 %v2272_v21  ;;  %1532 = vmatpush.bf16.msrb.mxu0 %v2270_v23 }
 0x789   :  { %1452 = vmatpush.bf16.msra.mxu1 %v2261_v18 }
 0x78a   :  { %v1277_v34 = vpop.f32.mrf.mxu2  ;;  %v1139_v42 = vadd.f32 %v2355_v37, %v1135_v36 }
 0x78b   :  { %v2358_v34 = vld [vmem:[%s2658_s4 + $0xe] ss:$0 sm:$0xff] }
 0x78c   :  { %v2387_v35 = vpop.eup %2386  ;;  %v1141_v44 = vrot.slane %v1139_v42, 4 }
 0x78d   :  { %v1979_v38 = vadd.f32 -1.0, %v2387_v35  ;;  %1453 = vmatpush.bf16.msra.mxu1 %v2260_v20 }
 0x78f   :  { %v1084_v40 = vsel %vm1082_vm12, %v1073_v24, %v1979_v38  ;;  %v2269_v24 = vld [vmem:[#allocation2 + $0x318] sm:$0xff] }
 0x790   :  { %v1136_v41 = vadd.f32 %v1132_v39, %v1084_v40  ;;  %1533 = vmatpush.bf16.msrb.mxu0 %v2269_v24  ;;  %v2267_v40 = vld [vmem:[#allocation2 + $0x308] sm:$0xff] }
 0x792   :  { %v1140_v43 = vadd.f32 %v2355_v37, %v1136_v41  ;;  %v2266_v41 = vld [vmem:[#allocation2 + $0x300] sm:$0xff] }
 0x794   :  { %v1142_v45 = vrot.slane %v1140_v43, 4  ;;  %1534 = vmatpush.bf16.msrb.mxu0 %v2268_v26 }
 0x796   :  { %v1143_v46 = vsel %vm678_vm4, %v1141_v44, %v1142_v45  ;;  %v1144_v47 = vsel %vm678_vm4, %v1142_v45, %v1141_v44  ;;  %v2283_v44 = vld [vmem:[#allocation2 + $0x388] sm:$0xff]  ;;  %v2282_v45 = vld [vmem:[#allocation2 + $0x380] sm:$0xff] }
 0x797   :  { %v1145_v48 = vmax.f32 %v1139_v42, %v1143_v46  ;;  %v1146_v49 = vmax.f32 %v1140_v43, %v1144_v47  ;;  %v2265_v42 = vld [vmem:[#allocation2 + $0x2f8] sm:$0xff]  ;;  %v2264_v43 = vld [vmem:[#allocation2 + $0x2f0] sm:$0xff]  ;;  %1665 = vmatpush.bf16.msra.mxu2 %v2283_v44  ;;  %v2360_v47 = vld [vmem:[%s2658_s4 + $0xf] ss:$0 sm:$0xff] }
 0x798   :  { %1535 = vmatpush.bf16.msrb.mxu0 %v2267_v40  ;;  %v2281_v46 = vld [vmem:[#allocation2 + $0x378] sm:$0xff] }
 0x799   :  { %v2340_v50 = vpack.i.bf16 %v1146_v49, %v1145_v48 }
 0x79b   :  { %2341 = vrot.lane.b32.xlu1 %v2340_v50, %s2425_s23  ;;  %1666 = vmatpush.bf16.msra.mxu2 %v2282_v45 }
 0x79c   :  { %1536 = vmatpush.bf16.msrb.mxu0 %v2266_v41 }
 0x79f   :  { %1667 = vmatpush.bf16.msra.mxu2 %v2281_v46 }
 0x7a0   :  { %1537 = vmatpush.bf16.msrb.mxu0 %v2265_v42 }
 0x7a3   :  { %1668 = vmatpush.bf16.msra.mxu2 %v2280_v8 }
 0x7a4   :  { %1538 = vmatpush.bf16.msrb.mxu0 %v2264_v43 }
 0x804   :  { %v1310_v59 = vpop.f32.mrf.mxu1 }
 0x805   :  { %v1311_v60 = vadd.f32 %v2356_v58, %v1310_v59  ;;  %v2279_v58 = vld [vmem:[#allocation2 + $0x368] sm:$0xff]  ;;  %v2278_v59 = vld [vmem:[#allocation2 + $0x360] sm:$0xff] }
 0x806   :  { %1669 = vmatpush.bf16.msra.mxu2 %v2279_v58 }
 0x807   :  { %v1314_v61 = vmul.f32 1.442695, %v1311_v60  ;;  %vm1317_vm13 = vcmp.gt.f32.partialorder %v1311_v60, 0.0 }
 0x809   :  { %2388 = vpow2.f32 %v1314_v61  ;;  %v2276_v61 = vld [vmem:[#allocation2 + $0x350] sm:$0xff] }
 0x80a   :  { %v1400_v62 = vpop.f32.mrf.mxu2  ;;  %1670 = vmatpush.bf16.msra.mxu2 %v2278_v59 }
 0x80c   :  { %v1312_v63 = vpop.f32.mrf.mxu1 }
 0x80d   :  { %v2342_v0 = vpop.permute.xlu1 %2341 }
 0x80e   :  { %v2344_v1 = vunpack.i.h.bf16 %v2342_v0  ;;  %v2343_v2 = vunpack.i.l.bf16 %v2342_v0 }
 0x80f   :  { %v2389_v3 = vpop.eup %2388 }
 0x810   :  { %v2043_v4 = vadd.f32 -1.0, %v2389_v3  ;;  %v1156_v5 = vsel %vm243_vm10, %v2343_v2, %v1146_v49  ;;  %v1151_v9 = vsel %vm243_vm10, %v1145_v48, %v2344_v1 }
 0x811   :  { %v1158_v6 = vrot.slane %v1156_v5, 7  ;;  %v2362_v5 = vld [vmem:[%s2658_s4 + $0x11] ss:$0 sm:$0xff] }
 0x812   :  { %v1318_v7 = vsel %vm1317_vm13, %v1311_v60, %v2043_v4  ;;  %v1402_v10 = vpop.f32.mrf.mxu2  ;;  %v2277_v60 = vld [vmem:[#allocation2 + $0x358] sm:$0xff] }
 0x813   :  { %v1327_v11 = vpack.c.bf16 %v1318_v7, %v1318_v7  ;;  %v1161_v12 = vsel %vm1160_vm6, %v1151_v9, %v1158_v6  ;;  %1671 = vmatpush.bf16.msra.mxu2 %v2277_v60 }
 0x814   :  { %v1178_v13 = vpack.c.bf16 %v1161_v12, %v1161_v12 }
 0x815   :  { %2060 = vmatmul.msk.bf16.vlgmr.msra.gmra.mxu0 %vm243_vm10, %v1327_v11  ;;  %v2363_v11 = vld [vmem:[%s2658_s4 + $0x12] ss:$0 sm:$0xff] }
 0x816   :  { %1237 = vmatmul.bf16.vlgmr.msra.gmra.mxu3 %v1178_v13 }
 0x817   :  { %1672 = vmatpush.bf16.msra.mxu2 %v2276_v61 }
 0x892   :  { %v1366_v27 = vpop.f32.mrf.mxu0 }
 0x893   :  { %v1367_v28 = vadd.f32 %v2357_v25, %v1366_v27 }
 0x895   :  { %v1370_v29 = vmul.f32 1.442695, %v1367_v28  ;;  %vm1373_vm14 = vcmp.gt.f32.partialorder %v1367_v28, 0.0 }
 0x897   :  { %2390 = vpow2.f32 %v1370_v29 }
 0x899   :  { %v2628_v30 = vpop.f32.mrf.mxu3 }
 0x89a   :  { %v1368_v31 = vpop.f32.mrf.mxu0  ;;  %v1239_v19 = vadd.f32 %v2359_v16, %v2628_v30 }
 0x89d   :  { %v2391_v32 = vpop.eup %2390 }
 0x89e   :  { %v2061_v33 = vadd.f32 -1.0, %v2391_v32 }
 0x8a0   :  { %v1374_v35 = vsel %vm1373_vm14, %v1367_v28, %v2061_v33 }
 0x8a1   :  { %v1404_v36 = vadd.f32 %v1400_v62, %v1374_v35  ;;  %v1240_v37 = vpop.f32.mrf.mxu3  ;;  %v2361_v62 = vld [vmem:[%s2658_s4 + $0x10] ss:$0 sm:$0xff] }
 0x8a3   :  { %v1407_v38 = vadd.f32 %v2358_v34, %v1404_v36 }
 0x8a5   :  { %v1416_v39 = vpack.c.bf16 %v1407_v38, %v1407_v38 }
 0x8a7   :  { %2087 = vmatmul.msk.bf16.vlgmr.msra.gmra.mxu1 %vm243_vm10, %v1416_v39  ;;  %2138 = vmatmul.msk.bf16.vlgmr.msrb.gmra.mxu3 %vm243_vm10, %v1416_v39 }
 0x924   :  { %v1455_v48 = vpop.f32.mrf.mxu1 }
 0x925   :  { %v1456_v49 = vadd.f32 %v2360_v47, %v1455_v48 }
 0x927   :  { %v1459_v50 = vmul.f32 1.442695, %v1456_v49  ;;  %vm1462_vm10 = vcmp.gt.f32.partialorder %v1456_v49, 0.0 }
 0x929   :  { %2392 = vpow2.f32 %v1459_v50 }
 0x92a   :  { %v1590_v51 = vpop.f32.mrf.mxu3 }
 0x92c   :  { %v1457_v52 = vpop.f32.mrf.mxu1 }
 0x92f   :  { %v2393_v53 = vpop.eup %2392 }
 0x930   :  { %v2088_v54 = vadd.f32 -1.0, %v2393_v53 }
 0x932   :  { %v1463_v55 = vsel %vm1462_vm10, %v1456_v49, %v2088_v54  ;;  %v1592_v56 = vpop.f32.mrf.mxu3 }
 0x933   :  { %v1480_v57 = vpack.c.bf16 %v1463_v55, %v1463_v55 }
 0x935   :  { %1539 = vmatmul.bf16.vlgmr.msrb.gmra.mxu0 %v1480_v57 }
 0x9b2   :  { %v1540_v63 = vpop.f32.mrf.mxu0 }
 0x9b3   :  { %v1541_v0 = vadd.f32 %v2361_v62, %v1540_v63 }
 0x9b5   :  { %v1544_v1 = vmul.f32 1.442695, %v1541_v0  ;;  %vm1547_vm15 = vcmp.gt.f32.partialorder %v1541_v0, 0.0 }
 0x9b7   :  { %2394 = vpow2.f32 %v1544_v1 }
 0x9ba   :  { %v1542_v2 = vpop.f32.mrf.mxu0 }
 0x9bd   :  { %v2395_v3 = vpop.eup %2394 }
 0x9be   :  { %v2121_v4 = vadd.f32 -1.0, %v2395_v3 }
 0x9c0   :  { %v1548_v6 = vsel %vm1547_vm15, %v1541_v0, %v2121_v4 }
 0x9c1   :  { %v1594_v7 = vadd.f32 %v1590_v51, %v1548_v6 }
 0x9c3   :  { %v1597_v9 = vadd.f32 %v2362_v5, %v1594_v7 }
 0x9c5   :  { %v1614_v10 = vpack.c.bf16 %v1597_v9, %v1597_v9 }
 0x9c7   :  { %1673 = vmatmul.bf16.vlgmr.msra.gmra.mxu2 %v1614_v10 }
 0xa4a   :  { %v1674_v12 = vpop.f32.mrf.mxu2 }
 0xa4b   :  { %v1675_v13 = vadd.f32 %v2363_v11, %v1674_v12 }
 0xa4d   :  { %v1678_v14 = vmul.f32 1.442695, %v1675_v13  ;;  %vm1681_vm0 = vcmp.gt.f32.partialorder %v1675_v13, 0.0 }
 0xa4f   :  { %2396 = vpow2.f32 %v1678_v14 }
 0xa52   :  { %v1676_v15 = vpop.f32.mrf.mxu2 }
 0xa55   :  { %v2397_v17 = vpop.eup %2396 }
 0xa56   :  { %v2171_v18 = vadd.f32 -1.0, %v2397_v17 }
 0xa58   :  { %v1682_v20 = vsel %vm1681_vm0, %v1675_v13, %v2171_v18 }
 0xa59   :  { %v1683_v21 = vadd.f32 %v1682_v20, %v1239_v19 }
 0xa5b   :  { %1685 = vst.msk [vmem:[%s2659_s5] sm:$0x3] %vm1684_vm1, %v1683_v21 }
 0xa5c   :  { %1690 = vsyncpa [#allocation3], 1 }

// kernel: fwd.1
= control target key start
LH: loop header
LB: loop body
LE: loop exit
PB: predicated region body
PF: predicated region fallthrough
CT: control target
= control target key end

     0   :  { %10 = vsyncpa [#allocation3], 0  ;;  %s2464_s21 = smov [#allocation2]   ;;  %s2465_s23 = smov 64   ;;  %s2659_s0 = inlined_call_operand.vmem [shape: f32[16,8], index: 0, kind: input, shape index: {}]   ;;  %s2660_s1 = inlined_call_operand.vmem [shape: f32[2,20], index: 1, kind: input, shape index: {}]   ;;  %s2661_s2 = inlined_call_operand.vmem [shape: f32[8,8], index: 2, kind: input, shape index: {}]   ;;  %s2662_s3 = inlined_call_operand.hbm [shape: bf16[1824,128], index: 3, kind: input, shape index: {}]   ;;  %s2663_s4 = inlined_call_operand.vmem [shape: f32[19,128], index: 4, kind: input, shape index: {}]   ;;  %s2664_s5 = inlined_call_operand.vmem [shape: f32[2,16], index: 5, kind: output, shape index: {}]  }
   0x1   :  { %s21_s20 = sshll.u32 %s2662_s3, 4  ;;  %s23_s22 = sshll.u32 %s2464_s21, 4  ;;  %s22_s20 = int_to_ptr.hbm [resolvable:$true] %s21_s20  ;;  %s24_s22 = int_to_ptr.vmem [resolvable:$true] %s23_s22 }
   0x2   :  { %s2466_s24 = smov 4  }
   0x3   :  { %29 = dma.hbm_to_vmem [thread:$0]  %s22_s20, 14592, %s24_s22, [#allocation3], %s2465_s23, %s2465_s23, %s2466_s24  }
   0x4   :  { %2462 = dma.done.wait [#allocation3], 14592  }
   0x5   :  { %2463 = vsyncadd [#allocation3], 4294952704  ;;  %v39_v0 = vld [vmem:[%s2661_s2] sm:$0xff]  ;;  %vm46_vm0 = vcmask 1043456   ;;  %v38_v2 = vld [vmem:[%s2659_s0 + $0x8] sm:$0xff]  ;;  %vm42_vm1 = vcmask 64512  }
   0x6   :  { %v37_v1 = vld [vmem:[%s2659_s0] sm:$0xff]  ;;  %v40_v3 = vpack.c.bf16 %v39_v0, %v39_v0  ;;  %s2467_s2 = smov 8   ;;  %vm74_vm2 = vcmask 1046528   ;;  %s2468_s0 = smov 16   ;;  %v101_v14 = vld [vmem:[#allocation2 + $0x8] sm:$0xf] }
   0x7   :  { %v41_v5 = vpack.c.bf16 %v38_v2, %v37_v1  ;;  %v110_v15 = vunpack.c.l.b16 %v101_v14  ;;  %v2212_v18 = vld [vmem:[#allocation2] sm:$0xff]  ;;  %vm68_vm3 = vcmask 1040384   ;;  %vm96_vm4 = vcmask 130048   ;;  %v2222_v34 = vld [vmem:[#allocation2 + $0x58] sm:$0xff]  ;;  %s2469_s7 = smov 32   ;;  %v2213_v53 = vld [vmem:[#allocation2 + $0x10] sm:$0xff] }
   0x8   :  { %v48_v4 = vsel %vm46_vm0, %v40_v3, 0  ;;  %vm114_vm5 = vcmask 195584   ;;  %354 = vmatpush.bf16.msra.mxu0 %v2222_v34  ;;  %v2215_v35 = vld [vmem:[#allocation2 + $0x20] sm:$0xff]  ;;  %v2214_v52 = vld [vmem:[#allocation2 + $0x18] sm:$0xff]  ;;  %vm165_vm6 = vcmask 261120   ;;  %vm195_vm7 = vcmask 392192  }
   0x9   :  { %57 = vmatpush.bf16.msra.mxu3 %v48_v4  ;;  %v112_v16 = vpack.c.b16 %v110_v15, %v110_v15  ;;  %v2385_v37 = vld [vmem:[%s2663_s4] ss:$0 sm:$0xff]  ;;  %v2386_v1 = vld [vmem:[%s2663_s4 + $0x1] ss:$0 sm:$0xff]  ;;  %v2221_v4 = vld [vmem:[#allocation2 + $0x50] sm:$0xff]  ;;  %vm253_vm10 = vcmask 523264  }
   0xa   :  { %vm307_vm11 = vcmask 785408   ;;  %vm388_vm14 = vcmask 1045504   ;;  %vm382_vm15 = vcmask 1041408  }
   0xb   :  { %v119_v17 = vsel %vm46_vm0, %v112_v16, 0 }
   0xc   :  { %1731 = vmatmul.msk.bf16.vlgmr.msra.gmra.mxu3 %vm42_vm1, %v41_v5  ;;  %127 = vmatpush.bf16.msra.mxu1 %v119_v17 }
   0xd   :  { %313 = vmatpush.bf16.msrb.mxu3 %v2221_v4 }
  0x10   :  { %128 = vmatpush.bf16.msra.mxu1 %v2212_v18 }
  0x14   :  { %204 = vmatpush.bf16.msrb.mxu1 %v2215_v35 }
  0x18   :  { %205 = vmatpush.bf16.msrb.mxu1 %v2214_v52 }
  0x1c   :  { %206 = vmatpush.bf16.msrb.mxu1 %v2213_v53  ;;  %v2226_v53 = vld [vmem:[#allocation2 + $0x78] sm:$0xff] }
  0x8f   :  { %v59_v6 = vpop.f32.mrf.mxu3 }
  0x90   :  { %v75_v10 = vrot.slane %v59_v6, 1  ;;  %v69_v23 = vrot.slane %v59_v6, 7 }
  0x97   :  { %v61_v7 = vpop.f32.mrf.mxu3 }
  0x98   :  { %v2330_v8 = vpack.i.bf16 %v61_v7, %v59_v6  ;;  %v76_v9 = vrot.slane %v61_v7, 1  ;;  %v65_v20 = vrot.slane %v61_v7, 7  ;;  %v2220_v6 = vld [vmem:[#allocation2 + $0x48] sm:$0xff]  ;;  %v2219_v7 = vld [vmem:[#allocation2 + $0x40] sm:$0xff] }
  0x99   :  { %314 = vmatpush.bf16.msrb.mxu3 %v2220_v6 }
  0x9a   :  { %2331 = vrot.lane.b32.xlu0 %v2330_v8, %s2467_s2  ;;  %v77_v11 = vsel %vm74_vm2, %v75_v10, %v76_v9  ;;  %v80_v12 = vsel %vm74_vm2, %v76_v9, %v75_v10  ;;  %v70_v25 = vsel %vm68_vm3, %v69_v23, %v65_v20  ;;  %v73_v26 = vsel %vm68_vm3, %v65_v20, %v69_v23 }
  0x9b   :  { %v2335_v13 = vpack.i.bf16 %v80_v12, %v77_v11 }
  0x9d   :  { %315 = vmatpush.bf16.msrb.mxu3 %v2219_v7 }
  0xa2   :  { %2336 = vrot.lane.b32.xlu0 %v2335_v13, %s2468_s0 }
 0x10c   :  { %v2332_v19 = vpop.permute.xlu0 %2331 }
 0x10d   :  { %v2334_v21 = vunpack.i.h.bf16 %v2332_v19  ;;  %v2333_v22 = vunpack.i.l.bf16 %v2332_v19 }
 0x10f   :  { %v94_v29 = vsel %vm42_vm1, %v73_v26, %v2333_v22  ;;  %v95_v30 = vsel %vm42_vm1, %v70_v25, %v2334_v21 }
 0x114   :  { %v2337_v24 = vpop.permute.xlu0 %2336 }
 0x115   :  { %v2339_v27 = vunpack.i.h.bf16 %v2337_v24  ;;  %v2338_v28 = vunpack.i.l.bf16 %v2337_v24 }
 0x117   :  { %v97_v31 = vsel %vm96_vm4, %v94_v29, %v2338_v28  ;;  %v98_v32 = vsel %vm96_vm4, %v95_v30, %v2339_v27  ;;  %v2218_v27 = vld [vmem:[#allocation2 + $0x38] sm:$0xff]  ;;  %v2217_v28 = vld [vmem:[#allocation2 + $0x30] sm:$0xff]  ;;  %v2216_v29 = vld [vmem:[#allocation2 + $0x28] sm:$0xff] }
 0x118   :  { %v102_v33 = vpack.c.bf16 %v98_v32, %v97_v31  ;;  %316 = vmatpush.bf16.msrb.mxu3 %v2218_v27 }
 0x11a   :  { %1736 = vmatmul.msk.bf16.vlgmr.msra.gmra.mxu1 %vm114_vm5, %v102_v33 }
 0x11c   :  { %317 = vmatpush.bf16.msrb.mxu3 %v2217_v28 }
 0x120   :  { %318 = vmatpush.bf16.msrb.mxu3 %v2216_v29 }
 0x197   :  { %v130_v36 = vpop.f32.mrf.mxu1 }
 0x198   :  { %v131_v38 = vadd.f32 %v2385_v37, %v130_v36 }
 0x19a   :  { %v139_v41 = vrot.slane %v131_v38, 7  ;;  %v144_v47 = vrot.slane %v131_v38, 1 }
 0x19f   :  { %v132_v39 = vpop.f32.mrf.mxu1 }
 0x1a0   :  { %v133_v40 = vadd.f32 %v2385_v37, %v132_v39 }
 0x1a2   :  { %v136_v42 = vrot.slane %v133_v40, 7  ;;  %v2340_v43 = vpack.i.bf16 %v133_v40, %v131_v38  ;;  %v337_v44 = vpack.c.bf16 %v133_v40, %v131_v38  ;;  %v145_v45 = vrot.slane %v133_v40, 1 }
 0x1a4   :  { %2341 = vrot.lane.b32.xlu1 %v2340_v43, %s2468_s0  ;;  %1783 = vmatmul.msk.bf16.vlgmr.msra.gmra.mxu0 %vm96_vm4, %v337_v44  ;;  %v140_v46 = vsel %vm68_vm3, %v139_v41, %v136_v42  ;;  %v143_v48 = vsel %vm68_vm3, %v136_v42, %v139_v41  ;;  %v146_v49 = vsel %vm74_vm2, %v144_v47, %v145_v45  ;;  %v2242_v41 = vld [vmem:[#allocation2 + $0xf8] sm:$0xff]  ;;  %v2387_v42 = vld [vmem:[%s2663_s4 + $0x2] ss:$0 sm:$0xff]  ;;  %v2241_v43 = vld [vmem:[#allocation2 + $0xf0] sm:$0xff] }
 0x1a5   :  { %v149_v50 = vsel %vm74_vm2, %v145_v45, %v144_v47  ;;  %681 = vmatpush.bf16.msra.mxu3 %v2242_v41  ;;  %v2228_v47 = vld [vmem:[#allocation2 + $0x88] sm:$0xff] }
 0x1a6   :  { %v2345_v51 = vpack.i.bf16 %v149_v50, %v146_v49  ;;  %468 = vmatpush.bf16.msra.mxu1 %v2228_v47  ;;  %v2232_v47 = vld [vmem:[#allocation2 + $0xa8] sm:$0xff] }
 0x1a9   :  { %682 = vmatpush.bf16.msra.mxu3 %v2241_v43 }
 0x1ac   :  { %2346 = vrot.lane.b32.xlu1 %v2345_v51, %s2469_s7 }
 0x216   :  { %v2342_v54 = vpop.permute.xlu1 %2341 }
 0x217   :  { %v2344_v55 = vunpack.i.h.bf16 %v2342_v54  ;;  %v2343_v56 = vunpack.i.l.bf16 %v2342_v54 }
 0x219   :  { %v163_v60 = vsel %vm96_vm4, %v143_v48, %v2343_v56  ;;  %v164_v61 = vsel %vm96_vm4, %v140_v46, %v2344_v55  ;;  %v2227_v48 = vld [vmem:[#allocation2 + $0x80] sm:$0xff]  ;;  %v2225_v56 = vld [vmem:[#allocation2 + $0x70] sm:$0xff] }
 0x21a   :  { %469 = vmatpush.bf16.msra.mxu1 %v2227_v48 }
 0x21e   :  { %v2347_v57 = vpop.permute.xlu1 %2346  ;;  %470 = vmatpush.bf16.msra.mxu1 %v2226_v53 }
 0x21f   :  { %v2349_v58 = vunpack.i.h.bf16 %v2347_v57  ;;  %v2348_v59 = vunpack.i.l.bf16 %v2347_v57 }
 0x221   :  { %v166_v62 = vsel %vm165_vm6, %v163_v60, %v2348_v59  ;;  %v167_v63 = vsel %vm165_vm6, %v164_v61, %v2349_v58  ;;  %v356_v54 = vpop.f32.mrf.mxu0  ;;  %v2388_v60 = vld [vmem:[%s2663_s4 + $0x3] ss:$0 sm:$0xff] }
 0x222   :  { %v174_v0 = vpack.c.bf16 %v167_v63, %v166_v62  ;;  %471 = vmatpush.bf16.msra.mxu1 %v2225_v56 }
 0x224   :  { %1749 = vmatmul.msk.bf16.vlgmr.msrb.gmra.mxu1 %vm195_vm7, %v174_v0 }
 0x229   :  { %v358_v62 = vpop.f32.mrf.mxu0 }
 0x2a1   :  { %v208_v2 = vpop.f32.mrf.mxu1 }
 0x2a2   :  { %v209_v3 = vadd.f32 %v2386_v1, %v208_v2 }
 0x2a4   :  { %v213_v5 = vmul.f32 1.442695, %v209_v3  ;;  %vm219_vm8 = vcmp.gt.f32.partialorder %v209_v3, 0.0 }
 0x2a6   :  { %2404 = vpow2.f32 %v213_v5 }
 0x2a9   :  { %v210_v8 = vpop.f32.mrf.mxu1 }
 0x2aa   :  { %v211_v9 = vadd.f32 %v2386_v1, %v210_v8 }
 0x2ac   :  { %v215_v10 = vmul.f32 1.442695, %v211_v9  ;;  %v2405_v11 = vpop.eup %2404  ;;  %vm220_vm9 = vcmp.gt.f32.partialorder %v211_v9, 0.0 }
 0x2ad   :  { %v1750_v12 = vadd.f32 -1.0, %v2405_v11 }
 0x2ae   :  { %2406 = vpow2.f32 %v215_v10 }
 0x2af   :  { %v221_v15 = vsel %vm219_vm8, %v209_v3, %v1750_v12 }
 0x2b0   :  { %v227_v19 = vrot.slane %v221_v15, 7  ;;  %v232_v23 = vrot.slane %v221_v15, 1 }
 0x2b4   :  { %v2407_v13 = vpop.eup %2406 }
 0x2b5   :  { %v1751_v14 = vadd.f32 -1.0, %v2407_v13 }
 0x2b7   :  { %v222_v16 = vsel %vm220_vm9, %v211_v9, %v1751_v14  ;;  %vm1299_vm9 = vcmask 162816  }
 0x2b8   :  { %v224_v17 = vrot.slane %v222_v16, 7  ;;  %v2350_v18 = vpack.i.bf16 %v222_v16, %v221_v15  ;;  %v233_v20 = vrot.slane %v222_v16, 1 }
 0x2ba   :  { %2351 = vrot.lane.b32.xlu2 %v2350_v18, %s2469_s7  ;;  %v228_v21 = vsel %vm68_vm3, %v227_v19, %v224_v17  ;;  %v231_v22 = vsel %vm68_vm3, %v224_v17, %v227_v19  ;;  %v234_v24 = vsel %vm74_vm2, %v232_v23, %v233_v20  ;;  %v237_v25 = vsel %vm74_vm2, %v233_v20, %v232_v23  ;;  %v2224_v20 = vld [vmem:[#allocation2 + $0x68] sm:$0xff] }
 0x2bb   :  { %v2355_v26 = vpack.i.bf16 %v237_v25, %v234_v24  ;;  %472 = vmatpush.bf16.msra.mxu1 %v2224_v20  ;;  %v2250_v20 = vld [vmem:[#allocation2 + $0x138] sm:$0xff] }
 0x2c2   :  { %2356 = vrot.lane.b32.xlu2 %v2355_v26, %s2465_s23 }
 0x314   :  { %v2352_v30 = vpop.permute.xlu2 %2351 }
 0x315   :  { %v2354_v31 = vunpack.i.h.bf16 %v2352_v30  ;;  %v2353_v32 = vunpack.i.l.bf16 %v2352_v30 }
 0x317   :  { %v251_v36 = vsel %vm165_vm6, %v231_v22, %v2353_v32  ;;  %v252_v37 = vsel %vm165_vm6, %v228_v21, %v2354_v31  ;;  %v2223_v21 = vld [vmem:[#allocation2 + $0x60] sm:$0xff] }
 0x318   :  { %473 = vmatpush.bf16.msra.mxu1 %v2223_v21 }
 0x31c   :  { %v2357_v33 = vpop.permute.xlu2 %2356  ;;  %826 = vmatpush.bf16.msrb.mxu1 %v2250_v20  ;;  %v2265_v20 = vld [vmem:[#allocation2 + $0x1b0] sm:$0xff] }
 0x31d   :  { %v2359_v34 = vunpack.i.h.bf16 %v2357_v33  ;;  %v2358_v35 = vunpack.i.l.bf16 %v2357_v33  ;;  %v2240_v33 = vld [vmem:[#allocation2 + $0xe8] sm:$0xff] }
 0x31e   :  { %635 = vmatpush.bf16.msrb.mxu0 %v2240_v33 }
 0x31f   :  { %v254_v38 = vsel %vm253_vm10, %v251_v36, %v2358_v35  ;;  %v255_v39 = vsel %vm253_vm10, %v252_v37, %v2359_v34  ;;  %v2239_v34 = vld [vmem:[#allocation2 + $0xe0] sm:$0xff]  ;;  %v2238_v35 = vld [vmem:[#allocation2 + $0xd8] sm:$0xff]  ;;  %v2237_v36 = vld [vmem:[#allocation2 + $0xd0] sm:$0xff] }
 0x320   :  { %v268_v40 = vpack.c.bf16 %v255_v39, %v254_v38  ;;  %v2236_v37 = vld [vmem:[#allocation2 + $0xc8] sm:$0xff]  ;;  %v2389_v38 = vld [vmem:[%s2663_s4 + $0x4] ss:$0 sm:$0xff] }
 0x321   :  { %617 = vmatpush.bf16.msra.mxu2 %v2236_v37  ;;  %v2235_v39 = vld [vmem:[#allocation2 + $0xc0] sm:$0xff] }
 0x322   :  { %1776 = vmatmul.msk.bf16.vlgmr.msrb.gmra.mxu3 %vm307_vm11, %v268_v40  ;;  %636 = vmatpush.bf16.msrb.mxu0 %v2239_v34 }
 0x325   :  { %618 = vmatpush.bf16.msra.mxu2 %v2235_v39 }
 0x326   :  { %637 = vmatpush.bf16.msrb.mxu0 %v2238_v35  ;;  %v2391_v35 = vld [vmem:[%s2663_s4 + $0x6] ss:$0 sm:$0xff] }
 0x32a   :  { %638 = vmatpush.bf16.msrb.mxu0 %v2237_v36  ;;  %v2246_v36 = vld [vmem:[#allocation2 + $0x118] sm:$0xff] }
 0x3a5   :  { %v320_v44 = vpop.f32.mrf.mxu3 }
 0x3a6   :  { %v321_v45 = vadd.f32 %v2387_v42, %v320_v44  ;;  %v2233_v44 = vld [vmem:[#allocation2 + $0xb0] sm:$0xff] }
 0x3a8   :  { %v325_v46 = vmul.f32 1.442695, %v321_v45  ;;  %vm331_vm12 = vcmp.gt.f32.partialorder %v321_v45, 0.0 }
 0x3aa   :  { %2408 = vpow2.f32 %v325_v46 }
 0x3ad   :  { %v322_v49 = vpop.f32.mrf.mxu3 }
 0x3ae   :  { %v323_v50 = vadd.f32 %v2387_v42, %v322_v49  ;;  %v2234_v42 = vld [vmem:[#allocation2 + $0xb8] sm:$0xff] }
 0x3af   :  { %619 = vmatpush.bf16.msra.mxu2 %v2234_v42  ;;  %v2245_v42 = vld [vmem:[#allocation2 + $0x110] sm:$0xff] }
 0x3b0   :  { %v2409_v51 = vpop.eup %2408  ;;  %v327_v52 = vmul.f32 1.442695, %v323_v50  ;;  %vm332_vm13 = vcmp.gt.f32.partialorder %v323_v50, 0.0 }
 0x3b1   :  { %v1777_v55 = vadd.f32 -1.0, %v2409_v51 }
 0x3b2   :  { %2410 = vpow2.f32 %v327_v52  ;;  %v2230_v52 = vld [vmem:[#allocation2 + $0x98] sm:$0xff] }
 0x3b3   :  { %v333_v57 = vsel %vm331_vm12, %v321_v45, %v1777_v55  ;;  %620 = vmatpush.bf16.msra.mxu2 %v2233_v44 }
 0x3b4   :  { %v361_v59 = vadd.f32 %v356_v54, %v333_v57 }
 0x3b6   :  { %v365_v0 = vadd.f32 %v2388_v60, %v361_v59 }
 0x3b7   :  { %621 = vmatpush.bf16.msra.mxu2 %v2232_v47 }
 0x3b8   :  { %v2411_v58 = vpop.eup %2410  ;;  %v369_v3 = vrot.slane %v365_v0, 1 }
 0x3b9   :  { %v1778_v61 = vadd.f32 -1.0, %v2411_v58 }
 0x3bb   :  { %v334_v63 = vsel %vm332_vm13, %v323_v50, %v1778_v61  ;;  %v2231_v50 = vld [vmem:[#allocation2 + $0xa0] sm:$0xff] }
 0x3bc   :  { %v362_v1 = vadd.f32 %v358_v62, %v334_v63  ;;  %622 = vmatpush.bf16.msra.mxu2 %v2231_v50 }
 0x3be   :  { %v366_v2 = vadd.f32 %v2388_v60, %v362_v1 }
 0x3c0   :  { %v370_v4 = vrot.slane %v366_v2, 1  ;;  %623 = vmatpush.bf16.msra.mxu2 %v2230_v52 }
 0x3c2   :  { %v375_v5 = vsel %vm74_vm2, %v370_v4, %v369_v3  ;;  %v371_v6 = vsel %vm74_vm2, %v369_v3, %v370_v4  ;;  %v2229_v3 = vld [vmem:[#allocation2 + $0x90] sm:$0xff] }
 0x3c3   :  { %v377_v7 = vmax.f32 %v366_v2, %v375_v5  ;;  %v376_v8 = vmax.f32 %v365_v0, %v371_v6 }
 0x3c4   :  { %624 = vmatpush.bf16.msra.mxu2 %v2229_v3 }
 0x3c5   :  { %v2360_v9 = vpack.i.bf16 %v377_v7, %v376_v8  ;;  %v659_v10 = vpack.c.bf16 %v377_v7, %v376_v8  ;;  %v389_v11 = vrot.slane %v376_v8, 2  ;;  %v390_v12 = vrot.slane %v377_v7, 2 }
 0x3c6   :  { %v379_v13 = vrot.slane %v377_v7, 6  ;;  %v383_v14 = vrot.slane %v376_v8, 6 }
 0x3c7   :  { %2361 = vrot.lane.b32.xlu0 %v2360_v9, %s2469_s7  ;;  %1870 = vmatmul.msk.bf16.vlgmr.msra.gmra.mxu3 %vm165_vm6, %v659_v10  ;;  %v391_v15 = vsel %vm388_vm14, %v389_v11, %v390_v12  ;;  %v394_v16 = vsel %vm388_vm14, %v390_v12, %v389_v11  ;;  %v2254_v10 = vld [vmem:[#allocation2 + $0x158] sm:$0xff]  ;;  %v2253_v11 = vld [vmem:[#allocation2 + $0x150] sm:$0xff]  ;;  %v2390_v12 = vld [vmem:[%s2663_s4 + $0x5] ss:$0 sm:$0xff] }
 0x3c8   :  { %v2365_v17 = vpack.i.bf16 %v394_v16, %v391_v15  ;;  %v384_v18 = vsel %vm382_vm15, %v383_v14, %v379_v13  ;;  %v387_v19 = vsel %vm382_vm15, %v379_v13, %v383_v14  ;;  %844 = vmatpush.bf16.msra.mxu0 %v2254_v10  ;;  %v2252_v13 = vld [vmem:[#allocation2 + $0x148] sm:$0xff]  ;;  %v2277_v10 = vld [vmem:[#allocation2 + $0x210] sm:$0xff] }
 0x3ca   :  { %2366 = vrot.lane.b32.xlu1 %v2365_v17, %s2465_s23  ;;  %v2251_v17 = vld [vmem:[#allocation2 + $0x140] sm:$0xff] }
 0x3cc   :  { %845 = vmatpush.bf16.msra.mxu0 %v2253_v11  ;;  %v2268_v11 = vld [vmem:[#allocation2 + $0x1c8] sm:$0xff] }
 0x3d0   :  { %846 = vmatpush.bf16.msra.mxu0 %v2252_v13  ;;  %v2276_v13 = vld [vmem:[#allocation2 + $0x208] sm:$0xff] }
 0x3d4   :  { %847 = vmatpush.bf16.msra.mxu0 %v2251_v17  ;;  %v2266_v17 = vld [vmem:[#allocation2 + $0x1b8] sm:$0xff] }
 0x439   :  { %v2362_v22 = vpop.permute.xlu0 %2361 }
 0x43a   :  { %v2364_v23 = vunpack.i.h.bf16 %v2362_v22  ;;  %v2363_v24 = vunpack.i.l.bf16 %v2362_v22 }
 0x43c   :  { %v2367_v25 = vpop.permute.xlu1 %2366  ;;  %v408_v28 = vsel %vm165_vm6, %v387_v19, %v2363_v24  ;;  %v409_v29 = vsel %vm165_vm6, %v384_v18, %v2364_v23  ;;  %v2249_v23 = vld [vmem:[#allocation2 + $0x130] sm:$0xff] }
 0x43d   :  { %v2369_v26 = vunpack.i.h.bf16 %v2367_v25  ;;  %v2368_v27 = vunpack.i.l.bf16 %v2367_v25  ;;  %827 = vmatpush.bf16.msrb.mxu1 %v2249_v23  ;;  %v2264_v23 = vld [vmem:[#allocation2 + $0x1a8] sm:$0xff] }
 0x43f   :  { %v410_v30 = vsel %vm253_vm10, %v408_v28, %v2368_v27  ;;  %v411_v31 = vsel %vm253_vm10, %v409_v29, %v2369_v26  ;;  %v2248_v28 = vld [vmem:[#allocation2 + $0x128] sm:$0xff] }
 0x440   :  { %v424_v32 = vpack.c.bf16 %v411_v31, %v410_v30  ;;  %v2247_v31 = vld [vmem:[#allocation2 + $0x120] sm:$0xff] }
 0x441   :  { %828 = vmatpush.bf16.msrb.mxu1 %v2248_v28  ;;  %v2271_v28 = vld [vmem:[#allocation2 + $0x1e0] sm:$0xff] }
 0x442   :  { %1808 = vmatmul.msk.bf16.vlgmr.msra.gmra.mxu1 %vm307_vm11, %v424_v32 }
 0x445   :  { %829 = vmatpush.bf16.msrb.mxu1 %v2247_v31  ;;  %v2392_v31 = vld [vmem:[%s2663_s4 + $0x7] ss:$0 sm:$0xff] }
 0x449   :  { %830 = vmatpush.bf16.msrb.mxu1 %v2246_v36 }
 0x44a   :  { %v684_v29 = vpop.f32.mrf.mxu3 }
 0x44d   :  { %831 = vmatpush.bf16.msrb.mxu1 %v2245_v42 }
 0x4bf   :  { %v475_v40 = vpop.f32.mrf.mxu1 }
 0x4c0   :  { %v476_v41 = vadd.f32 %v2389_v38, %v475_v40 }
 0x4c2   :  { %v480_v43 = vmul.f32 1.442695, %v476_v41  ;;  %vm486_vm1 = vcmp.gt.f32.partialorder %v476_v41, 0.0 }
 0x4c4   :  { %2412 = vpow2.f32 %v480_v43 }
 0x4c7   :  { %v477_v45 = vpop.f32.mrf.mxu1 }
 0x4c8   :  { %v478_v46 = vadd.f32 %v2389_v38, %v477_v45  ;;  %v686_v38 = vpop.f32.mrf.mxu3 }
 0x4ca   :  { %v482_v48 = vmul.f32 1.442695, %v478_v46  ;;  %v2413_v49 = vpop.eup %2412  ;;  %vm487_vm2 = vcmp.gt.f32.partialorder %v478_v46, 0.0 }
 0x4cb   :  { %v1809_v51 = vadd.f32 -1.0, %v2413_v49 }
 0x4cc   :  { %2414 = vpow2.f32 %v482_v48 }
 0x4cd   :  { %v488_v54 = vsel %vm486_vm1, %v476_v41, %v1809_v51 }
 0x4ce   :  { %v494_v57 = vrot.slane %v488_v54, 6  ;;  %v499_v61 = vrot.slane %v488_v54, 2 }
 0x4d2   :  { %v2415_v53 = vpop.eup %2414 }
 0x4d3   :  { %v1810_v55 = vadd.f32 -1.0, %v2415_v53 }
 0x4d5   :  { %v489_v56 = vsel %vm487_vm2, %v478_v46, %v1810_v55  ;;  %v2244_v46 = vld [vmem:[#allocation2 + $0x108] sm:$0xff] }
 0x4d6   :  { %v491_v58 = vrot.slane %v489_v56, 6  ;;  %v500_v59 = vrot.slane %v489_v56, 2  ;;  %v2370_v60 = vpack.i.bf16 %v489_v56, %v488_v54  ;;  %832 = vmatpush.bf16.msrb.mxu1 %v2244_v46 }
 0x4d8   :  { %2371 = vrot.lane.b32.xlu2 %v2370_v60, %s2465_s23  ;;  %v501_v62 = vsel %vm388_vm14, %v499_v61, %v500_v59  ;;  %v505_v63 = vsel %vm388_vm14, %v500_v59, %v499_v61  ;;  %v495_v0 = vsel %vm382_vm15, %v494_v57, %v491_v58  ;;  %v498_v1 = vsel %vm382_vm15, %v491_v58, %v494_v57  ;;  %v2243_v58 = vld [vmem:[#allocation2 + $0x100] sm:$0xff]  ;;  %v2282_v59 = vld [vmem:[#allocation2 + $0x238] sm:$0xff]  ;;  %v2281_v60 = vld [vmem:[#allocation2 + $0x230] sm:$0xff] }
 0x4d9   :  { %v539_v2 = vpack.c.bf16 %v505_v63, %v501_v62  ;;  %v2280_v61 = vld [vmem:[#allocation2 + $0x228] sm:$0xff]  ;;  %v2279_v62 = vld [vmem:[#allocation2 + $0x220] sm:$0xff]  ;;  %v2270_v63 = vld [vmem:[#allocation2 + $0x1d8] sm:$0xff] }
 0x4da   :  { %833 = vmatpush.bf16.msrb.mxu1 %v2243_v58  ;;  %1084 = vmatpush.bf16.msrb.mxu2 %v2270_v63  ;;  %v1283_v58 = vld [vmem:[%s2660_s1] sm:$0x3] }
 0x4db   :  { %1859 = vmatmul.msk.bf16.vlgmr.msrb.gmra.mxu0 %vm253_vm10, %v539_v2  ;;  %v2298_v63 = vld [vmem:[#allocation2 + $0x2c0] sm:$0xff] }
 0x4de   :  { %1162 = vmatpush.bf16.msra.mxu1 %v2282_v59  ;;  %v1287_v59 = vpack.c.bf16 %v1283_v58, %v1283_v58 }
 0x4e2   :  { %1163 = vmatpush.bf16.msra.mxu1 %v2281_v60  ;;  %v2293_v60 = vld [vmem:[#allocation2 + $0x298] sm:$0xff] }
 0x4e6   :  { %1164 = vmatpush.bf16.msra.mxu1 %v2280_v61  ;;  %v2299_v61 = vld [vmem:[#allocation2 + $0x2c8] sm:$0xff] }
 0x4ea   :  { %1165 = vmatpush.bf16.msra.mxu1 %v2279_v62  ;;  %v2292_v62 = vld [vmem:[#allocation2 + $0x290] sm:$0xff] }
 0x532   :  { %v2372_v4 = vpop.permute.xlu2 %2371 }
 0x533   :  { %v2374_v5 = vunpack.i.h.bf16 %v2372_v4  ;;  %v2373_v6 = vunpack.i.l.bf16 %v2372_v4 }
 0x535   :  { %v512_v7 = vsel %vm253_vm10, %v498_v1, %v2373_v6  ;;  %v513_v8 = vsel %vm253_vm10, %v495_v0, %v2374_v5  ;;  %v2262_v0 = vld [vmem:[#allocation2 + $0x198] sm:$0xff] }
 0x536   :  { %v538_v9 = vpack.c.bf16 %v513_v8, %v512_v7  ;;  %v2278_v1 = vld [vmem:[#allocation2 + $0x218] sm:$0xff]  ;;  %1070 = vmatpush.bf16.msrb.mxu3 %v2262_v0  ;;  %v2269_v8 = vld [vmem:[#allocation2 + $0x1d0] sm:$0xff] }
 0x537   :  { %1098 = vmatpush.bf16.msrb.mxu0 %v2278_v1  ;;  %1085 = vmatpush.bf16.msrb.mxu2 %v2269_v8  ;;  %v2393_v1 = vld [vmem:[%s2663_s4 + $0x8] ss:$0 sm:$0xff]  ;;  %v2290_v8 = vld [vmem:[#allocation2 + $0x278] sm:$0xff] }
 0x538   :  { %625 = vmatmul.bf16.vlgmr.msra.gmra.mxu2 %v538_v9  ;;  %v2261_v9 = vld [vmem:[#allocation2 + $0x190] sm:$0xff] }
 0x53a   :  { %1071 = vmatpush.bf16.msrb.mxu3 %v2261_v9 }
 0x53b   :  { %1099 = vmatpush.bf16.msrb.mxu0 %v2277_v10  ;;  %1086 = vmatpush.bf16.msrb.mxu2 %v2268_v11  ;;  %v2289_v11 = vld [vmem:[#allocation2 + $0x270] sm:$0xff] }
 0x53f   :  { %1100 = vmatpush.bf16.msrb.mxu0 %v2276_v13  ;;  %v2394_v13 = vld [vmem:[%s2663_s4 + $0xb] ss:$0 sm:$0xff] }
 0x558   :  { %v640_v14 = vpop.f32.mrf.mxu0 }
 0x560   :  { %v642_v24 = vpop.f32.mrf.mxu0 }
 0x5bb   :  { %v626_v15 = vpop.f32.mrf.mxu2 }
 0x5bc   :  { %v627_v16 = vadd.f32 %v2390_v12, %v626_v15  ;;  %v2259_v15 = vld [vmem:[#allocation2 + $0x180] sm:$0xff] }
 0x5be   :  { %v641_v18 = vadd.f32 %v640_v14, %v627_v16  ;;  %v2267_v14 = vld [vmem:[#allocation2 + $0x1c0] sm:$0xff] }
 0x5bf   :  { %1087 = vmatpush.bf16.msrb.mxu2 %v2267_v14  ;;  %v2275_v16 = vld [vmem:[#allocation2 + $0x200] sm:$0xff] }
 0x5c0   :  { %v645_v19 = vmul.f32 1.442695, %v641_v18  ;;  %vm651_vm4 = vcmp.gt.f32.partialorder %v641_v18, 0.0  ;;  %1101 = vmatpush.bf16.msrb.mxu0 %v2275_v16  ;;  %v2288_v16 = vld [vmem:[#allocation2 + $0x268] sm:$0xff] }
 0x5c2   :  { %2416 = vpow2.f32 %v645_v19  ;;  %v2274_v19 = vld [vmem:[#allocation2 + $0x1f8] sm:$0xff] }
 0x5c3   :  { %v628_v21 = vpop.f32.mrf.mxu2  ;;  %1088 = vmatpush.bf16.msrb.mxu2 %v2266_v17 }
 0x5c4   :  { %v629_v22 = vadd.f32 %v2390_v12, %v628_v21  ;;  %v2260_v12 = vld [vmem:[#allocation2 + $0x188] sm:$0xff]  ;;  %1102 = vmatpush.bf16.msrb.mxu0 %v2274_v19  ;;  %v2257_v21 = vld [vmem:[#allocation2 + $0x170] sm:$0xff] }
 0x5c5   :  { %1072 = vmatpush.bf16.msrb.mxu3 %v2260_v12 }
 0x5c6   :  { %v643_v25 = vadd.f32 %v642_v24, %v629_v22  ;;  %v2273_v22 = vld [vmem:[#allocation2 + $0x1f0] sm:$0xff]  ;;  %v2256_v24 = vld [vmem:[#allocation2 + $0x168] sm:$0xff] }
 0x5c7   :  { %1089 = vmatpush.bf16.msrb.mxu2 %v2265_v20 }
 0x5c8   :  { %v2417_v26 = vpop.eup %2416  ;;  %v647_v27 = vmul.f32 1.442695, %v643_v25  ;;  %vm652_vm5 = vcmp.gt.f32.partialorder %v643_v25, 0.0  ;;  %1103 = vmatpush.bf16.msrb.mxu0 %v2273_v22 }
 0x5c9   :  { %v1860_v30 = vadd.f32 -1.0, %v2417_v26  ;;  %1073 = vmatpush.bf16.msrb.mxu3 %v2259_v15  ;;  %v2263_v26 = vld [vmem:[#allocation2 + $0x1a0] sm:$0xff] }
 0x5ca   :  { %2418 = vpow2.f32 %v647_v27  ;;  %v2255_v27 = vld [vmem:[#allocation2 + $0x160] sm:$0xff] }
 0x5cb   :  { %v653_v32 = vsel %vm651_vm4, %v641_v18, %v1860_v30  ;;  %v2258_v18 = vld [vmem:[#allocation2 + $0x178] sm:$0xff]  ;;  %1090 = vmatpush.bf16.msrb.mxu2 %v2264_v23 }
 0x5cc   :  { %v689_v34 = vadd.f32 %v684_v29, %v653_v32  ;;  %v1286_v29 = vld [vmem:[#allocation2 + $0x288] sm:$0x3] }
 0x5cd   :  { %1074 = vmatpush.bf16.msrb.mxu3 %v2258_v18  ;;  %v1295_v30 = vunpack.c.l.b16 %v1286_v29 }
 0x5ce   :  { %v693_v41 = vadd.f32 %v2391_v35, %v689_v34 }
 0x5cf   :  { %1091 = vmatpush.bf16.msrb.mxu2 %v2263_v26  ;;  %v1297_v32 = vpack.c.b16 %v1295_v30, %v1295_v30  ;;  %v2395_v30 = vld [vmem:[%s2663_s4 + $0x9] ss:$0 sm:$0xff] }
 0x5d0   :  { %v2419_v33 = vpop.eup %2418  ;;  %v697_v44 = vrot.slane %v693_v41, 2 }
 0x5d1   :  { %v1861_v37 = vadd.f32 -1.0, %v2419_v33  ;;  %1075 = vmatpush.bf16.msrb.mxu3 %v2257_v21 }
 0x5d3   :  { %v654_v39 = vsel %vm652_vm5, %v643_v25, %v1861_v37  ;;  %v2272_v25 = vld [vmem:[#allocation2 + $0x1e8] sm:$0xff]  ;;  %v2291_v37 = vld [vmem:[#allocation2 + $0x280] sm:$0xff] }
 0x5d4   :  { %v690_v40 = vadd.f32 %v686_v38, %v654_v39  ;;  %1104 = vmatpush.bf16.msrb.mxu0 %v2272_v25  ;;  %v2287_v25 = vld [vmem:[#allocation2 + $0x260] sm:$0xff] }
 0x5d5   :  { %1076 = vmatpush.bf16.msrb.mxu3 %v2256_v24 }
 0x5d6   :  { %v694_v43 = vadd.f32 %v2391_v35, %v690_v40  ;;  %v1304_v35 = vsel %vm382_vm15, %v1297_v32, 0 }
 0x5d7   :  { %1312 = vmatpush.bf16.msra.mxu2 %v1304_v35 }
 0x5d8   :  { %v698_v45 = vrot.slane %v694_v43, 2  ;;  %1105 = vmatpush.bf16.msrb.mxu0 %v2271_v28 }
 0x5d9   :  { %1077 = vmatpush.bf16.msrb.mxu3 %v2255_v27 }
 0x5da   :  { %v699_v47 = vsel %vm388_vm14, %v697_v44, %v698_v45  ;;  %v703_v48 = vsel %vm388_vm14, %v698_v45, %v697_v44  ;;  %vm1724_vm14 = vcmask 123904  }
 0x5db   :  { %v704_v49 = vmax.f32 %v693_v41, %v699_v47  ;;  %v705_v50 = vmax.f32 %v694_v43, %v703_v48  ;;  %1313 = vmatpush.bf16.msra.mxu2 %v2291_v37 }
 0x5dd   :  { %v707_v51 = vrot.slane %v705_v50, 4  ;;  %v2375_v52 = vpack.i.bf16 %v705_v50, %v704_v49  ;;  %v710_v53 = vrot.slane %v704_v49, 4  ;;  %v1130_v54 = vpack.c.bf16 %v705_v50, %v704_v49  ;;  %1270 = vmatpush.bf16.msra.mxu3 %v2290_v8  ;;  %v2315_v8 = vld [vmem:[#allocation2 + $0x348] sm:$0xff] }
 0x5df   :  { %2376 = vrot.lane.b32.xlu0 %v2375_v52, %s2465_s23  ;;  %v711_v55 = vsel %vm46_vm0, %v710_v53, %v707_v51  ;;  %v714_v56 = vsel %vm46_vm0, %v707_v51, %v710_v53 }
 0x5e0   :  { %v748_v57 = vpack.c.bf16 %v714_v56, %v711_v55 }
 0x5e1   :  { %1271 = vmatpush.bf16.msra.mxu3 %v2289_v11  ;;  %v2301_v11 = vld [vmem:[#allocation2 + $0x2d8] sm:$0xff] }
 0x5e2   :  { %1919 = vmatmul.msk.bf16.vlgmr.msra.gmra.mxu0 %vm253_vm10, %v748_v57 }
 0x5e5   :  { %1272 = vmatpush.bf16.msra.mxu3 %v2288_v16  ;;  %v2310_v16 = vld [vmem:[#allocation2 + $0x320] sm:$0xff] }
 0x5e9   :  { %1273 = vmatpush.bf16.msra.mxu3 %v2287_v25 }
 0x651   :  { %v2377_v2 = vpop.permute.xlu0 %2376 }
 0x652   :  { %v2379_v3 = vunpack.i.h.bf16 %v2377_v2  ;;  %v2378_v4 = vunpack.i.l.bf16 %v2377_v2 }
 0x654   :  { %v721_v5 = vsel %vm253_vm10, %v714_v56, %v2378_v4  ;;  %v722_v6 = vsel %vm253_vm10, %v711_v55, %v2379_v3 }
 0x655   :  { %v747_v7 = vpack.c.bf16 %v722_v6, %v721_v5 }
 0x657   :  { %834 = vmatmul.bf16.vlgmr.msrb.gmra.mxu1 %v747_v7 }
 0x658   :  { %1347 = vmatpush.bf16.msrb.mxu1 %v2293_v60 }
 0x65c   :  { %1348 = vmatpush.bf16.msrb.mxu1 %v2292_v62 }
 0x65f   :  { %v849_v33 = vpop.f32.mrf.mxu0 }
 0x667   :  { %2036 = vmatmul.msk.bf16.vlgmr.msra.gmra.mxu1 %vm253_vm10, %v1130_v54  ;;  %v851_v42 = vpop.f32.mrf.mxu0 }
 0x6d4   :  { %v835_v34 = vpop.f32.mrf.mxu1 }
 0x6d5   :  { %v836_v36 = vadd.f32 %v2392_v31, %v835_v34 }
 0x6d7   :  { %v850_v38 = vadd.f32 %v849_v33, %v836_v36 }
 0x6d9   :  { %v854_v39 = vmul.f32 1.442695, %v850_v38  ;;  %vm860_vm7 = vcmp.gt.f32.partialorder %v850_v38, 0.0 }
 0x6db   :  { %2420 = vpow2.f32 %v854_v39 }
 0x6dc   :  { %v837_v40 = vpop.f32.mrf.mxu1 }
 0x6dd   :  { %v838_v41 = vadd.f32 %v2392_v31, %v837_v40 }
 0x6df   :  { %v852_v43 = vadd.f32 %v851_v42, %v838_v41 }
 0x6e1   :  { %v856_v44 = vmul.f32 1.442695, %v852_v43  ;;  %v2421_v45 = vpop.eup %2420  ;;  %vm861_vm8 = vcmp.gt.f32.partialorder %v852_v43, 0.0 }
 0x6e2   :  { %v1920_v46 = vadd.f32 -1.0, %v2421_v45  ;;  %v2286_v45 = vld [vmem:[#allocation2 + $0x258] sm:$0xff] }
 0x6e3   :  { %2422 = vpow2.f32 %v856_v44  ;;  %v2297_v44 = vld [vmem:[#allocation2 + $0x2b8] sm:$0xff]  ;;  %1274 = vmatpush.bf16.msra.mxu3 %v2286_v45 }
 0x6e4   :  { %v862_v49 = vsel %vm860_vm7, %v850_v38, %v1920_v46  ;;  %v1167_v22 = vpop.f32.mrf.mxu1  ;;  %1401 = vmatpush.bf16.msra.mxu0 %v2297_v44  ;;  %v2296_v46 = vld [vmem:[#allocation2 + $0x2b0] sm:$0xff] }
 0x6e5   :  { %v868_v52 = vrot.slane %v862_v49, 4 }
 0x6e8   :  { %1402 = vmatpush.bf16.msra.mxu0 %v2296_v46 }
 0x6e9   :  { %v2423_v47 = vpop.eup %2422 }
 0x6ea   :  { %v1921_v48 = vadd.f32 -1.0, %v2423_v47  ;;  %v2285_v47 = vld [vmem:[#allocation2 + $0x250] sm:$0xff] }
 0x6eb   :  { %1275 = vmatpush.bf16.msra.mxu3 %v2285_v47 }
 0x6ec   :  { %v863_v50 = vsel %vm861_vm8, %v852_v43, %v1921_v48  ;;  %v1169_v32 = vpop.f32.mrf.mxu1  ;;  %v2295_v48 = vld [vmem:[#allocation2 + $0x2a8] sm:$0xff] }
 0x6ed   :  { %v865_v51 = vrot.slane %v863_v50, 4  ;;  %v922_v53 = vpack.c.bf16 %v863_v50, %v862_v49  ;;  %v2284_v49 = vld [vmem:[#allocation2 + $0x248] sm:$0xff]  ;;  %1403 = vmatpush.bf16.msra.mxu0 %v2295_v48  ;;  %v2294_v50 = vld [vmem:[#allocation2 + $0x2a0] sm:$0xff] }
 0x6ef   :  { %1092 = vmatmul.bf16.vlgmr.msrb.gmra.mxu2 %v922_v53  ;;  %v869_v54 = vsel %vm46_vm0, %v868_v52, %v865_v51  ;;  %v872_v55 = vsel %vm46_vm0, %v865_v51, %v868_v52  ;;  %1276 = vmatpush.bf16.msra.mxu3 %v2284_v49  ;;  %v2283_v51 = vld [vmem:[#allocation2 + $0x240] sm:$0xff]  ;;  %v2396_v52 = vld [vmem:[%s2663_s4 + $0xc] ss:$0 sm:$0xff] }
 0x6f0   :  { %v921_v56 = vpack.c.bf16 %v869_v54, %v872_v55  ;;  %v923_v57 = vpack.c.bf16 %v872_v55, %v869_v54  ;;  %1437 = vmatpush.bf16.msrb.mxu2 %v2299_v61 }
 0x6f1   :  { %1404 = vmatpush.bf16.msra.mxu0 %v2294_v50 }
 0x6f2   :  { %1078 = vmatmul.bf16.vlgmr.msrb.gmra.mxu3 %v921_v56  ;;  %1106 = vmatmul.bf16.vlgmr.msrb.gmra.mxu0 %v923_v57 }
 0x6f3   :  { %1277 = vmatpush.bf16.msra.mxu3 %v2283_v51  ;;  %v2320_v51 = vld [vmem:[#allocation2 + $0x370] sm:$0xff] }
 0x6f4   :  { %1438 = vmatpush.bf16.msrb.mxu2 %v2298_v63 }
 0x6f7   :  { %1625 = vmatpush.bf16.msrb.mxu3 %v2315_v8 }
 0x6ff   :  { %2073 = vmatmul.msk.bf16.vlgmr.msra.gmra.mxu2 %vm1299_vm9, %v1287_v59 }
 0x76f   :  { %v1107_v4 = vpop.f32.mrf.mxu0 }
 0x772   :  { %v1093_v0 = vpop.f32.mrf.mxu2 }
 0x775   :  { %v1079_v2 = vpop.f32.mrf.mxu3 }
 0x776   :  { %v1080_v3 = vadd.f32 %v2393_v1, %v1079_v2 }
 0x777   :  { %v1109_v15 = vpop.f32.mrf.mxu0 }
 0x778   :  { %v1094_v5 = vadd.f32 %v1093_v0, %v1080_v3 }
 0x77a   :  { %v1108_v6 = vadd.f32 %v1107_v4, %v1094_v5  ;;  %v1095_v7 = vpop.f32.mrf.mxu2 }
 0x77c   :  { %v1112_v9 = vmul.f32 1.442695, %v1108_v6  ;;  %vm1118_vm11 = vcmp.gt.f32.partialorder %v1108_v6, 0.0 }
 0x77d   :  { %v1081_v10 = vpop.f32.mrf.mxu3 }
 0x77e   :  { %2424 = vpow2.f32 %v1112_v9  ;;  %v1082_v12 = vadd.f32 %v2393_v1, %v1081_v10  ;;  %v2302_v9 = vld [vmem:[#allocation2 + $0x2e0] sm:$0xff] }
 0x77f   :  { %v2314_v10 = vld [vmem:[#allocation2 + $0x340] sm:$0xff] }
 0x780   :  { %v1096_v14 = vadd.f32 %v1095_v7, %v1082_v12  ;;  %v2303_v7 = vld [vmem:[#allocation2 + $0x2e8] sm:$0xff]  ;;  %1626 = vmatpush.bf16.msrb.mxu3 %v2314_v10  ;;  %v2313_v12 = vld [vmem:[#allocation2 + $0x338] sm:$0xff] }
 0x781   :  { %1490 = vmatpush.bf16.msra.mxu1 %v2303_v7 }
 0x782   :  { %v1110_v17 = vadd.f32 %v1109_v15, %v1096_v14  ;;  %v1315_v18 = vpop.f32.mrf.mxu2  ;;  %v2312_v14 = vld [vmem:[#allocation2 + $0x330] sm:$0xff]  ;;  %v2311_v15 = vld [vmem:[#allocation2 + $0x328] sm:$0xff] }
 0x783   :  { %v1316_v19 = vadd.f32 %v2394_v13, %v1315_v18  ;;  %v2300_v13 = vld [vmem:[#allocation2 + $0x2d0] sm:$0xff]  ;;  %1571 = vmatpush.bf16.msrb.mxu0 %v2311_v15  ;;  %v2397_v18 = vld [vmem:[%s2663_s4 + $0xd] ss:$0 sm:$0xff] }
 0x784   :  { %v2425_v20 = vpop.eup %2424  ;;  %v1114_v21 = vmul.f32 1.442695, %v1110_v17  ;;  %vm1119_vm12 = vcmp.gt.f32.partialorder %v1110_v17, 0.0  ;;  %1627 = vmatpush.bf16.msrb.mxu3 %v2313_v12 }
 0x785   :  { %v2018_v23 = vadd.f32 -1.0, %v2425_v20  ;;  %v1323_v24 = vpack.c.bf16 %v1316_v19, %v1316_v19  ;;  %1491 = vmatpush.bf16.msra.mxu1 %v2302_v9  ;;  %v2308_v19 = vld [vmem:[#allocation2 + $0x310] sm:$0xff]  ;;  %v2399_v9 = vld [vmem:[%s2663_s4 + $0xa] ss:$0 sm:$0xff] }
 0x786   :  { %2426 = vpow2.f32 %v1114_v21 }
 0x787   :  { %2082 = vmatmul.msk.bf16.vlgmr.msrb.gmra.mxu1 %vm165_vm6, %v1323_v24  ;;  %2110 = vmatmul.msk.bf16.vlgmr.msrb.gmra.mxu2 %vm165_vm6, %v1323_v24  ;;  %v1120_v26 = vsel %vm1118_vm11, %v1108_v6, %v2018_v23 }
 0x788   :  { %v1172_v29 = vadd.f32 %v1167_v22, %v1120_v26  ;;  %1628 = vmatpush.bf16.msrb.mxu3 %v2312_v14  ;;  %1572 = vmatpush.bf16.msrb.mxu0 %v2310_v16 }
 0x789   :  { %1492 = vmatpush.bf16.msra.mxu1 %v2301_v11 }
 0x78a   :  { %v1317_v27 = vpop.f32.mrf.mxu2  ;;  %v1176_v35 = vadd.f32 %v2395_v30, %v1172_v29 }
 0x78b   :  { %v2398_v27 = vld [vmem:[%s2663_s4 + $0xe] ss:$0 sm:$0xff] }
 0x78c   :  { %v2427_v28 = vpop.eup %2426  ;;  %v1180_v37 = vrot.slane %v1176_v35, 4 }
 0x78d   :  { %v2019_v31 = vadd.f32 -1.0, %v2427_v28  ;;  %1493 = vmatpush.bf16.msra.mxu1 %v2300_v13 }
 0x78f   :  { %v1121_v33 = vsel %vm1119_vm12, %v1110_v17, %v2019_v31  ;;  %v2309_v17 = vld [vmem:[#allocation2 + $0x318] sm:$0xff] }
 0x790   :  { %v1173_v34 = vadd.f32 %v1169_v32, %v1121_v33  ;;  %1573 = vmatpush.bf16.msrb.mxu0 %v2309_v17  ;;  %v2307_v33 = vld [vmem:[#allocation2 + $0x308] sm:$0xff] }
 0x792   :  { %v1177_v36 = vadd.f32 %v2395_v30, %v1173_v34  ;;  %v2306_v34 = vld [vmem:[#allocation2 + $0x300] sm:$0xff] }
 0x794   :  { %v1181_v38 = vrot.slane %v1177_v36, 4  ;;  %1574 = vmatpush.bf16.msrb.mxu0 %v2308_v19 }
 0x796   :  { %v1182_v39 = vsel %vm46_vm0, %v1180_v37, %v1181_v38  ;;  %v1186_v40 = vsel %vm46_vm0, %v1181_v38, %v1180_v37  ;;  %v2323_v37 = vld [vmem:[#allocation2 + $0x388] sm:$0xff]  ;;  %v2322_v38 = vld [vmem:[#allocation2 + $0x380] sm:$0xff] }
 0x797   :  { %v1187_v41 = vmax.f32 %v1176_v35, %v1182_v39  ;;  %v1188_v42 = vmax.f32 %v1177_v36, %v1186_v40  ;;  %v2305_v35 = vld [vmem:[#allocation2 + $0x2f8] sm:$0xff]  ;;  %v2304_v36 = vld [vmem:[#allocation2 + $0x2f0] sm:$0xff]  ;;  %1705 = vmatpush.bf16.msra.mxu2 %v2323_v37  ;;  %v2400_v40 = vld [vmem:[%s2663_s4 + $0xf] ss:$0 sm:$0xff] }
 0x798   :  { %1575 = vmatpush.bf16.msrb.mxu0 %v2307_v33  ;;  %v2321_v39 = vld [vmem:[#allocation2 + $0x378] sm:$0xff] }
 0x799   :  { %v2380_v43 = vpack.i.bf16 %v1188_v42, %v1187_v41 }
 0x79b   :  { %2381 = vrot.lane.b32.xlu1 %v2380_v43, %s2465_s23  ;;  %1706 = vmatpush.bf16.msra.mxu2 %v2322_v38 }
 0x79c   :  { %1576 = vmatpush.bf16.msrb.mxu0 %v2306_v34 }
 0x79f   :  { %1707 = vmatpush.bf16.msra.mxu2 %v2321_v39 }
 0x7a0   :  { %1577 = vmatpush.bf16.msrb.mxu0 %v2305_v35 }
 0x7a3   :  { %1708 = vmatpush.bf16.msra.mxu2 %v2320_v51 }
 0x7a4   :  { %1578 = vmatpush.bf16.msrb.mxu0 %v2304_v36 }
 0x804   :  { %v1350_v53 = vpop.f32.mrf.mxu1 }
 0x805   :  { %v1351_v54 = vadd.f32 %v2396_v52, %v1350_v53  ;;  %v2319_v52 = vld [vmem:[#allocation2 + $0x368] sm:$0xff]  ;;  %v2318_v53 = vld [vmem:[#allocation2 + $0x360] sm:$0xff] }
 0x806   :  { %1709 = vmatpush.bf16.msra.mxu2 %v2319_v52 }
 0x807   :  { %v1354_v55 = vmul.f32 1.442695, %v1351_v54  ;;  %vm1357_vm0 = vcmp.gt.f32.partialorder %v1351_v54, 0.0 }
 0x809   :  { %2428 = vpow2.f32 %v1354_v55  ;;  %v2316_v55 = vld [vmem:[#allocation2 + $0x350] sm:$0xff] }
 0x80a   :  { %v1440_v56 = vpop.f32.mrf.mxu2  ;;  %1710 = vmatpush.bf16.msra.mxu2 %v2318_v53 }
 0x80c   :  { %v1352_v57 = vpop.f32.mrf.mxu1 }
 0x80d   :  { %v2382_v58 = vpop.permute.xlu1 %2381 }
 0x80e   :  { %v2384_v59 = vunpack.i.h.bf16 %v2382_v58  ;;  %v2383_v60 = vunpack.i.l.bf16 %v2382_v58 }
 0x80f   :  { %v2429_v61 = vpop.eup %2428 }
 0x810   :  { %v2083_v62 = vadd.f32 -1.0, %v2429_v61  ;;  %v1198_v63 = vsel %vm253_vm10, %v2383_v60, %v1188_v42  ;;  %v1193_v2 = vsel %vm253_vm10, %v1187_v41, %v2384_v59 }
 0x811   :  { %v1200_v0 = vrot.slane %v1198_v63, 7  ;;  %v2402_v63 = vld [vmem:[%s2663_s4 + $0x11] ss:$0 sm:$0xff] }
 0x812   :  { %v1358_v1 = vsel %vm1357_vm0, %v1351_v54, %v2083_v62  ;;  %v1442_v3 = vpop.f32.mrf.mxu2  ;;  %v2317_v54 = vld [vmem:[#allocation2 + $0x358] sm:$0xff] }
 0x813   :  { %v1367_v4 = vpack.c.bf16 %v1358_v1, %v1358_v1  ;;  %v1202_v5 = vsel %vm68_vm3, %v1193_v2, %v1200_v0  ;;  %1711 = vmatpush.bf16.msra.mxu2 %v2317_v54 }
 0x814   :  { %v1219_v6 = vpack.c.bf16 %v1202_v5, %v1202_v5 }
 0x815   :  { %2100 = vmatmul.msk.bf16.vlgmr.msra.gmra.mxu0 %vm253_vm10, %v1367_v4  ;;  %v2403_v4 = vld [vmem:[%s2663_s4 + $0x12] ss:$0 sm:$0xff] }
 0x816   :  { %1278 = vmatmul.bf16.vlgmr.msra.gmra.mxu3 %v1219_v6 }
 0x817   :  { %1712 = vmatpush.bf16.msra.mxu2 %v2316_v55 }
 0x892   :  { %v1406_v20 = vpop.f32.mrf.mxu0 }
 0x893   :  { %v1407_v21 = vadd.f32 %v2397_v18, %v1406_v20 }
 0x895   :  { %v1410_v22 = vmul.f32 1.442695, %v1407_v21  ;;  %vm1413_vm3 = vcmp.gt.f32.partialorder %v1407_v21, 0.0 }
 0x897   :  { %2430 = vpow2.f32 %v1410_v22 }
 0x899   :  { %v2633_v23 = vpop.f32.mrf.mxu3 }
 0x89a   :  { %v1408_v24 = vpop.f32.mrf.mxu0  ;;  %v1280_v12 = vadd.f32 %v2399_v9, %v2633_v23 }
 0x89d   :  { %v2431_v25 = vpop.eup %2430 }
 0x89e   :  { %v2101_v26 = vadd.f32 -1.0, %v2431_v25 }
 0x8a0   :  { %v1414_v28 = vsel %vm1413_vm3, %v1407_v21, %v2101_v26 }
 0x8a1   :  { %v1444_v29 = vadd.f32 %v1440_v56, %v1414_v28  ;;  %v1281_v30 = vpop.f32.mrf.mxu3  ;;  %v2401_v56 = vld [vmem:[%s2663_s4 + $0x10] ss:$0 sm:$0xff] }
 0x8a3   :  { %v1447_v31 = vadd.f32 %v2398_v27, %v1444_v29 }
 0x8a5   :  { %v1456_v32 = vpack.c.bf16 %v1447_v31, %v1447_v31 }
 0x8a7   :  { %2127 = vmatmul.msk.bf16.vlgmr.msra.gmra.mxu1 %vm253_vm10, %v1456_v32  ;;  %2178 = vmatmul.msk.bf16.vlgmr.msrb.gmra.mxu3 %vm253_vm10, %v1456_v32 }
 0x924   :  { %v1495_v41 = vpop.f32.mrf.mxu1 }
 0x925   :  { %v1496_v42 = vadd.f32 %v2400_v40, %v1495_v41 }
 0x927   :  { %v1499_v43 = vmul.f32 1.442695, %v1496_v42  ;;  %vm1502_vm6 = vcmp.gt.f32.partialorder %v1496_v42, 0.0 }
 0x929   :  { %2432 = vpow2.f32 %v1499_v43 }
 0x92a   :  { %v1630_v44 = vpop.f32.mrf.mxu3 }
 0x92c   :  { %v1497_v45 = vpop.f32.mrf.mxu1 }
 0x92f   :  { %v2433_v46 = vpop.eup %2432 }
 0x930   :  { %v2128_v47 = vadd.f32 -1.0, %v2433_v46 }
 0x932   :  { %v1503_v48 = vsel %vm1502_vm6, %v1496_v42, %v2128_v47  ;;  %v1632_v49 = vpop.f32.mrf.mxu3 }
 0x933   :  { %v1520_v50 = vpack.c.bf16 %v1503_v48, %v1503_v48 }
 0x935   :  { %1579 = vmatmul.bf16.vlgmr.msrb.gmra.mxu0 %v1520_v50 }
 0x9b2   :  { %v1580_v57 = vpop.f32.mrf.mxu0 }
 0x9b3   :  { %v1581_v58 = vadd.f32 %v2401_v56, %v1580_v57 }
 0x9b5   :  { %v1584_v59 = vmul.f32 1.442695, %v1581_v58  ;;  %vm1587_vm10 = vcmp.gt.f32.partialorder %v1581_v58, 0.0 }
 0x9b7   :  { %2434 = vpow2.f32 %v1584_v59 }
 0x9ba   :  { %v1582_v60 = vpop.f32.mrf.mxu0 }
 0x9bd   :  { %v2435_v61 = vpop.eup %2434 }
 0x9be   :  { %v2161_v62 = vadd.f32 -1.0, %v2435_v61 }
 0x9c0   :  { %v1588_v0 = vsel %vm1587_vm10, %v1581_v58, %v2161_v62 }
 0x9c1   :  { %v1634_v1 = vadd.f32 %v1630_v44, %v1588_v0 }
 0x9c3   :  { %v1637_v2 = vadd.f32 %v2402_v63, %v1634_v1 }
 0x9c5   :  { %v1654_v3 = vpack.c.bf16 %v1637_v2, %v1637_v2 }
 0x9c7   :  { %1713 = vmatmul.bf16.vlgmr.msra.gmra.mxu2 %v1654_v3 }
 0xa4a   :  { %v1714_v5 = vpop.f32.mrf.mxu2 }
 0xa4b   :  { %v1715_v6 = vadd.f32 %v2403_v4, %v1714_v5 }
 0xa4d   :  { %v1718_v7 = vmul.f32 1.442695, %v1715_v6  ;;  %vm1721_vm13 = vcmp.gt.f32.partialorder %v1715_v6, 0.0 }
 0xa4f   :  { %2436 = vpow2.f32 %v1718_v7 }
 0xa52   :  { %v1716_v8 = vpop.f32.mrf.mxu2 }
 0xa55   :  { %v2437_v10 = vpop.eup %2436 }
 0xa56   :  { %v2211_v11 = vadd.f32 -1.0, %v2437_v10 }
 0xa58   :  { %v1722_v13 = vsel %vm1721_vm13, %v1715_v6, %v2211_v11 }
 0xa59   :  { %v1723_v14 = vadd.f32 %v1722_v13, %v1280_v12 }
 0xa5b   :  { %1725 = vst.msk [vmem:[%s2664_s5] sm:$0x3] %vm1724_vm14, %v1723_v14 }
 0xa5c   :  { %1730 = vsyncpa [#allocation3], 1 }

</bundles_post_ra>
